<compile_context>
chip_gen: v5e
topology: v5e:2x2
jax: 0.10.0
libtpu: 0.0.40
codegen_flags: <defaults>
</compile_context>

<pallas_src>
import math
import functools

import jax
import jax.numpy as jnp
from jax import lax
from jax.experimental import pallas as pl
from jax.experimental.pallas import tpu as pltpu


# ----------------------------- in-kernel helpers -----------------------------

def _layernorm(x, g, b, eps=1e-5):
    mu = jnp.mean(x, axis=-1, keepdims=True)
    var = jnp.mean((x - mu) ** 2, axis=-1, keepdims=True)
    return (x - mu) * lax.rsqrt(var + eps) * g + b


def _gelu_tanh(x):
    c = math.sqrt(2.0 / math.pi)
    return 0.5 * x * (1.0 + jnp.tanh(c * (x + 0.044715 * x * x * x)))


# --------------------------- VMEM budgeting / tiling --------------------------

def _vmem_budget():
    """Per-generation usable VMEM (bytes), with compiler headroom."""
    cap = 64 << 20                                   # safe default (v7x per-core VMEM)
    try:
        cap = int(pltpu.get_tpu_info().vmem_capacity_bytes)
    except Exception:
        pass
    return max(32 << 20, int(cap * 0.85))


def _ln_qkv_vmem_bytes(tile, D):
    blk = (tile * D * 2                 # x tile (bf16)
           + 2 * D * 4                  # ln_1 gamma/beta
           + D * 3 * D * 2              # Wqkv (bf16)
           + 3 * D * 4                  # bqkv
           + 3 * tile * D * 2)          # q/k/v out tiles (bf16)
    inter = tile * D * 4 + 3 * tile * 3 * D * 4      # LN temp + qkv f32 + relayouts
    return 2 * blk + inter + (4 << 20)


def _attn_mlp_vmem_bytes(tile, D, H):
    hd = D // H
    blk = (4 * tile * D * 2             # x, q, k, v tiles (bf16)
           + tile * D * 4               # out tile (f32 worst case)
           + 2 * D * 4 * D * 2          # Wfc + Wproj (bf16)
           + 10 * D * 4)                # biases + LN params
    scratch = 2 * H * tile * 4 + H * tile * hd * 4
    inter = (2 * H * tile * tile * 4    # scores + probs (f32)
             + 2 * tile * 4 * D * 4     # MLP hidden (f32 + bf16 copy)
             + 4 * tile * D * 4)        # h, h2, merged ctx, y
    return 2 * blk + scratch + inter + (4 << 20)


def _pick_tile(S, D, H, budget):
    candidates = [t for t in (256, 128, 64, 32, 16, 8) if S % t == 0]
    for t in candidates:
        if max(_ln_qkv_vmem_bytes(t, D), _attn_mlp_vmem_bytes(t, D, H)) <= budget:
            return t
    return candidates[-1] if candidates else S


def _vmem_limit(need, budget):
    return int(min(max(need, 32 << 20), budget))


# ------------------------- kernel 1: ln_1 + QKV Conv1D -------------------------

def ln_qkv_kernel(x_ref, g_ref, b_ref, w_ref, bias_ref, q_ref, k_ref, v_ref,
                  *, n_head, scale):
    """Per (batch, row-tile): LayerNorm -> fused QKV projection -> head-major store."""
    x = x_ref[0].astype(jnp.float32)                       # (TR, D)
    h1 = _layernorm(x, g_ref[0], b_ref[0])                 # f32 stats
    qkv = jnp.dot(h1.astype(jnp.bfloat16), w_ref[...],
                  preferred_element_type=jnp.float32) + bias_ref[0]   # (TR, 3D) f32
    TR = qkv.shape[0]
    D = g_ref.shape[-1]
    hd = D // n_head

    def to_heads(t):                                       # (TR, D) -> (H, TR, hd)
        return jnp.swapaxes(t.reshape(TR, n_head, hd), 0, 1)

    # 1/sqrt(hd) folded into q here (tiny multiply) instead of on the score tensor
    q_ref[0] = to_heads(qkv[:, 0:D] * jnp.float32(scale)).astype(q_ref.dtype)
    k_ref[0] = to_heads(qkv[:, D:2 * D]).astype(k_ref.dtype)
    v_ref[0] = to_heads(qkv[:, 2 * D:3 * D]).astype(v_ref.dtype)


def run_ln_qkv(x, g, b, w, bias, *, n_head, tile, budget):
    B, S, D = x.shape
    H = n_head
    hd = D // H
    head_shape = jax.ShapeDtypeStruct((B, H, S, hd), jnp.bfloat16)
    head_spec = pl.BlockSpec((1, H, tile, hd), lambda bb, ii: (bb, 0, ii, 0))
    kernel = functools.partial(ln_qkv_kernel, n_head=H, scale=1.0 / math.sqrt(hd))
    return pl.pallas_call(
        kernel,
        out_shape=(head_shape, head_shape, head_shape),
        grid=(B, S // tile),
        in_specs=[
            pl.BlockSpec((1, tile, D), lambda bb, ii: (bb, ii, 0)),   # x tile (bf16)
            pl.BlockSpec((1, D), lambda bb, ii: (0, 0)),              # ln_1 gamma
            pl.BlockSpec((1, D), lambda bb, ii: (0, 0)),              # ln_1 beta
            pl.BlockSpec((D, 3 * D), lambda bb, ii: (0, 0)),          # Wqkv (bf16)
            pl.BlockSpec((1, 3 * D), lambda bb, ii: (0, 0)),          # bqkv
        ],
        out_specs=(head_spec, head_spec, head_spec),
        compiler_params=pltpu.CompilerParams(
            dimension_semantics=("parallel", "parallel"),
            vmem_limit_bytes=_vmem_limit(_ln_qkv_vmem_bytes(tile, D), budget)),
    )(x, g, b, w, bias)


# --------- kernel 2: flash attention + residual + ln_2 + MLP (+ ln_f) ----------

def attn_mlp_kernel(x_ref, q_ref, k_ref, v_ref,
                    g2_ref, b2_ref, wfc_ref, bfc_ref, wpj_ref, bpj_ref,
                    gf_ref, bf_ref, out_ref, m_sc, l_sc, acc_sc, *, apply_final_ln):
    """Grid (B, q-tile, k-tile): online-softmax causal attention; on the last
    k-tile: merge heads, residual, ln_2, MLP, residual (+ optional fused ln_f)."""
    qi = pl.program_id(1)
    ki = pl.program_id(2)

    @pl.when(ki == 0)
    def _():
        m_sc[...] = jnp.full_like(m_sc, -jnp.inf)
        l_sc[...] = jnp.zeros_like(l_sc)
        acc_sc[...] = jnp.zeros_like(acc_sc)

    # skip K/V tiles that lie fully above the causal diagonal (TQ == TK)
    @pl.when(ki <= qi)
    def _():
        q = q_ref[0]                                        # (H, TQ, hd) bf16, pre-scaled
        k = k_ref[0]                                        # (H, TK, hd) bf16
        v = v_ref[0]                                        # (H, TK, hd) bf16
        s = jnp.einsum('hqd,hkd->hqk', q, k,
                       preferred_element_type=jnp.float32)  # (H, TQ, TK) f32
        TQ, TK = s.shape[1], s.shape[2]
        rows = qi * TQ + lax.broadcasted_iota(jnp.int32, (TQ, TK), 0)
        cols = ki * TK + lax.broadcasted_iota(jnp.int32, (TQ, TK), 1)
        s = jnp.where((cols <= rows)[None, :, :], s, jnp.float32(-10000.0))

        m_prev = m_sc[...]
        m_new = jnp.maximum(m_prev, jnp.max(s, axis=-1, keepdims=True))
        alpha = jnp.exp(m_prev - m_new)
        p = jnp.exp(s - m_new)
        # attn_dropout: identity (eval semantics)
        l_sc[...] = alpha * l_sc[...] + jnp.sum(p, axis=-1, keepdims=True)
        acc_sc[...] = alpha * acc_sc[...] + jnp.einsum(
            'hqk,hkd->hqd', p.astype(v.dtype), v, preferred_element_type=jnp.float32)
        m_sc[...] = m_new

    @pl.when(ki == pl.num_programs(2) - 1)
    def _():
        H, TQ, hd = acc_sc.shape
        a = acc_sc[...] * pl.reciprocal(l_sc[...], approx=True)   # (H, TQ, hd) f32
        # merge_heads: single transpose + lane-dense reshape (no per-head concat)
        a = jnp.swapaxes(a, 0, 1).reshape(TQ, H * hd)             # (TQ, D)

        x = x_ref[0].astype(jnp.float32)
        h = x + a                                                 # residual 1 (no c_proj in this module)

        h2 = _layernorm(h, g2_ref[0], b2_ref[0])
        mfc = jnp.dot(h2.astype(jnp.bfloat16), wfc_ref[...],
                      preferred_element_type=jnp.float32) + bfc_ref[0]   # (TQ, 4D)
        mfc = _gelu_tanh(mfc)
        mpj = jnp.dot(mfc.astype(jnp.bfloat16), wpj_ref[...],
                      preferred_element_type=jnp.float32) + bpj_ref[0]   # (TQ, D)
        # mlp dropout: identity (eval semantics)
        y = h + mpj                                               # residual 2
        if apply_final_ln:                                        # fused ln_f epilogue
            y = _layernorm(y, gf_ref[0], bf_ref[0])
        out_ref[0] = y.astype(out_ref.dtype)


def run_attn_mlp(x, qh, kh, vh, p, lnf_g, lnf_b, *, n_head, apply_final_ln,
                 tile, budget):
    B, S, D = x.shape
    H = n_head
    hd = D // H
    nq = S // tile
    out_dtype = jnp.float32 if apply_final_ln else jnp.bfloat16

    # fully-masked tiles reuse the previous block index -> no re-DMA for them
    def kv_map(bb, qi, ki):
        return (bb, 0, jnp.minimum(ki, qi), 0)

    kernel = functools.partial(attn_mlp_kernel, apply_final_ln=apply_final_ln)
    return pl.pallas_call(
        kernel,
        out_shape=jax.ShapeDtypeStruct((B, S, D), out_dtype),
        grid=(B, nq, nq),
        in_specs=[
            pl.BlockSpec((1, tile, D), lambda bb, qi, ki: (bb, qi, 0)),        # x residual
            pl.BlockSpec((1, H, tile, hd), lambda bb, qi, ki: (bb, 0, qi, 0)), # q tile
            pl.BlockSpec((1, H, tile, hd), kv_map),                            # k tile
            pl.BlockSpec((1, H, tile, hd), kv_map),                            # v tile
            pl.BlockSpec((1, D), lambda bb, qi, ki: (0, 0)),                   # ln_2 gamma
            pl.BlockSpec((1, D), lambda bb, qi, ki: (0, 0)),                   # ln_2 beta
            pl.BlockSpec((D, 4 * D), lambda bb, qi, ki: (0, 0)),               # W_fc (bf16)
            pl.BlockSpec((1, 4 * D), lambda bb, qi, ki: (0, 0)),               # b_fc
            pl.BlockSpec((4 * D, D), lambda bb, qi, ki: (0, 0)),               # W_proj (bf16)
            pl.BlockSpec((1, D), lambda bb, qi, ki: (0, 0)),                   # b_proj
            pl.BlockSpec((1, D), lambda bb, qi, ki: (0, 0)),                   # ln_f gamma
            pl.BlockSpec((1, D), lambda bb, qi, ki: (0, 0)),                   # ln_f beta
        ],
        out_specs=pl.BlockSpec((1, tile, D), lambda bb, qi, ki: (bb, qi, 0)),
        scratch_shapes=[pltpu.VMEM((H, tile, 1), jnp.float32),   # m (running max)
                        pltpu.VMEM((H, tile, 1), jnp.float32),   # l (running denom)
                        pltpu.VMEM((H, tile, hd), jnp.float32)], # acc (running PV)
        compiler_params=pltpu.CompilerParams(
            dimension_semantics=("parallel", "parallel", "arbitrary"),
            vmem_limit_bytes=_vmem_limit(_attn_mlp_vmem_bytes(tile, D, H), budget)),
    )(x, qh, kh, vh, p["ln2_g"], p["ln2_b"], p["wfc"], p["bfc"],
      p["wproj"], p["bproj"], lnf_g, lnf_b)


# ------------------------------ one transformer layer ---------------------------

def run_block(h, p, *, n_head, lnf_g, lnf_b, apply_final_ln, tile, budget):
    q, k, v = run_ln_qkv(h, p["ln1_g"], p["ln1_b"], p["wqkv"], p["bqkv"],
                         n_head=n_head, tile=tile, budget=budget)
    return run_attn_mlp(h, q, k, v, p, lnf_g, lnf_b, n_head=n_head,
                        apply_final_ln=apply_final_ln, tile=tile, budget=budget)


# -------------------- standalone final layernorm (0-layer fallback) -------------

def layernorm_kernel(x_ref, g_ref, b_ref, o_ref):
    o_ref[0] = _layernorm(x_ref[0], g_ref[0], b_ref[0])


def run_final_ln(h, g, b):
    B, S, D = h.shape
    return pl.pallas_call(
        layernorm_kernel,
        out_shape=jax.ShapeDtypeStruct((B, S, D), jnp.float32),
        grid=(B,),
        in_specs=[pl.BlockSpec((1, S, D), lambda i: (i, 0, 0)),
                  pl.BlockSpec((1, D), lambda i: (0, 0)),
                  pl.BlockSpec((1, D), lambda i: (0, 0))],
        out_specs=pl.BlockSpec((1, S, D), lambda i: (i, 0, 0)),
        compiler_params=pltpu.CompilerParams(dimension_semantics=("parallel",)),
    )(h, g, b)


# ------------------------------ model wrapper ----------------------------------

def init_params(key, *, embed_dim, num_heads, num_layers, num_positions, vocab_size):
    D = embed_dim
    ks = jax.random.split(key, 2 + 3 * num_layers)
    params = {
        "tok_emb": jax.random.normal(ks[0], (vocab_size, D), jnp.float32),
        "pos_emb": jax.random.normal(ks[1], (num_positions, D), jnp.float32),
        "ln_f_g": jnp.ones((1, D), jnp.float32),
        "ln_f_b": jnp.zeros((1, D), jnp.float32),
        "blocks": [],
    }
    for l in range(num_layers):
        k0, k1, k2 = ks[2 + 3 * l], ks[3 + 3 * l], ks[4 + 3 * l]
        params["blocks"].append({
            "ln1_g": jnp.ones((1, D), jnp.float32),
            "ln1_b": jnp.zeros((1, D), jnp.float32),
            # weights stored bf16 (MXU-native input, half the HBM/VMEM footprint)
            "wqkv": (0.02 * jax.random.normal(k0, (D, 3 * D), jnp.float32)).astype(jnp.bfloat16),
            "bqkv": jnp.zeros((1, 3 * D), jnp.float32),
            "ln2_g": jnp.ones((1, D), jnp.float32),
            "ln2_b": jnp.zeros((1, D), jnp.float32),
            "wfc": (0.02 * jax.random.normal(k1, (D, 4 * D), jnp.float32)).astype(jnp.bfloat16),
            "bfc": jnp.zeros((1, 4 * D), jnp.float32),
            "wproj": (0.02 * jax.random.normal(k2, (4 * D, D), jnp.float32)).astype(jnp.bfloat16),
            "bproj": jnp.zeros((1, D), jnp.float32),
        })
    return params


def gpt2_forward(token_ids, params, *, num_heads):
    # glue: embedding gathers + positional add (dropout = identity, eval mode)
    B, S = token_ids.shape
    h = jnp.take(params["tok_emb"], token_ids, axis=0)           # (B, S, D) f32
    h = h + params["pos_emb"][:S][None, :, :]

    blocks = params["blocks"]
    if not blocks:
        return run_final_ln(h, params["ln_f_g"], params["ln_f_b"])

    D = h.shape[-1]
    budget = _vmem_budget()
    tile = _pick_tile(S, D, num_heads, budget)
    h = h.astype(jnp.bfloat16)                                   # bf16 residual stream
    n = len(blocks)
    for li, blk in enumerate(blocks):
        h = run_block(h, blk, n_head=num_heads,
                      lnf_g=params["ln_f_g"], lnf_b=params["ln_f_b"],
                      apply_final_ln=(li == n - 1), tile=tile, budget=budget)
    return h                                                      # f32 (ln_f fused into last layer)


# ----------------------------------- main --------------------------------------

if __name__ == "__main__":
    # small, forward-consistent shapes
    B, S = 2, 8
    embed_dim, num_heads, num_layers = 32, 4, 2
    num_positions, vocab_size = 16, 100

    key = jax.random.PRNGKey(0)
    pkey, xkey = jax.random.split(key)
    params = init_params(pkey, embed_dim=embed_dim, num_heads=num_heads,
                         num_layers=num_layers, num_positions=num_positions,
                         vocab_size=vocab_size)
    token_ids = jax.random.randint(xkey, (B, S), 0, vocab_size, dtype=jnp.int32)

    fwd = jax.jit(functools.partial(gpt2_forward, num_heads=num_heads))
    out = fwd(token_ids, params)
    out = jax.block_until_ready(out)
    assert out.shape == (B, S, embed_dim)
    assert bool(jnp.all(jnp.isfinite(out)))
    print("KERNEL_OK")
</pallas_src>

<mosaic_0001>
module attributes {stable_mosaic.version = 11 : i64} {
  func.func @ln_qkv_kernel(%arg0: i32, %arg1: i32, %arg2: memref<1x8x32xbf16, #tpu.memory_space<vmem>>, %arg3: memref<1x32xf32, #tpu.memory_space<vmem>>, %arg4: memref<1x32xf32, #tpu.memory_space<vmem>>, %arg5: memref<32x96xbf16, #tpu.memory_space<vmem>>, %arg6: memref<1x96xf32, #tpu.memory_space<vmem>>, %arg7: memref<1x4x8x8xbf16, #tpu.memory_space<vmem>>, %arg8: memref<1x4x8x8xbf16, #tpu.memory_space<vmem>>, %arg9: memref<1x4x8x8xbf16, #tpu.memory_space<vmem>>) attributes {dimension_semantics = [#tpu.dimension_semantics<parallel>, #tpu.dimension_semantics<parallel>], iteration_bounds = array<i64: 2, 1>, scalar_prefetch = 0 : i64, scratch_operands = 0 : i64, tpu.core_type = #tpu.core_type<tc>, window_params = [{transform_indices = @transform_0, window_bounds = array<i64: 1, 8, 32>}, {pipeline_mode = #tpu.pipeline_mode<synchronous>, transform_indices = @transform_1, window_bounds = array<i64: 1, 32>}, {pipeline_mode = #tpu.pipeline_mode<synchronous>, transform_indices = @transform_2, window_bounds = array<i64: 1, 32>}, {pipeline_mode = #tpu.pipeline_mode<synchronous>, transform_indices = @transform_3, window_bounds = array<i64: 32, 96>}, {pipeline_mode = #tpu.pipeline_mode<synchronous>, transform_indices = @transform_4, window_bounds = array<i64: 1, 96>}, {transform_indices = @transform_5, window_bounds = array<i64: 1, 4, 8, 8>}, {transform_indices = @transform_6, window_bounds = array<i64: 1, 4, 8, 8>}, {transform_indices = @transform_7, window_bounds = array<i64: 1, 4, 8, 8>}]} {
    %c0 = arith.constant 0 : index
    %c0_0 = arith.constant 0 : index
    %c0_1 = arith.constant 0 : index
    %0 = vector.load %arg2[%c0, %c0_0, %c0_1] : memref<1x8x32xbf16, #tpu.memory_space<vmem>>, vector<1x8x32xbf16>
    %1 = vector.shape_cast %0 : vector<1x8x32xbf16> to vector<8x32xbf16>
    %2 = arith.extf %1 : vector<8x32xbf16> to vector<8x32xf32>
    %c0_2 = arith.constant 0 : index
    %c0_3 = arith.constant 0 : index
    %3 = vector.load %arg3[%c0_2, %c0_3] : memref<1x32xf32, #tpu.memory_space<vmem>>, vector<1x32xf32>
    %4 = vector.shape_cast %3 : vector<1x32xf32> to vector<32xf32>
    %c0_4 = arith.constant 0 : index
    %c0_5 = arith.constant 0 : index
    %5 = vector.load %arg4[%c0_4, %c0_5] : memref<1x32xf32, #tpu.memory_space<vmem>>, vector<1x32xf32>
    %6 = vector.shape_cast %5 : vector<1x32xf32> to vector<32xf32>
    %cst = arith.constant dense<0.000000e+00> : vector<8xf32>
    %7 = vector.multi_reduction <add>, %2, %cst [1] : vector<8x32xf32> to vector<8xf32>
    %8 = vector.shape_cast %7 : vector<8xf32> to vector<8x1xf32>
    %cst_6 = arith.constant 3.200000e+01 : f32
    %9 = vector.broadcast %cst_6 : f32 to vector<8x1xf32>
    %10 = arith.divf %8, %9 : vector<8x1xf32>
    %11 = vector.broadcast %10 : vector<8x1xf32> to vector<8x32xf32>
    %12 = arith.subf %2, %11 : vector<8x32xf32>
    %13 = arith.mulf %12, %12 : vector<8x32xf32>
    %cst_7 = arith.constant dense<0.000000e+00> : vector<8xf32>
    %14 = vector.multi_reduction <add>, %13, %cst_7 [1] : vector<8x32xf32> to vector<8xf32>
    %15 = vector.shape_cast %14 : vector<8xf32> to vector<8x1xf32>
    %cst_8 = arith.constant 3.200000e+01 : f32
    %16 = vector.broadcast %cst_8 : f32 to vector<8x1xf32>
    %17 = arith.divf %15, %16 : vector<8x1xf32>
    %18 = vector.broadcast %10 : vector<8x1xf32> to vector<8x32xf32>
    %19 = arith.subf %2, %18 : vector<8x32xf32>
    %cst_9 = arith.constant 9.99999974E-6 : f32
    %20 = vector.broadcast %cst_9 : f32 to vector<8x1xf32>
    %21 = arith.addf %17, %20 : vector<8x1xf32>
    %22 = math.rsqrt %21 : vector<8x1xf32>
    %23 = vector.broadcast %22 : vector<8x1xf32> to vector<8x32xf32>
    %24 = arith.mulf %19, %23 : vector<8x32xf32>
    %25 = vector.shape_cast %4 : vector<32xf32> to vector<1x32xf32>
    %26 = vector.broadcast %25 : vector<1x32xf32> to vector<8x32xf32>
    %27 = arith.mulf %24, %26 : vector<8x32xf32>
    %28 = vector.shape_cast %6 : vector<32xf32> to vector<1x32xf32>
    %29 = vector.broadcast %28 : vector<1x32xf32> to vector<8x32xf32>
    %30 = arith.addf %27, %29 : vector<8x32xf32>
    %31 = arith.truncf %30 : vector<8x32xf32> to vector<8x32xbf16>
    %c0_10 = arith.constant 0 : index
    %c0_11 = arith.constant 0 : index
    %32 = vector.load %arg5[%c0_10, %c0_11] : memref<32x96xbf16, #tpu.memory_space<vmem>>, vector<32x96xbf16>
    %cst_12 = arith.constant dense<0.000000e+00> : vector<8x96xf32>
    %33 = tpu.matmul %31, %32, %cst_12 {dimension_numbers = #tpu.dot_dimension_numbers<[1], [0], [0], [1], [0, 0, 1, 1], [], []>} : vector<8x32xbf16>, vector<32x96xbf16>, vector<8x96xf32> -> vector<8x96xf32>
    %c0_13 = arith.constant 0 : index
    %c0_14 = arith.constant 0 : index
    %34 = vector.load %arg6[%c0_13, %c0_14] : memref<1x96xf32, #tpu.memory_space<vmem>>, vector<1x96xf32>
    %35 = vector.shape_cast %34 : vector<1x96xf32> to vector<96xf32>
    %36 = vector.shape_cast %35 : vector<96xf32> to vector<1x96xf32>
    %37 = vector.broadcast %36 : vector<1x96xf32> to vector<8x96xf32>
    %38 = arith.addf %33, %37 : vector<8x96xf32>
    %39 = vector.extract_strided_slice %38 {offsets = [0, 0], sizes = [8, 32], strides = [1, 1]} : vector<8x96xf32> to vector<8x32xf32>
    %cst_15 = arith.constant 0.353553385 : f32
    %40 = vector.broadcast %cst_15 : f32 to vector<8x32xf32>
    %41 = arith.mulf %39, %40 : vector<8x32xf32>
    %42 = vector.shape_cast %41 : vector<8x32xf32> to vector<8x4x8xf32>
    %43 = tpu.transpose %42, [1, 0, 2] : vector<8x4x8xf32> -> vector<4x8x8xf32>
    %44 = arith.truncf %43 : vector<4x8x8xf32> to vector<4x8x8xbf16>
    %c0_16 = arith.constant 0 : index
    %c0_17 = arith.constant 0 : index
    %c0_18 = arith.constant 0 : index
    %c0_19 = arith.constant 0 : index
    %45 = vector.load %arg7[%c0_16, %c0_17, %c0_18, %c0_19] : memref<1x4x8x8xbf16, #tpu.memory_space<vmem>>, vector<1x4x8x8xbf16>
    %46 = vector.shape_cast %45 : vector<1x4x8x8xbf16> to vector<4x8x8xbf16>
    %47 = vector.shape_cast %44 : vector<4x8x8xbf16> to vector<1x4x8x8xbf16>
    tpu.vector_store %arg7[%c0_16, %c0_17, %c0_18, %c0_19], %47 {strides = array<i32>} : memref<1x4x8x8xbf16, #tpu.memory_space<vmem>>, vector<1x4x8x8xbf16>,
    %48 = vector.extract_strided_slice %38 {offsets = [0, 32], sizes = [8, 32], strides = [1, 1]} : vector<8x96xf32> to vector<8x32xf32>
    %49 = vector.shape_cast %48 : vector<8x32xf32> to vector<8x4x8xf32>
    %50 = tpu.transpose %49, [1, 0, 2] : vector<8x4x8xf32> -> vector<4x8x8xf32>
    %51 = arith.truncf %50 : vector<4x8x8xf32> to vector<4x8x8xbf16>
    %c0_20 = arith.constant 0 : index
    %c0_21 = arith.constant 0 : index
    %c0_22 = arith.constant 0 : index
    %c0_23 = arith.constant 0 : index
    %52 = vector.load %arg8[%c0_20, %c0_21, %c0_22, %c0_23] : memref<1x4x8x8xbf16, #tpu.memory_space<vmem>>, vector<1x4x8x8xbf16>
    %53 = vector.shape_cast %52 : vector<1x4x8x8xbf16> to vector<4x8x8xbf16>
    %54 = vector.shape_cast %51 : vector<4x8x8xbf16> to vector<1x4x8x8xbf16>
    tpu.vector_store %arg8[%c0_20, %c0_21, %c0_22, %c0_23], %54 {strides = array<i32>} : memref<1x4x8x8xbf16, #tpu.memory_space<vmem>>, vector<1x4x8x8xbf16>,
    %55 = vector.extract_strided_slice %38 {offsets = [0, 64], sizes = [8, 32], strides = [1, 1]} : vector<8x96xf32> to vector<8x32xf32>
    %56 = vector.shape_cast %55 : vector<8x32xf32> to vector<8x4x8xf32>
    %57 = tpu.transpose %56, [1, 0, 2] : vector<8x4x8xf32> -> vector<4x8x8xf32>
    %58 = arith.truncf %57 : vector<4x8x8xf32> to vector<4x8x8xbf16>
    %c0_24 = arith.constant 0 : index
    %c0_25 = arith.constant 0 : index
    %c0_26 = arith.constant 0 : index
    %c0_27 = arith.constant 0 : index
    %59 = vector.load %arg9[%c0_24, %c0_25, %c0_26, %c0_27] : memref<1x4x8x8xbf16, #tpu.memory_space<vmem>>, vector<1x4x8x8xbf16>
    %60 = vector.shape_cast %59 : vector<1x4x8x8xbf16> to vector<4x8x8xbf16>
    %61 = vector.shape_cast %58 : vector<4x8x8xbf16> to vector<1x4x8x8xbf16>
    tpu.vector_store %arg9[%c0_24, %c0_25, %c0_26, %c0_27], %61 {strides = array<i32>} : memref<1x4x8x8xbf16, #tpu.memory_space<vmem>>, vector<1x4x8x8xbf16>,
    return
  }
  func.func @transform_0(%arg0: i32, %arg1: i32) -> (i32, i32, i32) {
    %c0_i32 = arith.constant 0 : i32
    %c0_i32_0 = arith.constant 0 : i32
    return %arg0, %arg1, %c0_i32 : i32, i32, i32
  }
  func.func @transform_1(%arg0: i32, %arg1: i32) -> (i32, i32) {
    %c0_i32 = arith.constant 0 : i32
    %c0_i32_0 = arith.constant 0 : i32
    %c0_i32_1 = arith.constant 0 : i32
    return %c0_i32, %c0_i32_0 : i32, i32
  }
  func.func @transform_2(%arg0: i32, %arg1: i32) -> (i32, i32) {
    %c0_i32 = arith.constant 0 : i32
    %c0_i32_0 = arith.constant 0 : i32
    %c0_i32_1 = arith.constant 0 : i32
    return %c0_i32, %c0_i32_0 : i32, i32
  }
  func.func @transform_3(%arg0: i32, %arg1: i32) -> (i32, i32) {
    %c0_i32 = arith.constant 0 : i32
    %c0_i32_0 = arith.constant 0 : i32
    %c0_i32_1 = arith.constant 0 : i32
    return %c0_i32, %c0_i32_0 : i32, i32
  }
  func.func @transform_4(%arg0: i32, %arg1: i32) -> (i32, i32) {
    %c0_i32 = arith.constant 0 : i32
    %c0_i32_0 = arith.constant 0 : i32
    %c0_i32_1 = arith.constant 0 : i32
    return %c0_i32, %c0_i32_0 : i32, i32
  }
  func.func @transform_5(%arg0: i32, %arg1: i32) -> (i32, i32, i32, i32) {
    %c0_i32 = arith.constant 0 : i32
    %c0_i32_0 = arith.constant 0 : i32
    %c0_i32_1 = arith.constant 0 : i32
    return %arg0, %c0_i32, %arg1, %c0_i32_0 : i32, i32, i32, i32
  }
  func.func @transform_6(%arg0: i32, %arg1: i32) -> (i32, i32, i32, i32) {
    %c0_i32 = arith.constant 0 : i32
    %c0_i32_0 = arith.constant 0 : i32
    %c0_i32_1 = arith.constant 0 : i32
    return %arg0, %c0_i32, %arg1, %c0_i32_0 : i32, i32, i32, i32
  }
  func.func @transform_7(%arg0: i32, %arg1: i32) -> (i32, i32, i32, i32) {
    %c0_i32 = arith.constant 0 : i32
    %c0_i32_0 = arith.constant 0 : i32
    %c0_i32_1 = arith.constant 0 : i32
    return %arg0, %c0_i32, %arg1, %c0_i32_0 : i32, i32, i32, i32
  }
}

module attributes {stable_mosaic.version = 11 : i64} {
  func.func @attn_mlp_kernel(%arg0: i32, %arg1: i32, %arg2: i32, %arg3: memref<1x8x32xbf16, #tpu.memory_space<vmem>>, %arg4: memref<1x4x8x8xbf16, #tpu.memory_space<vmem>>, %arg5: memref<1x4x8x8xbf16, #tpu.memory_space<vmem>>, %arg6: memref<1x4x8x8xbf16, #tpu.memory_space<vmem>>, %arg7: memref<1x32xf32, #tpu.memory_space<vmem>>, %arg8: memref<1x32xf32, #tpu.memory_space<vmem>>, %arg9: memref<32x128xbf16, #tpu.memory_space<vmem>>, %arg10: memref<1x128xf32, #tpu.memory_space<vmem>>, %arg11: memref<128x32xbf16, #tpu.memory_space<vmem>>, %arg12: memref<1x32xf32, #tpu.memory_space<vmem>>, %arg13: memref<1x32xf32, #tpu.memory_space<vmem>>, %arg14: memref<1x32xf32, #tpu.memory_space<vmem>>, %arg15: memref<1x8x32xbf16, #tpu.memory_space<vmem>>, %arg16: memref<4x8x1xf32, #tpu.memory_space<vmem>>, %arg17: memref<4x8x1xf32, #tpu.memory_space<vmem>>, %arg18: memref<4x8x8xf32, #tpu.memory_space<vmem>>) attributes {dimension_semantics = [#tpu.dimension_semantics<parallel>, #tpu.dimension_semantics<parallel>, #tpu.dimension_semantics<arbitrary>], iteration_bounds = array<i64: 2, 1, 1>, scalar_prefetch = 0 : i64, scratch_operands = 3 : i64, tpu.core_type = #tpu.core_type<tc>, window_params = [{transform_indices = @transform_0, window_bounds = array<i64: 1, 8, 32>}, {transform_indices = @transform_1, window_bounds = array<i64: 1, 4, 8, 8>}, {transform_indices = @transform_2, window_bounds = array<i64: 1, 4, 8, 8>}, {transform_indices = @transform_3, window_bounds = array<i64: 1, 4, 8, 8>}, {pipeline_mode = #tpu.pipeline_mode<synchronous>, transform_indices = @transform_4, window_bounds = array<i64: 1, 32>}, {pipeline_mode = #tpu.pipeline_mode<synchronous>, transform_indices = @transform_5, window_bounds = array<i64: 1, 32>}, {pipeline_mode = #tpu.pipeline_mode<synchronous>, transform_indices = @transform_6, window_bounds = array<i64: 32, 128>}, {pipeline_mode = #tpu.pipeline_mode<synchronous>, transform_indices = @transform_7, window_bounds = array<i64: 1, 128>}, {pipeline_mode = #tpu.pipeline_mode<synchronous>, transform_indices = @transform_8, window_bounds = array<i64: 128, 32>}, {pipeline_mode = #tpu.pipeline_mode<synchronous>, transform_indices = @transform_9, window_bounds = array<i64: 1, 32>}, {pipeline_mode = #tpu.pipeline_mode<synchronous>, transform_indices = @transform_10, window_bounds = array<i64: 1, 32>}, {pipeline_mode = #tpu.pipeline_mode<synchronous>, transform_indices = @transform_11, window_bounds = array<i64: 1, 32>}, {transform_indices = @transform_12, window_bounds = array<i64: 1, 8, 32>}]} {
    %c0_i32 = arith.constant 0 : i32
    %0 = arith.cmpi eq, %arg2, %c0_i32 : i32
    %1 = arith.extui %0 : i1 to i32
    %c0_i32_0 = arith.constant 0 : i32
    %2 = arith.cmpi ne, %1, %c0_i32_0 : i32
    scf.if %2 {
      %cst = arith.constant 0xFF800000 : f32
      %9 = vector.broadcast %cst : f32 to vector<4x8x1xf32>
      %c0 = arith.constant 0 : index
      %c0_4 = arith.constant 0 : index
      %c0_5 = arith.constant 0 : index
      %10 = vector.load %arg16[%c0, %c0_4, %c0_5] : memref<4x8x1xf32, #tpu.memory_space<vmem>>, vector<4x8x1xf32>
      tpu.vector_store %arg16[%c0, %c0_4, %c0_5], %9 {strides = array<i32>} : memref<4x8x1xf32, #tpu.memory_space<vmem>>, vector<4x8x1xf32>,
      %cst_6 = arith.constant 0.000000e+00 : f32
      %11 = vector.broadcast %cst_6 : f32 to vector<4x8x1xf32>
      %c0_7 = arith.constant 0 : index
      %c0_8 = arith.constant 0 : index
      %c0_9 = arith.constant 0 : index
      %12 = vector.load %arg17[%c0_7, %c0_8, %c0_9] : memref<4x8x1xf32, #tpu.memory_space<vmem>>, vector<4x8x1xf32>
      tpu.vector_store %arg17[%c0_7, %c0_8, %c0_9], %11 {strides = array<i32>} : memref<4x8x1xf32, #tpu.memory_space<vmem>>, vector<4x8x1xf32>,
      %cst_10 = arith.constant 0.000000e+00 : f32
      %13 = vector.broadcast %cst_10 : f32 to vector<4x8x8xf32>
      %c0_11 = arith.constant 0 : index
      %c0_12 = arith.constant 0 : index
      %c0_13 = arith.constant 0 : index
      %14 = vector.load %arg18[%c0_11, %c0_12, %c0_13] : memref<4x8x8xf32, #tpu.memory_space<vmem>>, vector<4x8x8xf32>
      tpu.vector_store %arg18[%c0_11, %c0_12, %c0_13], %13 {strides = array<i32>} : memref<4x8x8xf32, #tpu.memory_space<vmem>>, vector<4x8x8xf32>,
    } else {
    }
    %3 = arith.cmpi sle, %arg2, %arg1 : i32
    %4 = arith.extui %3 : i1 to i32
    %c0_i32_1 = arith.constant 0 : i32
    %5 = arith.cmpi ne, %4, %c0_i32_1 : i32
    scf.if %5 {
      %c0 = arith.constant 0 : index
      %c0_4 = arith.constant 0 : index
      %c0_5 = arith.constant 0 : index
      %c0_6 = arith.constant 0 : index
      %9 = vector.load %arg4[%c0, %c0_4, %c0_5, %c0_6] : memref<1x4x8x8xbf16, #tpu.memory_space<vmem>>, vector<1x4x8x8xbf16>
      %10 = vector.shape_cast %9 : vector<1x4x8x8xbf16> to vector<4x8x8xbf16>
      %c0_7 = arith.constant 0 : index
      %c0_8 = arith.constant 0 : index
      %c0_9 = arith.constant 0 : index
      %c0_10 = arith.constant 0 : index
      %11 = vector.load %arg5[%c0_7, %c0_8, %c0_9, %c0_10] : memref<1x4x8x8xbf16, #tpu.memory_space<vmem>>, vector<1x4x8x8xbf16>
      %12 = vector.shape_cast %11 : vector<1x4x8x8xbf16> to vector<4x8x8xbf16>
      %c0_11 = arith.constant 0 : index
      %c0_12 = arith.constant 0 : index
      %c0_13 = arith.constant 0 : index
      %c0_14 = arith.constant 0 : index
      %13 = vector.load %arg6[%c0_11, %c0_12, %c0_13, %c0_14] : memref<1x4x8x8xbf16, #tpu.memory_space<vmem>>, vector<1x4x8x8xbf16>
      %14 = vector.shape_cast %13 : vector<1x4x8x8xbf16> to vector<4x8x8xbf16>
      "tpu.trace_start"() <{level = 10 : i32, message = "hqd,hkd->hqk"}> : () -> ()
      %cst = arith.constant dense<0.000000e+00> : vector<4x8x8xf32>
      %15 = tpu.matmul %10, %12, %cst {dimension_numbers = #tpu.dot_dimension_numbers<[2], [2], [1], [1], [0, 0, 0, 1, 1, 1], [0], [0]>} : vector<4x8x8xbf16>, vector<4x8x8xbf16>, vector<4x8x8xf32> -> vector<4x8x8xf32>
      "tpu.trace_stop"() : () -> ()
      %c8_i32 = arith.constant 8 : i32
      %16 = arith.muli %arg1, %c8_i32 : i32
      %17 = tpu.iota {dimensions = array<i32: 0>} : vector<8x8xi32>
      %18 = vector.broadcast %16 : i32 to vector<8x8xi32>
      %19 = arith.addi %18, %17 : vector<8x8xi32>
      %c8_i32_15 = arith.constant 8 : i32
      %20 = arith.muli %arg2, %c8_i32_15 : i32
      %21 = tpu.iota {dimensions = array<i32: 1>} : vector<8x8xi32>
      %22 = vector.broadcast %20 : i32 to vector<8x8xi32>
      %23 = arith.addi %22, %21 : vector<8x8xi32>
      %24 = arith.cmpi sle, %23, %19 : vector<8x8xi32>
      %25 = vector.shape_cast %24 : vector<8x8xi1> to vector<1x8x8xi1>
      %cst_16 = arith.constant -1.000000e+04 : f32
      %26 = vector.shape_cast %25 : vector<1x8x8xi1> to vector<1x8x8xi1>
      %27 = vector.broadcast %26 : vector<1x8x8xi1> to vector<4x8x8xi1>
      %28 = vector.broadcast %cst_16 : f32 to vector<4x8x8xf32>
      %29 = arith.select %27, %15, %28 : vector<4x8x8xi1>, vector<4x8x8xf32>
      %c0_17 = arith.constant 0 : index
      %c0_18 = arith.constant 0 : index
      %c0_19 = arith.constant 0 : index
      %30 = vector.load %arg16[%c0_17, %c0_18, %c0_19] : memref<4x8x1xf32, #tpu.memory_space<vmem>>, vector<4x8x1xf32>
      %cst_20 = arith.constant dense<0xFF800000> : vector<4x8xf32>
      %31 = vector.multi_reduction <maximumf>, %29, %cst_20 [2] : vector<4x8x8xf32> to vector<4x8xf32>
      %32 = vector.shape_cast %31 : vector<4x8xf32> to vector<4x8x1xf32>
      %33 = arith.maximumf %30, %32 : vector<4x8x1xf32>
      %34 = arith.subf %30, %33 : vector<4x8x1xf32>
      %35 = math.exp %34 : vector<4x8x1xf32>
      %36 = vector.broadcast %33 : vector<4x8x1xf32> to vector<4x8x8xf32>
      %37 = arith.subf %29, %36 : vector<4x8x8xf32>
      %38 = math.exp %37 : vector<4x8x8xf32>
      %c0_21 = arith.constant 0 : index
      %c0_22 = arith.constant 0 : index
      %c0_23 = arith.constant 0 : index
      %39 = vector.load %arg17[%c0_21, %c0_22, %c0_23] : memref<4x8x1xf32, #tpu.memory_space<vmem>>, vector<4x8x1xf32>
      %40 = arith.mulf %35, %39 : vector<4x8x1xf32>
      %cst_24 = arith.constant dense<0.000000e+00> : vector<4x8xf32>
      %41 = vector.multi_reduction <add>, %38, %cst_24 [2] : vector<4x8x8xf32> to vector<4x8xf32>
      %42 = vector.shape_cast %41 : vector<4x8xf32> to vector<4x8x1xf32>
      %43 = arith.addf %40, %42 : vector<4x8x1xf32>
      %c0_25 = arith.constant 0 : index
      %c0_26 = arith.constant 0 : index
      %c0_27 = arith.constant 0 : index
      %44 = vector.load %arg17[%c0_25, %c0_26, %c0_27] : memref<4x8x1xf32, #tpu.memory_space<vmem>>, vector<4x8x1xf32>
      tpu.vector_store %arg17[%c0_25, %c0_26, %c0_27], %43 {strides = array<i32>} : memref<4x8x1xf32, #tpu.memory_space<vmem>>, vector<4x8x1xf32>,
      %c0_28 = arith.constant 0 : index
      %c0_29 = arith.constant 0 : index
      %c0_30 = arith.constant 0 : index
      %45 = vector.load %arg18[%c0_28, %c0_29, %c0_30] : memref<4x8x8xf32, #tpu.memory_space<vmem>>, vector<4x8x8xf32>
      %46 = vector.broadcast %35 : vector<4x8x1xf32> to vector<4x8x8xf32>
      %47 = arith.mulf %46, %45 : vector<4x8x8xf32>
      %48 = arith.truncf %38 : vector<4x8x8xf32> to vector<4x8x8xbf16>
      "tpu.trace_start"() <{level = 10 : i32, message = "hqk,hkd->hqd"}> : () -> ()
      %cst_31 = arith.constant dense<0.000000e+00> : vector<4x8x8xf32>
      %49 = tpu.matmul %48, %14, %cst_31 {dimension_numbers = #tpu.dot_dimension_numbers<[2], [1], [1], [2], [0, 0, 0, 1, 1, 2], [0], [0]>} : vector<4x8x8xbf16>, vector<4x8x8xbf16>, vector<4x8x8xf32> -> vector<4x8x8xf32>
      "tpu.trace_stop"() : () -> ()
      %50 = arith.addf %47, %49 : vector<4x8x8xf32>
      %c0_32 = arith.constant 0 : index
      %c0_33 = arith.constant 0 : index
      %c0_34 = arith.constant 0 : index
      %51 = vector.load %arg18[%c0_32, %c0_33, %c0_34] : memref<4x8x8xf32, #tpu.memory_space<vmem>>, vector<4x8x8xf32>
      tpu.vector_store %arg18[%c0_32, %c0_33, %c0_34], %50 {strides = array<i32>} : memref<4x8x8xf32, #tpu.memory_space<vmem>>, vector<4x8x8xf32>,
      %c0_35 = arith.constant 0 : index
      %c0_36 = arith.constant 0 : index
      %c0_37 = arith.constant 0 : index
      %52 = vector.load %arg16[%c0_35, %c0_36, %c0_37] : memref<4x8x1xf32, #tpu.memory_space<vmem>>, vector<4x8x1xf32>
      tpu.vector_store %arg16[%c0_35, %c0_36, %c0_37], %33 {strides = array<i32>} : memref<4x8x1xf32, #tpu.memory_space<vmem>>, vector<4x8x1xf32>,
    } else {
    }
    %c0_i32_2 = arith.constant 0 : i32
    %6 = arith.cmpi eq, %arg2, %c0_i32_2 : i32
    %7 = arith.extui %6 : i1 to i32
    %c0_i32_3 = arith.constant 0 : i32
    %8 = arith.cmpi ne, %7, %c0_i32_3 : i32
    scf.if %8 {
      %c0 = arith.constant 0 : index
      %c0_4 = arith.constant 0 : index
      %c0_5 = arith.constant 0 : index
      %9 = vector.load %arg18[%c0, %c0_4, %c0_5] : memref<4x8x8xf32, #tpu.memory_space<vmem>>, vector<4x8x8xf32>
      %c0_6 = arith.constant 0 : index
      %c0_7 = arith.constant 0 : index
      %c0_8 = arith.constant 0 : index
      %10 = vector.load %arg17[%c0_6, %c0_7, %c0_8] : memref<4x8x1xf32, #tpu.memory_space<vmem>>, vector<4x8x1xf32>
      %11 = tpu.reciprocal %10 {approx = true} : vector<4x8x1xf32> -> vector<4x8x1xf32>
      %12 = vector.broadcast %11 : vector<4x8x1xf32> to vector<4x8x8xf32>
      %13 = arith.mulf %9, %12 : vector<4x8x8xf32>
      %14 = tpu.transpose %13, [1, 0, 2] : vector<4x8x8xf32> -> vector<8x4x8xf32>
      %15 = vector.shape_cast %14 : vector<8x4x8xf32> to vector<8x32xf32>
      %c0_9 = arith.constant 0 : index
      %c0_10 = arith.constant 0 : index
      %c0_11 = arith.constant 0 : index
      %16 = vector.load %arg3[%c0_9, %c0_10, %c0_11] : memref<1x8x32xbf16, #tpu.memory_space<vmem>>, vector<1x8x32xbf16>
      %17 = vector.shape_cast %16 : vector<1x8x32xbf16> to vector<8x32xbf16>
      %18 = arith.extf %17 : vector<8x32xbf16> to vector<8x32xf32>
      %19 = arith.addf %18, %15 : vector<8x32xf32>
      %c0_12 = arith.constant 0 : index
      %c0_13 = arith.constant 0 : index
      %20 = vector.load %arg7[%c0_12, %c0_13] : memref<1x32xf32, #tpu.memory_space<vmem>>, vector<1x32xf32>
      %21 = vector.shape_cast %20 : vector<1x32xf32> to vector<32xf32>
      %c0_14 = arith.constant 0 : index
      %c0_15 = arith.constant 0 : index
      %22 = vector.load %arg8[%c0_14, %c0_15] : memref<1x32xf32, #tpu.memory_space<vmem>>, vector<1x32xf32>
      %23 = vector.shape_cast %22 : vector<1x32xf32> to vector<32xf32>
      %cst = arith.constant dense<0.000000e+00> : vector<8xf32>
      %24 = vector.multi_reduction <add>, %19, %cst [1] : vector<8x32xf32> to vector<8xf32>
      %25 = vector.shape_cast %24 : vector<8xf32> to vector<8x1xf32>
      %cst_16 = arith.constant 3.200000e+01 : f32
      %26 = vector.broadcast %cst_16 : f32 to vector<8x1xf32>
      %27 = arith.divf %25, %26 : vector<8x1xf32>
      %28 = vector.broadcast %27 : vector<8x1xf32> to vector<8x32xf32>
      %29 = arith.subf %19, %28 : vector<8x32xf32>
      %30 = arith.mulf %29, %29 : vector<8x32xf32>
      %cst_17 = arith.constant dense<0.000000e+00> : vector<8xf32>
      %31 = vector.multi_reduction <add>, %30, %cst_17 [1] : vector<8x32xf32> to vector<8xf32>
      %32 = vector.shape_cast %31 : vector<8xf32> to vector<8x1xf32>
      %cst_18 = arith.constant 3.200000e+01 : f32
      %33 = vector.broadcast %cst_18 : f32 to vector<8x1xf32>
      %34 = arith.divf %32, %33 : vector<8x1xf32>
      %35 = vector.broadcast %27 : vector<8x1xf32> to vector<8x32xf32>
      %36 = arith.subf %19, %35 : vector<8x32xf32>
      %cst_19 = arith.constant 9.99999974E-6 : f32
      %37 = vector.broadcast %cst_19 : f32 to vector<8x1xf32>
      %38 = arith.addf %34, %37 : vector<8x1xf32>
      %39 = math.rsqrt %38 : vector<8x1xf32>
      %40 = vector.broadcast %39 : vector<8x1xf32> to vector<8x32xf32>
      %41 = arith.mulf %36, %40 : vector<8x32xf32>
      %42 = vector.shape_cast %21 : vector<32xf32> to vector<1x32xf32>
      %43 = vector.broadcast %42 : vector<1x32xf32> to vector<8x32xf32>
      %44 = arith.mulf %41, %43 : vector<8x32xf32>
      %45 = vector.shape_cast %23 : vector<32xf32> to vector<1x32xf32>
      %46 = vector.broadcast %45 : vector<1x32xf32> to vector<8x32xf32>
      %47 = arith.addf %44, %46 : vector<8x32xf32>
      %48 = arith.truncf %47 : vector<8x32xf32> to vector<8x32xbf16>
      %c0_20 = arith.constant 0 : index
      %c0_21 = arith.constant 0 : index
      %49 = vector.load %arg9[%c0_20, %c0_21] : memref<32x128xbf16, #tpu.memory_space<vmem>>, vector<32x128xbf16>
      %cst_22 = arith.constant dense<0.000000e+00> : vector<8x128xf32>
      %50 = tpu.matmul %48, %49, %cst_22 {dimension_numbers = #tpu.dot_dimension_numbers<[1], [0], [0], [1], [0, 0, 1, 1], [], []>} : vector<8x32xbf16>, vector<32x128xbf16>, vector<8x128xf32> -> vector<8x128xf32>
      %c0_23 = arith.constant 0 : index
      %c0_24 = arith.constant 0 : index
      %51 = vector.load %arg10[%c0_23, %c0_24] : memref<1x128xf32, #tpu.memory_space<vmem>>, vector<1x128xf32>
      %52 = vector.shape_cast %51 : vector<1x128xf32> to vector<128xf32>
      %53 = vector.shape_cast %52 : vector<128xf32> to vector<1x128xf32>
      %54 = vector.broadcast %53 : vector<1x128xf32> to vector<8x128xf32>
      %55 = arith.addf %50, %54 : vector<8x128xf32>
      %cst_25 = arith.constant 5.000000e-01 : f32
      %56 = vector.broadcast %cst_25 : f32 to vector<8x128xf32>
      %57 = arith.mulf %56, %55 : vector<8x128xf32>
      %cst_26 = arith.constant 4.471500e-02 : f32
      %58 = vector.broadcast %cst_26 : f32 to vector<8x128xf32>
      %59 = arith.mulf %58, %55 : vector<8x128xf32>
      %60 = arith.mulf %59, %55 : vector<8x128xf32>
      %61 = arith.mulf %60, %55 : vector<8x128xf32>
      %62 = arith.addf %55, %61 : vector<8x128xf32>
      %cst_27 = arith.constant 0.797884583 : f32
      %63 = vector.broadcast %cst_27 : f32 to vector<8x128xf32>
      %64 = arith.mulf %63, %62 : vector<8x128xf32>
      %65 = math.tanh %64 : vector<8x128xf32>
      %cst_28 = arith.constant 1.000000e+00 : f32
      %66 = vector.broadcast %cst_28 : f32 to vector<8x128xf32>
      %67 = arith.addf %66, %65 : vector<8x128xf32>
      %68 = arith.mulf %57, %67 : vector<8x128xf32>
      %69 = arith.truncf %68 : vector<8x128xf32> to vector<8x128xbf16>
      %c0_29 = arith.constant 0 : index
      %c0_30 = arith.constant 0 : index
      %70 = vector.load %arg11[%c0_29, %c0_30] : memref<128x32xbf16, #tpu.memory_space<vmem>>, vector<128x32xbf16>
      %cst_31 = arith.constant dense<0.000000e+00> : vector<8x32xf32>
      %71 = tpu.matmul %69, %70, %cst_31 {dimension_numbers = #tpu.dot_dimension_numbers<[1], [0], [0], [1], [0, 0, 1, 1], [], []>} : vector<8x128xbf16>, vector<128x32xbf16>, vector<8x32xf32> -> vector<8x32xf32>
      %c0_32 = arith.constant 0 : index
      %c0_33 = arith.constant 0 : index
      %72 = vector.load %arg12[%c0_32, %c0_33] : memref<1x32xf32, #tpu.memory_space<vmem>>, vector<1x32xf32>
      %73 = vector.shape_cast %72 : vector<1x32xf32> to vector<32xf32>
      %74 = vector.shape_cast %73 : vector<32xf32> to vector<1x32xf32>
      %75 = vector.broadcast %74 : vector<1x32xf32> to vector<8x32xf32>
      %76 = arith.addf %71, %75 : vector<8x32xf32>
      %77 = arith.addf %19, %76 : vector<8x32xf32>
      %78 = arith.truncf %77 : vector<8x32xf32> to vector<8x32xbf16>
      %c0_34 = arith.constant 0 : index
      %c0_35 = arith.constant 0 : index
      %c0_36 = arith.constant 0 : index
      %79 = vector.load %arg15[%c0_34, %c0_35, %c0_36] : memref<1x8x32xbf16, #tpu.memory_space<vmem>>, vector<1x8x32xbf16>
      %80 = vector.shape_cast %79 : vector<1x8x32xbf16> to vector<8x32xbf16>
      %81 = vector.shape_cast %78 : vector<8x32xbf16> to vector<1x8x32xbf16>
      tpu.vector_store %arg15[%c0_34, %c0_35, %c0_36], %81 {strides = array<i32>} : memref<1x8x32xbf16, #tpu.memory_space<vmem>>, vector<1x8x32xbf16>,
    } else {
    }
    return
  }
  func.func @transform_0(%arg0: i32, %arg1: i32, %arg2: i32) -> (i32, i32, i32) {
    %c0_i32 = arith.constant 0 : i32
    %c0_i32_0 = arith.constant 0 : i32
    return %arg0, %arg1, %c0_i32 : i32, i32, i32
  }
  func.func @transform_1(%arg0: i32, %arg1: i32, %arg2: i32) -> (i32, i32, i32, i32) {
    %c0_i32 = arith.constant 0 : i32
    %c0_i32_0 = arith.constant 0 : i32
    %c0_i32_1 = arith.constant 0 : i32
    return %arg0, %c0_i32, %arg1, %c0_i32_0 : i32, i32, i32, i32
  }
  func.func @transform_2(%arg0: i32, %arg1: i32, %arg2: i32) -> (i32, i32, i32, i32) {
    %0 = arith.minsi %arg2, %arg1 : i32
    %c0_i32 = arith.constant 0 : i32
    %c0_i32_0 = arith.constant 0 : i32
    %c0_i32_1 = arith.constant 0 : i32
    return %arg0, %c0_i32, %0, %c0_i32_0 : i32, i32, i32, i32
  }
  func.func @transform_3(%arg0: i32, %arg1: i32, %arg2: i32) -> (i32, i32, i32, i32) {
    %0 = arith.minsi %arg2, %arg1 : i32
    %c0_i32 = arith.constant 0 : i32
    %c0_i32_0 = arith.constant 0 : i32
    %c0_i32_1 = arith.constant 0 : i32
    return %arg0, %c0_i32, %0, %c0_i32_0 : i32, i32, i32, i32
  }
  func.func @transform_4(%arg0: i32, %arg1: i32, %arg2: i32) -> (i32, i32) {
    %c0_i32 = arith.constant 0 : i32
    %c0_i32_0 = arith.constant 0 : i32
    %c0_i32_1 = arith.constant 0 : i32
    return %c0_i32, %c0_i32_0 : i32, i32
  }
  func.func @transform_5(%arg0: i32, %arg1: i32, %arg2: i32) -> (i32, i32) {
    %c0_i32 = arith.constant 0 : i32
    %c0_i32_0 = arith.constant 0 : i32
    %c0_i32_1 = arith.constant 0 : i32
    return %c0_i32, %c0_i32_0 : i32, i32
  }
  func.func @transform_6(%arg0: i32, %arg1: i32, %arg2: i32) -> (i32, i32) {
    %c0_i32 = arith.constant 0 : i32
    %c0_i32_0 = arith.constant 0 : i32
    %c0_i32_1 = arith.constant 0 : i32
    return %c0_i32, %c0_i32_0 : i32, i32
  }
  func.func @transform_7(%arg0: i32, %arg1: i32, %arg2: i32) -> (i32, i32) {
    %c0_i32 = arith.constant 0 : i32
    %c0_i32_0 = arith.constant 0 : i32
    %c0_i32_1 = arith.constant 0 : i32
    return %c0_i32, %c0_i32_0 : i32, i32
  }
  func.func @transform_8(%arg0: i32, %arg1: i32, %arg2: i32) -> (i32, i32) {
    %c0_i32 = arith.constant 0 : i32
    %c0_i32_0 = arith.constant 0 : i32
    %c0_i32_1 = arith.constant 0 : i32
    return %c0_i32, %c0_i32_0 : i32, i32
  }
  func.func @transform_9(%arg0: i32, %arg1: i32, %arg2: i32) -> (i32, i32) {
    %c0_i32 = arith.constant 0 : i32
    %c0_i32_0 = arith.constant 0 : i32
    %c0_i32_1 = arith.constant 0 : i32
    return %c0_i32, %c0_i32_0 : i32, i32
  }
  func.func @transform_10(%arg0: i32, %arg1: i32, %arg2: i32) -> (i32, i32) {
    %c0_i32 = arith.constant 0 : i32
    %c0_i32_0 = arith.constant 0 : i32
    %c0_i32_1 = arith.constant 0 : i32
    return %c0_i32, %c0_i32_0 : i32, i32
  }
  func.func @transform_11(%arg0: i32, %arg1: i32, %arg2: i32) -> (i32, i32) {
    %c0_i32 = arith.constant 0 : i32
    %c0_i32_0 = arith.constant 0 : i32
    %c0_i32_1 = arith.constant 0 : i32
    return %c0_i32, %c0_i32_0 : i32, i32
  }
  func.func @transform_12(%arg0: i32, %arg1: i32, %arg2: i32) -> (i32, i32, i32) {
    %c0_i32 = arith.constant 0 : i32
    %c0_i32_0 = arith.constant 0 : i32
    return %arg0, %arg1, %c0_i32 : i32, i32, i32
  }
}

module attributes {stable_mosaic.version = 11 : i64} {
  func.func @attn_mlp_kernel(%arg0: i32, %arg1: i32, %arg2: i32, %arg3: memref<1x8x32xbf16, #tpu.memory_space<vmem>>, %arg4: memref<1x4x8x8xbf16, #tpu.memory_space<vmem>>, %arg5: memref<1x4x8x8xbf16, #tpu.memory_space<vmem>>, %arg6: memref<1x4x8x8xbf16, #tpu.memory_space<vmem>>, %arg7: memref<1x32xf32, #tpu.memory_space<vmem>>, %arg8: memref<1x32xf32, #tpu.memory_space<vmem>>, %arg9: memref<32x128xbf16, #tpu.memory_space<vmem>>, %arg10: memref<1x128xf32, #tpu.memory_space<vmem>>, %arg11: memref<128x32xbf16, #tpu.memory_space<vmem>>, %arg12: memref<1x32xf32, #tpu.memory_space<vmem>>, %arg13: memref<1x32xf32, #tpu.memory_space<vmem>>, %arg14: memref<1x32xf32, #tpu.memory_space<vmem>>, %arg15: memref<1x8x32xf32, #tpu.memory_space<vmem>>, %arg16: memref<4x8x1xf32, #tpu.memory_space<vmem>>, %arg17: memref<4x8x1xf32, #tpu.memory_space<vmem>>, %arg18: memref<4x8x8xf32, #tpu.memory_space<vmem>>) attributes {dimension_semantics = [#tpu.dimension_semantics<parallel>, #tpu.dimension_semantics<parallel>, #tpu.dimension_semantics<arbitrary>], iteration_bounds = array<i64: 2, 1, 1>, scalar_prefetch = 0 : i64, scratch_operands = 3 : i64, tpu.core_type = #tpu.core_type<tc>, window_params = [{transform_indices = @transform_0, window_bounds = array<i64: 1, 8, 32>}, {transform_indices = @transform_1, window_bounds = array<i64: 1, 4, 8, 8>}, {transform_indices = @transform_2, window_bounds = array<i64: 1, 4, 8, 8>}, {transform_indices = @transform_3, window_bounds = array<i64: 1, 4, 8, 8>}, {pipeline_mode = #tpu.pipeline_mode<synchronous>, transform_indices = @transform_4, window_bounds = array<i64: 1, 32>}, {pipeline_mode = #tpu.pipeline_mode<synchronous>, transform_indices = @transform_5, window_bounds = array<i64: 1, 32>}, {pipeline_mode = #tpu.pipeline_mode<synchronous>, transform_indices = @transform_6, window_bounds = array<i64: 32, 128>}, {pipeline_mode = #tpu.pipeline_mode<synchronous>, transform_indices = @transform_7, window_bounds = array<i64: 1, 128>}, {pipeline_mode = #tpu.pipeline_mode<synchronous>, transform_indices = @transform_8, window_bounds = array<i64: 128, 32>}, {pipeline_mode = #tpu.pipeline_mode<synchronous>, transform_indices = @transform_9, window_bounds = array<i64: 1, 32>}, {pipeline_mode = #tpu.pipeline_mode<synchronous>, transform_indices = @transform_10, window_bounds = array<i64: 1, 32>}, {pipeline_mode = #tpu.pipeline_mode<synchronous>, transform_indices = @transform_11, window_bounds = array<i64: 1, 32>}, {transform_indices = @transform_12, window_bounds = array<i64: 1, 8, 32>}]} {
    %c0_i32 = arith.constant 0 : i32
    %0 = arith.cmpi eq, %arg2, %c0_i32 : i32
    %1 = arith.extui %0 : i1 to i32
    %c0_i32_0 = arith.constant 0 : i32
    %2 = arith.cmpi ne, %1, %c0_i32_0 : i32
    scf.if %2 {
      %cst = arith.constant 0xFF800000 : f32
      %9 = vector.broadcast %cst : f32 to vector<4x8x1xf32>
      %c0 = arith.constant 0 : index
      %c0_4 = arith.constant 0 : index
      %c0_5 = arith.constant 0 : index
      %10 = vector.load %arg16[%c0, %c0_4, %c0_5] : memref<4x8x1xf32, #tpu.memory_space<vmem>>, vector<4x8x1xf32>
      tpu.vector_store %arg16[%c0, %c0_4, %c0_5], %9 {strides = array<i32>} : memref<4x8x1xf32, #tpu.memory_space<vmem>>, vector<4x8x1xf32>,
      %cst_6 = arith.constant 0.000000e+00 : f32
      %11 = vector.broadcast %cst_6 : f32 to vector<4x8x1xf32>
      %c0_7 = arith.constant 0 : index
      %c0_8 = arith.constant 0 : index
      %c0_9 = arith.constant 0 : index
      %12 = vector.load %arg17[%c0_7, %c0_8, %c0_9] : memref<4x8x1xf32, #tpu.memory_space<vmem>>, vector<4x8x1xf32>
      tpu.vector_store %arg17[%c0_7, %c0_8, %c0_9], %11 {strides = array<i32>} : memref<4x8x1xf32, #tpu.memory_space<vmem>>, vector<4x8x1xf32>,
      %cst_10 = arith.constant 0.000000e+00 : f32
      %13 = vector.broadcast %cst_10 : f32 to vector<4x8x8xf32>
      %c0_11 = arith.constant 0 : index
      %c0_12 = arith.constant 0 : index
      %c0_13 = arith.constant 0 : index
      %14 = vector.load %arg18[%c0_11, %c0_12, %c0_13] : memref<4x8x8xf32, #tpu.memory_space<vmem>>, vector<4x8x8xf32>
      tpu.vector_store %arg18[%c0_11, %c0_12, %c0_13], %13 {strides = array<i32>} : memref<4x8x8xf32, #tpu.memory_space<vmem>>, vector<4x8x8xf32>,
    } else {
    }
    %3 = arith.cmpi sle, %arg2, %arg1 : i32
    %4 = arith.extui %3 : i1 to i32
    %c0_i32_1 = arith.constant 0 : i32
    %5 = arith.cmpi ne, %4, %c0_i32_1 : i32
    scf.if %5 {
      %c0 = arith.constant 0 : index
      %c0_4 = arith.constant 0 : index
      %c0_5 = arith.constant 0 : index
      %c0_6 = arith.constant 0 : index
      %9 = vector.load %arg4[%c0, %c0_4, %c0_5, %c0_6] : memref<1x4x8x8xbf16, #tpu.memory_space<vmem>>, vector<1x4x8x8xbf16>
      %10 = vector.shape_cast %9 : vector<1x4x8x8xbf16> to vector<4x8x8xbf16>
      %c0_7 = arith.constant 0 : index
      %c0_8 = arith.constant 0 : index
      %c0_9 = arith.constant 0 : index
      %c0_10 = arith.constant 0 : index
      %11 = vector.load %arg5[%c0_7, %c0_8, %c0_9, %c0_10] : memref<1x4x8x8xbf16, #tpu.memory_space<vmem>>, vector<1x4x8x8xbf16>
      %12 = vector.shape_cast %11 : vector<1x4x8x8xbf16> to vector<4x8x8xbf16>
      %c0_11 = arith.constant 0 : index
      %c0_12 = arith.constant 0 : index
      %c0_13 = arith.constant 0 : index
      %c0_14 = arith.constant 0 : index
      %13 = vector.load %arg6[%c0_11, %c0_12, %c0_13, %c0_14] : memref<1x4x8x8xbf16, #tpu.memory_space<vmem>>, vector<1x4x8x8xbf16>
      %14 = vector.shape_cast %13 : vector<1x4x8x8xbf16> to vector<4x8x8xbf16>
      "tpu.trace_start"() <{level = 10 : i32, message = "hqd,hkd->hqk"}> : () -> ()
      %cst = arith.constant dense<0.000000e+00> : vector<4x8x8xf32>
      %15 = tpu.matmul %10, %12, %cst {dimension_numbers = #tpu.dot_dimension_numbers<[2], [2], [1], [1], [0, 0, 0, 1, 1, 1], [0], [0]>} : vector<4x8x8xbf16>, vector<4x8x8xbf16>, vector<4x8x8xf32> -> vector<4x8x8xf32>
      "tpu.trace_stop"() : () -> ()
      %c8_i32 = arith.constant 8 : i32
      %16 = arith.muli %arg1, %c8_i32 : i32
      %17 = tpu.iota {dimensions = array<i32: 0>} : vector<8x8xi32>
      %18 = vector.broadcast %16 : i32 to vector<8x8xi32>
      %19 = arith.addi %18, %17 : vector<8x8xi32>
      %c8_i32_15 = arith.constant 8 : i32
      %20 = arith.muli %arg2, %c8_i32_15 : i32
      %21 = tpu.iota {dimensions = array<i32: 1>} : vector<8x8xi32>
      %22 = vector.broadcast %20 : i32 to vector<8x8xi32>
      %23 = arith.addi %22, %21 : vector<8x8xi32>
      %24 = arith.cmpi sle, %23, %19 : vector<8x8xi32>
      %25 = vector.shape_cast %24 : vector<8x8xi1> to vector<1x8x8xi1>
      %cst_16 = arith.constant -1.000000e+04 : f32
      %26 = vector.shape_cast %25 : vector<1x8x8xi1> to vector<1x8x8xi1>
      %27 = vector.broadcast %26 : vector<1x8x8xi1> to vector<4x8x8xi1>
      %28 = vector.broadcast %cst_16 : f32 to vector<4x8x8xf32>
      %29 = arith.select %27, %15, %28 : vector<4x8x8xi1>, vector<4x8x8xf32>
      %c0_17 = arith.constant 0 : index
      %c0_18 = arith.constant 0 : index
      %c0_19 = arith.constant 0 : index
      %30 = vector.load %arg16[%c0_17, %c0_18, %c0_19] : memref<4x8x1xf32, #tpu.memory_space<vmem>>, vector<4x8x1xf32>
      %cst_20 = arith.constant dense<0xFF800000> : vector<4x8xf32>
      %31 = vector.multi_reduction <maximumf>, %29, %cst_20 [2] : vector<4x8x8xf32> to vector<4x8xf32>
      %32 = vector.shape_cast %31 : vector<4x8xf32> to vector<4x8x1xf32>
      %33 = arith.maximumf %30, %32 : vector<4x8x1xf32>
      %34 = arith.subf %30, %33 : vector<4x8x1xf32>
      %35 = math.exp %34 : vector<4x8x1xf32>
      %36 = vector.broadcast %33 : vector<4x8x1xf32> to vector<4x8x8xf32>
      %37 = arith.subf %29, %36 : vector<4x8x8xf32>
      %38 = math.exp %37 : vector<4x8x8xf32>
      %c0_21 = arith.constant 0 : index
      %c0_22 = arith.constant 0 : index
      %c0_23 = arith.constant 0 : index
      %39 = vector.load %arg17[%c0_21, %c0_22, %c0_23] : memref<4x8x1xf32, #tpu.memory_space<vmem>>, vector<4x8x1xf32>
      %40 = arith.mulf %35, %39 : vector<4x8x1xf32>
      %cst_24 = arith.constant dense<0.000000e+00> : vector<4x8xf32>
      %41 = vector.multi_reduction <add>, %38, %cst_24 [2] : vector<4x8x8xf32> to vector<4x8xf32>
      %42 = vector.shape_cast %41 : vector<4x8xf32> to vector<4x8x1xf32>
      %43 = arith.addf %40, %42 : vector<4x8x1xf32>
      %c0_25 = arith.constant 0 : index
      %c0_26 = arith.constant 0 : index
      %c0_27 = arith.constant 0 : index
      %44 = vector.load %arg17[%c0_25, %c0_26, %c0_27] : memref<4x8x1xf32, #tpu.memory_space<vmem>>, vector<4x8x1xf32>
      tpu.vector_store %arg17[%c0_25, %c0_26, %c0_27], %43 {strides = array<i32>} : memref<4x8x1xf32, #tpu.memory_space<vmem>>, vector<4x8x1xf32>,
      %c0_28 = arith.constant 0 : index
      %c0_29 = arith.constant 0 : index
      %c0_30 = arith.constant 0 : index
      %45 = vector.load %arg18[%c0_28, %c0_29, %c0_30] : memref<4x8x8xf32, #tpu.memory_space<vmem>>, vector<4x8x8xf32>
      %46 = vector.broadcast %35 : vector<4x8x1xf32> to vector<4x8x8xf32>
      %47 = arith.mulf %46, %45 : vector<4x8x8xf32>
      %48 = arith.truncf %38 : vector<4x8x8xf32> to vector<4x8x8xbf16>
      "tpu.trace_start"() <{level = 10 : i32, message = "hqk,hkd->hqd"}> : () -> ()
      %cst_31 = arith.constant dense<0.000000e+00> : vector<4x8x8xf32>
      %49 = tpu.matmul %48, %14, %cst_31 {dimension_numbers = #tpu.dot_dimension_numbers<[2], [1], [1], [2], [0, 0, 0, 1, 1, 2], [0], [0]>} : vector<4x8x8xbf16>, vector<4x8x8xbf16>, vector<4x8x8xf32> -> vector<4x8x8xf32>
      "tpu.trace_stop"() : () -> ()
      %50 = arith.addf %47, %49 : vector<4x8x8xf32>
      %c0_32 = arith.constant 0 : index
      %c0_33 = arith.constant 0 : index
      %c0_34 = arith.constant 0 : index
      %51 = vector.load %arg18[%c0_32, %c0_33, %c0_34] : memref<4x8x8xf32, #tpu.memory_space<vmem>>, vector<4x8x8xf32>
      tpu.vector_store %arg18[%c0_32, %c0_33, %c0_34], %50 {strides = array<i32>} : memref<4x8x8xf32, #tpu.memory_space<vmem>>, vector<4x8x8xf32>,
      %c0_35 = arith.constant 0 : index
      %c0_36 = arith.constant 0 : index
      %c0_37 = arith.constant 0 : index
      %52 = vector.load %arg16[%c0_35, %c0_36, %c0_37] : memref<4x8x1xf32, #tpu.memory_space<vmem>>, vector<4x8x1xf32>
      tpu.vector_store %arg16[%c0_35, %c0_36, %c0_37], %33 {strides = array<i32>} : memref<4x8x1xf32, #tpu.memory_space<vmem>>, vector<4x8x1xf32>,
    } else {
    }
    %c0_i32_2 = arith.constant 0 : i32
    %6 = arith.cmpi eq, %arg2, %c0_i32_2 : i32
    %7 = arith.extui %6 : i1 to i32
    %c0_i32_3 = arith.constant 0 : i32
    %8 = arith.cmpi ne, %7, %c0_i32_3 : i32
    scf.if %8 {
      %c0 = arith.constant 0 : index
      %c0_4 = arith.constant 0 : index
      %c0_5 = arith.constant 0 : index
      %9 = vector.load %arg18[%c0, %c0_4, %c0_5] : memref<4x8x8xf32, #tpu.memory_space<vmem>>, vector<4x8x8xf32>
      %c0_6 = arith.constant 0 : index
      %c0_7 = arith.constant 0 : index
      %c0_8 = arith.constant 0 : index
      %10 = vector.load %arg17[%c0_6, %c0_7, %c0_8] : memref<4x8x1xf32, #tpu.memory_space<vmem>>, vector<4x8x1xf32>
      %11 = tpu.reciprocal %10 {approx = true} : vector<4x8x1xf32> -> vector<4x8x1xf32>
      %12 = vector.broadcast %11 : vector<4x8x1xf32> to vector<4x8x8xf32>
      %13 = arith.mulf %9, %12 : vector<4x8x8xf32>
      %14 = tpu.transpose %13, [1, 0, 2] : vector<4x8x8xf32> -> vector<8x4x8xf32>
      %15 = vector.shape_cast %14 : vector<8x4x8xf32> to vector<8x32xf32>
      %c0_9 = arith.constant 0 : index
      %c0_10 = arith.constant 0 : index
      %c0_11 = arith.constant 0 : index
      %16 = vector.load %arg3[%c0_9, %c0_10, %c0_11] : memref<1x8x32xbf16, #tpu.memory_space<vmem>>, vector<1x8x32xbf16>
      %17 = vector.shape_cast %16 : vector<1x8x32xbf16> to vector<8x32xbf16>
      %18 = arith.extf %17 : vector<8x32xbf16> to vector<8x32xf32>
      %19 = arith.addf %18, %15 : vector<8x32xf32>
      %c0_12 = arith.constant 0 : index
      %c0_13 = arith.constant 0 : index
      %20 = vector.load %arg7[%c0_12, %c0_13] : memref<1x32xf32, #tpu.memory_space<vmem>>, vector<1x32xf32>
      %21 = vector.shape_cast %20 : vector<1x32xf32> to vector<32xf32>
      %c0_14 = arith.constant 0 : index
      %c0_15 = arith.constant 0 : index
      %22 = vector.load %arg8[%c0_14, %c0_15] : memref<1x32xf32, #tpu.memory_space<vmem>>, vector<1x32xf32>
      %23 = vector.shape_cast %22 : vector<1x32xf32> to vector<32xf32>
      %cst = arith.constant dense<0.000000e+00> : vector<8xf32>
      %24 = vector.multi_reduction <add>, %19, %cst [1] : vector<8x32xf32> to vector<8xf32>
      %25 = vector.shape_cast %24 : vector<8xf32> to vector<8x1xf32>
      %cst_16 = arith.constant 3.200000e+01 : f32
      %26 = vector.broadcast %cst_16 : f32 to vector<8x1xf32>
      %27 = arith.divf %25, %26 : vector<8x1xf32>
      %28 = vector.broadcast %27 : vector<8x1xf32> to vector<8x32xf32>
      %29 = arith.subf %19, %28 : vector<8x32xf32>
      %30 = arith.mulf %29, %29 : vector<8x32xf32>
      %cst_17 = arith.constant dense<0.000000e+00> : vector<8xf32>
      %31 = vector.multi_reduction <add>, %30, %cst_17 [1] : vector<8x32xf32> to vector<8xf32>
      %32 = vector.shape_cast %31 : vector<8xf32> to vector<8x1xf32>
      %cst_18 = arith.constant 3.200000e+01 : f32
      %33 = vector.broadcast %cst_18 : f32 to vector<8x1xf32>
      %34 = arith.divf %32, %33 : vector<8x1xf32>
      %35 = vector.broadcast %27 : vector<8x1xf32> to vector<8x32xf32>
      %36 = arith.subf %19, %35 : vector<8x32xf32>
      %cst_19 = arith.constant 9.99999974E-6 : f32
      %37 = vector.broadcast %cst_19 : f32 to vector<8x1xf32>
      %38 = arith.addf %34, %37 : vector<8x1xf32>
      %39 = math.rsqrt %38 : vector<8x1xf32>
      %40 = vector.broadcast %39 : vector<8x1xf32> to vector<8x32xf32>
      %41 = arith.mulf %36, %40 : vector<8x32xf32>
      %42 = vector.shape_cast %21 : vector<32xf32> to vector<1x32xf32>
      %43 = vector.broadcast %42 : vector<1x32xf32> to vector<8x32xf32>
      %44 = arith.mulf %41, %43 : vector<8x32xf32>
      %45 = vector.shape_cast %23 : vector<32xf32> to vector<1x32xf32>
      %46 = vector.broadcast %45 : vector<1x32xf32> to vector<8x32xf32>
      %47 = arith.addf %44, %46 : vector<8x32xf32>
      %48 = arith.truncf %47 : vector<8x32xf32> to vector<8x32xbf16>
      %c0_20 = arith.constant 0 : index
      %c0_21 = arith.constant 0 : index
      %49 = vector.load %arg9[%c0_20, %c0_21] : memref<32x128xbf16, #tpu.memory_space<vmem>>, vector<32x128xbf16>
      %cst_22 = arith.constant dense<0.000000e+00> : vector<8x128xf32>
      %50 = tpu.matmul %48, %49, %cst_22 {dimension_numbers = #tpu.dot_dimension_numbers<[1], [0], [0], [1], [0, 0, 1, 1], [], []>} : vector<8x32xbf16>, vector<32x128xbf16>, vector<8x128xf32> -> vector<8x128xf32>
      %c0_23 = arith.constant 0 : index
      %c0_24 = arith.constant 0 : index
      %51 = vector.load %arg10[%c0_23, %c0_24] : memref<1x128xf32, #tpu.memory_space<vmem>>, vector<1x128xf32>
      %52 = vector.shape_cast %51 : vector<1x128xf32> to vector<128xf32>
      %53 = vector.shape_cast %52 : vector<128xf32> to vector<1x128xf32>
      %54 = vector.broadcast %53 : vector<1x128xf32> to vector<8x128xf32>
      %55 = arith.addf %50, %54 : vector<8x128xf32>
      %cst_25 = arith.constant 5.000000e-01 : f32
      %56 = vector.broadcast %cst_25 : f32 to vector<8x128xf32>
      %57 = arith.mulf %56, %55 : vector<8x128xf32>
      %cst_26 = arith.constant 4.471500e-02 : f32
      %58 = vector.broadcast %cst_26 : f32 to vector<8x128xf32>
      %59 = arith.mulf %58, %55 : vector<8x128xf32>
      %60 = arith.mulf %59, %55 : vector<8x128xf32>
      %61 = arith.mulf %60, %55 : vector<8x128xf32>
      %62 = arith.addf %55, %61 : vector<8x128xf32>
      %cst_27 = arith.constant 0.797884583 : f32
      %63 = vector.broadcast %cst_27 : f32 to vector<8x128xf32>
      %64 = arith.mulf %63, %62 : vector<8x128xf32>
      %65 = math.tanh %64 : vector<8x128xf32>
      %cst_28 = arith.constant 1.000000e+00 : f32
      %66 = vector.broadcast %cst_28 : f32 to vector<8x128xf32>
      %67 = arith.addf %66, %65 : vector<8x128xf32>
      %68 = arith.mulf %57, %67 : vector<8x128xf32>
      %69 = arith.truncf %68 : vector<8x128xf32> to vector<8x128xbf16>
      %c0_29 = arith.constant 0 : index
      %c0_30 = arith.constant 0 : index
      %70 = vector.load %arg11[%c0_29, %c0_30] : memref<128x32xbf16, #tpu.memory_space<vmem>>, vector<128x32xbf16>
      %cst_31 = arith.constant dense<0.000000e+00> : vector<8x32xf32>
      %71 = tpu.matmul %69, %70, %cst_31 {dimension_numbers = #tpu.dot_dimension_numbers<[1], [0], [0], [1], [0, 0, 1, 1], [], []>} : vector<8x128xbf16>, vector<128x32xbf16>, vector<8x32xf32> -> vector<8x32xf32>
      %c0_32 = arith.constant 0 : index
      %c0_33 = arith.constant 0 : index
      %72 = vector.load %arg12[%c0_32, %c0_33] : memref<1x32xf32, #tpu.memory_space<vmem>>, vector<1x32xf32>
      %73 = vector.shape_cast %72 : vector<1x32xf32> to vector<32xf32>
      %74 = vector.shape_cast %73 : vector<32xf32> to vector<1x32xf32>
      %75 = vector.broadcast %74 : vector<1x32xf32> to vector<8x32xf32>
      %76 = arith.addf %71, %75 : vector<8x32xf32>
      %77 = arith.addf %19, %76 : vector<8x32xf32>
      %c0_34 = arith.constant 0 : index
      %c0_35 = arith.constant 0 : index
      %78 = vector.load %arg13[%c0_34, %c0_35] : memref<1x32xf32, #tpu.memory_space<vmem>>, vector<1x32xf32>
      %79 = vector.shape_cast %78 : vector<1x32xf32> to vector<32xf32>
      %c0_36 = arith.constant 0 : index
      %c0_37 = arith.constant 0 : index
      %80 = vector.load %arg14[%c0_36, %c0_37] : memref<1x32xf32, #tpu.memory_space<vmem>>, vector<1x32xf32>
      %81 = vector.shape_cast %80 : vector<1x32xf32> to vector<32xf32>
      %cst_38 = arith.constant dense<0.000000e+00> : vector<8xf32>
      %82 = vector.multi_reduction <add>, %77, %cst_38 [1] : vector<8x32xf32> to vector<8xf32>
      %83 = vector.shape_cast %82 : vector<8xf32> to vector<8x1xf32>
      %cst_39 = arith.constant 3.200000e+01 : f32
      %84 = vector.broadcast %cst_39 : f32 to vector<8x1xf32>
      %85 = arith.divf %83, %84 : vector<8x1xf32>
      %86 = vector.broadcast %85 : vector<8x1xf32> to vector<8x32xf32>
      %87 = arith.subf %77, %86 : vector<8x32xf32>
      %88 = arith.mulf %87, %87 : vector<8x32xf32>
      %cst_40 = arith.constant dense<0.000000e+00> : vector<8xf32>
      %89 = vector.multi_reduction <add>, %88, %cst_40 [1] : vector<8x32xf32> to vector<8xf32>
      %90 = vector.shape_cast %89 : vector<8xf32> to vector<8x1xf32>
      %cst_41 = arith.constant 3.200000e+01 : f32
      %91 = vector.broadcast %cst_41 : f32 to vector<8x1xf32>
      %92 = arith.divf %90, %91 : vector<8x1xf32>
      %93 = vector.broadcast %85 : vector<8x1xf32> to vector<8x32xf32>
      %94 = arith.subf %77, %93 : vector<8x32xf32>
      %cst_42 = arith.constant 9.99999974E-6 : f32
      %95 = vector.broadcast %cst_42 : f32 to vector<8x1xf32>
      %96 = arith.addf %92, %95 : vector<8x1xf32>
      %97 = math.rsqrt %96 : vector<8x1xf32>
      %98 = vector.broadcast %97 : vector<8x1xf32> to vector<8x32xf32>
      %99 = arith.mulf %94, %98 : vector<8x32xf32>
      %100 = vector.shape_cast %79 : vector<32xf32> to vector<1x32xf32>
      %101 = vector.broadcast %100 : vector<1x32xf32> to vector<8x32xf32>
      %102 = arith.mulf %99, %101 : vector<8x32xf32>
      %103 = vector.shape_cast %81 : vector<32xf32> to vector<1x32xf32>
      %104 = vector.broadcast %103 : vector<1x32xf32> to vector<8x32xf32>
      %105 = arith.addf %102, %104 : vector<8x32xf32>
      %c0_43 = arith.constant 0 : index
      %c0_44 = arith.constant 0 : index
      %c0_45 = arith.constant 0 : index
      %106 = vector.load %arg15[%c0_43, %c0_44, %c0_45] : memref<1x8x32xf32, #tpu.memory_space<vmem>>, vector<1x8x32xf32>
      %107 = vector.shape_cast %106 : vector<1x8x32xf32> to vector<8x32xf32>
      %108 = vector.shape_cast %105 : vector<8x32xf32> to vector<1x8x32xf32>
      tpu.vector_store %arg15[%c0_43, %c0_44, %c0_45], %108 {strides = array<i32>} : memref<1x8x32xf32, #tpu.memory_space<vmem>>, vector<1x8x32xf32>,
    } else {
    }
    return
  }
  func.func @transform_0(%arg0: i32, %arg1: i32, %arg2: i32) -> (i32, i32, i32) {
    %c0_i32 = arith.constant 0 : i32
    %c0_i32_0 = arith.constant 0 : i32
    return %arg0, %arg1, %c0_i32 : i32, i32, i32
  }
  func.func @transform_1(%arg0: i32, %arg1: i32, %arg2: i32) -> (i32, i32, i32, i32) {
    %c0_i32 = arith.constant 0 : i32
    %c0_i32_0 = arith.constant 0 : i32
    %c0_i32_1 = arith.constant 0 : i32
    return %arg0, %c0_i32, %arg1, %c0_i32_0 : i32, i32, i32, i32
  }
  func.func @transform_2(%arg0: i32, %arg1: i32, %arg2: i32) -> (i32, i32, i32, i32) {
    %0 = arith.minsi %arg2, %arg1 : i32
    %c0_i32 = arith.constant 0 : i32
    %c0_i32_0 = arith.constant 0 : i32
    %c0_i32_1 = arith.constant 0 : i32
    return %arg0, %c0_i32, %0, %c0_i32_0 : i32, i32, i32, i32
  }
  func.func @transform_3(%arg0: i32, %arg1: i32, %arg2: i32) -> (i32, i32, i32, i32) {
    %0 = arith.minsi %arg2, %arg1 : i32
    %c0_i32 = arith.constant 0 : i32
    %c0_i32_0 = arith.constant 0 : i32
    %c0_i32_1 = arith.constant 0 : i32
    return %arg0, %c0_i32, %0, %c0_i32_0 : i32, i32, i32, i32
  }
  func.func @transform_4(%arg0: i32, %arg1: i32, %arg2: i32) -> (i32, i32) {
    %c0_i32 = arith.constant 0 : i32
    %c0_i32_0 = arith.constant 0 : i32
    %c0_i32_1 = arith.constant 0 : i32
    return %c0_i32, %c0_i32_0 : i32, i32
  }
  func.func @transform_5(%arg0: i32, %arg1: i32, %arg2: i32) -> (i32, i32) {
    %c0_i32 = arith.constant 0 : i32
    %c0_i32_0 = arith.constant 0 : i32
    %c0_i32_1 = arith.constant 0 : i32
    return %c0_i32, %c0_i32_0 : i32, i32
  }
  func.func @transform_6(%arg0: i32, %arg1: i32, %arg2: i32) -> (i32, i32) {
    %c0_i32 = arith.constant 0 : i32
    %c0_i32_0 = arith.constant 0 : i32
    %c0_i32_1 = arith.constant 0 : i32
    return %c0_i32, %c0_i32_0 : i32, i32
  }
  func.func @transform_7(%arg0: i32, %arg1: i32, %arg2: i32) -> (i32, i32) {
    %c0_i32 = arith.constant 0 : i32
    %c0_i32_0 = arith.constant 0 : i32
    %c0_i32_1 = arith.constant 0 : i32
    return %c0_i32, %c0_i32_0 : i32, i32
  }
  func.func @transform_8(%arg0: i32, %arg1: i32, %arg2: i32) -> (i32, i32) {
    %c0_i32 = arith.constant 0 : i32
    %c0_i32_0 = arith.constant 0 : i32
    %c0_i32_1 = arith.constant 0 : i32
    return %c0_i32, %c0_i32_0 : i32, i32
  }
  func.func @transform_9(%arg0: i32, %arg1: i32, %arg2: i32) -> (i32, i32) {
    %c0_i32 = arith.constant 0 : i32
    %c0_i32_0 = arith.constant 0 : i32
    %c0_i32_1 = arith.constant 0 : i32
    return %c0_i32, %c0_i32_0 : i32, i32
  }
  func.func @transform_10(%arg0: i32, %arg1: i32, %arg2: i32) -> (i32, i32) {
    %c0_i32 = arith.constant 0 : i32
    %c0_i32_0 = arith.constant 0 : i32
    %c0_i32_1 = arith.constant 0 : i32
    return %c0_i32, %c0_i32_0 : i32, i32
  }
  func.func @transform_11(%arg0: i32, %arg1: i32, %arg2: i32) -> (i32, i32) {
    %c0_i32 = arith.constant 0 : i32
    %c0_i32_0 = arith.constant 0 : i32
    %c0_i32_1 = arith.constant 0 : i32
    return %c0_i32, %c0_i32_0 : i32, i32
  }
  func.func @transform_12(%arg0: i32, %arg1: i32, %arg2: i32) -> (i32, i32, i32) {
    %c0_i32 = arith.constant 0 : i32
    %c0_i32_0 = arith.constant 0 : i32
    return %arg0, %arg1, %c0_i32 : i32, i32, i32
  }
}

</mosaic_0001>

<bundles_post_ra>
// kernel: gpt2_forward.4
= control target key start
LH: loop header
LB: loop body
LE: loop exit
PB: predicated region body
PF: predicated region fallthrough
CT: control target
= control target key end

     0   :  { %s1159_s24 = smov 0   ;;  %s1161_s25 = smov 0   ;;  %s1361_s0 = inlined_call_operand.vmem [shape: bf16[2,8,32], index: 0, kind: input, shape index: {}]   ;;  %s1362_s1 = inlined_call_operand.vmem [shape: f32[1,32], index: 1, kind: input, shape index: {}]   ;;  %s1363_s2 = inlined_call_operand.vmem [shape: f32[1,32], index: 2, kind: input, shape index: {}]   ;;  %s1364_s3 = inlined_call_operand.vmem [shape: bf16[32,96], index: 3, kind: input, shape index: {}]   ;;  %s1365_s4 = inlined_call_operand.vmem [shape: f32[1,96], index: 4, kind: input, shape index: {}]   ;;  %s1366_s5 = inlined_call_operand.vmem [shape: bf16[2,4,8,8], index: 5, kind: output, shape index: {0}]   ;;  %s1367_s6 = inlined_call_operand.vmem [shape: bf16[2,4,8,8], index: 6, kind: output, shape index: {1}]   ;;  %s1368_s7 = inlined_call_operand.vmem [shape: bf16[2,4,8,8], index: 7, kind: output, shape index: {2}]  }
   0x1   :  { %s1163_s26 = smov 0  }
   0x2 LB: > { %s30_s27 = sadd.s32 1, %s1105_s25  ;;  %p1004_p0 = scmp.ge.s32.totalorder %s1109_s26, 1  ;;  %s1109_s26 = sphi %s1163_s26, %s18_s26   ;;  %s1105_s25 = sphi %s1161_s25, %s1370_s25   ;;  %s1101_s24 = sphi %s1159_s24, %s1369_s24  }
   0x3   : > { %p32_p1 = scmp.ge.s32.totalorder %s30_s27, 2  ;;  %p264_p2 = scmp.lt.s32.totalorder %s1109_s26, 3 }
   0x5   : > { %s1372_s27 = smov (%p32_p1, %s30_s27), 0  ;;  %p265_p3 = pnand %p1004_p0, %p264_p2 }
   0x6   : > { %p317_p4 = scmp.lt.s32.totalorder (!%p265_p3), %s1101_s24, 1  ;;  %s1112_s19 = smov (!%p265_p3), 104  }
   0x7   : > { %268 = sbr.rel (%p265_p3) target bundleno = 693 (0x2b5), region = 40  ;;  %s1113_s20 = smov (!%p265_p3), 112  }
   0x8   : > { %s1114_s21 = smov (!%p265_p3), 120   ;;  %s1115_s22 = smov (!%p265_p3), 96  }
   0x9   : > { %s1116_s23 = smov (!%p265_p3), 64  }
   0xc   : > { %s1374_s24 = smov (!%p317_p4, %s1101_s24), 1  ;;  %vm353_vm0 = vcmask 261120   ;;  %v1111_v3 = vmov 32.0   ;;  %v1027_v15 = vld [vmem:[%s1364_s3 + $0x8] sm:$0xff]  ;;  %v1026_v16 = vld [vmem:[%s1364_s3] sm:$0xff]  ;;  %vm440_vm5 = vcmask 1047556  }
   0xd   : > { %s1005_s28 = sshll.u32 %s1374_s24, 2  ;;  %1083 = vrcp.f32 %v1111_v3  ;;  %421 = vmatpush.bf16.msra.mxu0 %v1027_v15  ;;  %v1080_v26 = vld [vmem:[%s1362_s1] ss:$0 sm:$0xff]  ;;  %v1117_v42 = vmov 1983009808   ;;  %vm554_vm6 = vcmask 60416  }
   0xe   : > { %s323_s8 = scalar_lea.vmem %s1361_s0, %s1005_s28  ;;  %v1081_v29 = vld [vmem:[%s1363_s2] ss:$0 sm:$0xff]  ;;  %v445_v43 = vunpack.c.l.s4 %v1117_v42  ;;  %v1118_v52 = vmov 1934713408   ;;  %s1238_s28 = sshll.u32 %s1374_s24, 4 }
   0xf   : > { %v349_v0 = vld [vmem:[%s323_s8] sm:$0xf]  ;;  %v469_v53 = vunpack.c.l.s4 %v1118_v52  ;;  %s331_s8 = scalar_lea.vmem %s1366_s5, %s1238_s28  ;;  %s339_s10 = scalar_lea.vmem %s1367_s6, %s1238_s28 }
  0x10   : > { %v350_v1 = vunpack.c.l.bf16 %v349_v0  ;;  %v1082_v33 = vld [vmem:[%s1365_s4] ss:$0 sm:$0xff]  ;;  %v1201_v48 = vunpack.c.0.s8 %v445_v43  ;;  %s347_s13 = scalar_lea.vmem %s1368_s7, %s1238_s28 }
  0x11   : > { %422 = vmatpush.bf16.msra.mxu0 %v1026_v16  ;;  %v1207_v58 = vunpack.c.0.s8 %v469_v53 }
  0x12   : > { %v354_v2 = vsel %vm353_vm0, %v350_v1, 0.0 }
  0x13   : > { %355 = vadd.xlane.f32.xlu0 %v354_v2  ;;  %v1084_v4 = vpop.eup %1083 }
  0x14   : > { %v358_v5 = vmul.f32 32.0, %v1084_v4  ;;  %vm362_vm1 = vweird.f32 %v1084_v4 }
  0x16   : > { %v359_v6 = vsub.f32 1.0, %v358_v5 }
  0x18   : > { %v360_v7 = vmul.f32 %v1084_v4, %v359_v6 }
  0x1a   : > { %v361_v8 = vadd.f32 %v1084_v4, %v360_v7 }
  0x1c   : > { %v363_v9 = vsel %vm362_vm1, %v1084_v4, %v361_v8 }
  0x86   : > { %v356_v10 = vpop.xlane.xlu0 %355 }
  0x87   : > { %v364_v11 = vmul.f32 %v363_v9, %v356_v10 }
  0x89   : > { %v365_v12 = vsub.f32 %v350_v1, %v364_v11 }
  0x8b   : > { %v366_v13 = vmul.f32 %v365_v12, %v365_v12 }
  0x8d   : > { %v367_v14 = vsel %vm353_vm0, %v366_v13, 0.0 }
  0x8e   : > { %368 = vadd.xlane.f32.xlu0 %v367_v14 }
 0x101   : > { %v369_v17 = vpop.xlane.xlu0 %368 }
 0x102   : > { %v370_v18 = vmul.f32 %v369_v17, %v363_v9 }
 0x104   : > { %v371_v19 = vadd.f32 1e-05, %v370_v18 }
 0x106   : > { %1085 = vrsqrt.f32 %v371_v19  ;;  %vm378_vm3 = vweird.f32 %v371_v19 }
 0x10c   : > { %v1086_v20 = vpop.eup %1085 }
 0x10d   : > { %v373_v21 = vmul.f32 %v1086_v20, %v371_v19  ;;  %vm379_vm2 = vweird.f32 %v1086_v20 }
 0x10e   : > { %vm380_vm4 = vmor %vm378_vm3, %vm379_vm2 }
 0x10f   : > { %v374_v22 = vmul.f32 %v1086_v20, %v373_v21 }
 0x111   : > { %v375_v23 = vmul.f32 0.5, %v374_v22 }
 0x113   : > { %v376_v24 = vsub.f32 1.5, %v375_v23 }
 0x115   : > { %v377_v25 = vmul.f32 %v1086_v20, %v376_v24 }
 0x117   : > { %v381_v27 = vsel %vm380_vm4, %v1086_v20, %v377_v25 }
 0x118   : > { %v382_v28 = vmul.f32 %v381_v27, %v365_v12 }
 0x11a   : > { %v386_v30 = vmul.f32 %v1080_v26, %v382_v28 }
 0x11c   : > { %v390_v31 = vadd.f32 %v1081_v29, %v386_v30 }
 0x11e   : > { %v391_v32 = vpack.c.bf16 %v390_v31, %v390_v31 }
 0x120   : > { %1020 = vmatmul.msk.bf16.vlgmr.msra.gmra.mxu0 %vm353_vm0, %v391_v32 }
 0x19d   : > { %v424_v34 = vpop.f32.mrf.mxu0 }
 0x19e   : > { %v425_v35 = vadd.f32 %v1082_v33, %v424_v34 }
 0x1a0   : > { %564 = vrot.lane.b32.xlu2 %v425_v35, %s1112_s19  ;;  %562 = vrot.lane.b32.xlu1 %v425_v35, %s1113_s20  ;;  %v428_v37 = vmul.f32 0.35355338, %v425_v35 }
 0x1a2   : > { %v442_v46 = vrot.slane %v428_v37, 4 }
 0x1a5   : > { %v426_v36 = vpop.f32.mrf.mxu0 }
 0x1a8   : > { %560 = vrot.lane.b32.xlu1 %v425_v35, %s1114_s21  ;;  %433 = vrot.lane.b32.xlu2 %v428_v37, %s1113_s20 }
 0x1b0   : > { %436 = vrot.lane.b32.xlu1 %v428_v37, %s1112_s19  ;;  %430 = vrot.lane.b32.xlu2 %v428_v37, %s1114_s21 }
 0x1fa   : > { %v565_v38 = vpop.permute.xlu2 %564 }
 0x202   : > { %v434_v41 = vpop.permute.xlu2 %433 }
 0x203   : > { %v439_v45 = vrot.slane %v434_v41, 4  ;;  %v443_v49 = vsel %vm440_vm5, %v434_v41, %v442_v46 }
 0x204   : > { %v451_v54 = vperm.slane %v443_v49, %v1201_v48 }
 0x205   : > { %v441_v51 = vsel %vm440_vm5, %v439_v45, %v428_v37 }
 0x206   : > { %v447_v56 = vperm.slane %v441_v51, %v1201_v48  ;;  %v478_v61 = vrot.slane %v451_v54, 4 }
 0x208   : > { %v466_v0 = vrot.slane %v447_v56, 4 }
 0x20a   : > { %v431_v50 = vpop.permute.xlu2 %430 }
 0x20b   : > { %v454_v55 = vrot.slane %v431_v50, 4 }
 0x212   : > { %v563_v39 = vpop.permute.xlu1 %562 }
 0x213   : > { %v1065_v40 = vpack.i.bf16 %v563_v39, %v425_v35 }
 0x215   : > { %1061 = vrot.lane.b32.xlu0 %v1065_v40, %s1115_s22  ;;  %1066 = vrot.lane.b32.xlu1 %v1065_v40, %s1116_s23 }
 0x21a   : > { %v561_v44 = vpop.permute.xlu1 %560 }
 0x21b   : > { %v1075_v47 = vpack.i.bf16 %v565_v38, %v561_v44 }
 0x21d   : > { %1076 = vrot.lane.b32.xlu1 %v1075_v47, %s1116_s23  ;;  %1071 = vrot.lane.b32.xlu2 %v1075_v47, %s1115_s22 }
 0x222   : > { %v437_v57 = vpop.permute.xlu1 %436 }
 0x223   : > { %v452_v59 = vrot.slane %v437_v57, 4  ;;  %v455_v60 = vsel %vm440_vm5, %v437_v57, %v454_v55 }
 0x224   : > { %v463_v62 = vperm.slane %v455_v60, %v1201_v48 }
 0x225   : > { %v453_v63 = vsel %vm440_vm5, %v452_v59, %v431_v50 }
 0x226   : > { %v459_v1 = vperm.slane %v453_v63, %v1201_v48  ;;  %v476_v2 = vrot.slane %v463_v62, 4  ;;  %v479_v3 = vsel %vm440_vm5, %v463_v62, %v478_v61 }
 0x227   : > { %v487_v4 = vperm.slane %v479_v3, %v1207_v58 }
 0x228   : > { %v464_v5 = vrot.slane %v459_v1, 4  ;;  %v467_v6 = vsel %vm440_vm5, %v459_v1, %v466_v0  ;;  %v477_v7 = vsel %vm440_vm5, %v476_v2, %v451_v54 }
 0x229   : > { %v475_v8 = vperm.slane %v467_v6, %v1207_v58  ;;  %v483_v9 = vperm.slane %v477_v7, %v1207_v58  ;;  %v494_v10 = vrot.slane %v487_v4, 4 }
 0x22a   : > { %v465_v11 = vsel %vm440_vm5, %v464_v5, %v447_v56 }
 0x22b   : > { %v471_v12 = vperm.slane %v465_v11, %v1207_v58  ;;  %v490_v13 = vrot.slane %v475_v8, 4  ;;  %v492_v14 = vrot.slane %v483_v9, 4  ;;  %v495_v15 = vsel %vm440_vm5, 0.0, %v494_v10 }
 0x22c   : > { %v507_v16 = vsel %vm440_vm5, %v494_v10, %v483_v9  ;;  %v512_v17 = vrot.slane %v495_v15, 4 }
 0x22d   : > { %v488_v18 = vrot.slane %v471_v12, 4  ;;  %v491_v19 = vsel %vm440_vm5, 0.0, %v490_v13  ;;  %v493_v20 = vsel %vm440_vm5, 0.0, %v492_v14  ;;  %v496_v21 = vsel %vm440_vm5, %v490_v13, %v471_v12 }
 0x22e   : > { %v500_v22 = vperm.slane %v496_v21, %v1201_v48  ;;  %v501_v23 = vrot.slane %v491_v19, 4  ;;  %v511_v24 = vperm.slane %v507_v16, %v1201_v48  ;;  %v513_v25 = vsel %vm440_vm5, %v512_v17, %v493_v20 }
 0x22f   : > { %v489_v26 = vsel %vm440_vm5, 0.0, %v488_v18  ;;  %v517_v27 = vperm.slane %v513_v25, %v1201_v48 }
 0x230   : > { %v502_v28 = vsel %vm440_vm5, %v501_v23, %v489_v26  ;;  %v520_v29 = vrot.slane %v500_v22, 4  ;;  %v532_v30 = vrot.slane %v511_v24, 4 }
 0x231   : > { %v506_v31 = vperm.slane %v502_v28, %v1201_v48  ;;  %v530_v32 = vrot.slane %v517_v27, 4 }
 0x232   : > { %v533_v33 = vsel %vm440_vm5, %v517_v27, %v532_v30 }
 0x233   : > { %v518_v34 = vrot.slane %v506_v31, 4  ;;  %v521_v35 = vsel %vm440_vm5, %v506_v31, %v520_v29  ;;  %v531_v36 = vsel %vm440_vm5, %v530_v32, %v511_v24  ;;  %v541_v37 = vperm.slane %v533_v33, %v1207_v58 }
 0x234   : > { %v529_v38 = vperm.slane %v521_v35, %v1207_v58  ;;  %v537_v39 = vperm.slane %v531_v36, %v1207_v58 }
 0x235   : > { %v519_v40 = vsel %vm440_vm5, %v518_v34, %v500_v22  ;;  %v546_v41 = vrot.slane %v541_v37, 4 }
 0x236   : > { %v525_v42 = vperm.slane %v519_v40, %v1207_v58  ;;  %v542_v43 = vrot.slane %v537_v39, 4  ;;  %v548_v44 = vrot.slane %v529_v38, 4 }
 0x237   : > { %v547_v45 = vsel %vm440_vm5, %v546_v41, %v529_v38 }
 0x238   : > { %v543_v46 = vsel %vm440_vm5, %v542_v43, %v525_v42  ;;  %v544_v47 = vrot.slane %v525_v42, 4  ;;  %v549_v49 = vsel %vm440_vm5, %v541_v37, %v548_v44  ;;  %v552_v50 = vpack.c.bf16 %v547_v45, %v547_v45 }
 0x239   : > { %v550_v51 = vpack.c.bf16 %v543_v46, %v543_v46  ;;  %v553_v52 = vpack.c.bf16 %v549_v49, %v549_v49 }
 0x23a   : > { %v545_v53 = vsel %vm440_vm5, %v537_v39, %v544_v47  ;;  %557 = vst.msk [vmem:[%s331_s8 + $0x8] sm:$0xf] %vm554_vm6, %v552_v50 }
 0x23b   : > { %v551_v54 = vpack.c.bf16 %v545_v53, %v545_v53  ;;  %555 = vst.msk [vmem:[%s331_s8] sm:$0xf] %vm554_vm6, %v550_v51 }
 0x23c   : > { %558 = vst.msk [vmem:[%s331_s8 + $0xc] sm:$0xf] %vm554_vm6, %v553_v52 }
 0x23d   : > { %556 = vst.msk [vmem:[%s331_s8 + $0x4] sm:$0xf] %vm554_vm6, %v551_v54 }
 0x277   : > { %v1072_v55 = vpop.permute.xlu2 %1071 }
 0x278   : > { %v1074_v56 = vunpack.i.h.bf16 %v1072_v55  ;;  %v1073_v57 = vunpack.i.l.bf16 %v1072_v55 }
 0x27a   : > { %v590_v59 = vrot.slane %v1074_v56, 4  ;;  %v592_v60 = vrot.slane %v1073_v57, 4 }
 0x27c   : > { %v591_v61 = vsel %vm440_vm5, %v590_v59, %v1073_v57  ;;  %v593_v62 = vsel %vm440_vm5, %v1074_v56, %v592_v60 }
 0x27d   : > { %v597_v63 = vperm.slane %v591_v61, %v1201_v48  ;;  %v601_v0 = vperm.slane %v593_v62, %v1201_v48 }
 0x27f   : > { %v602_v11 = vrot.slane %v597_v63, 4  ;;  %v614_v12 = vrot.slane %v601_v0, 4 }
 0x287   : > { %v1062_v1 = vpop.permute.xlu0 %1061  ;;  %v1067_v2 = vpop.permute.xlu1 %1066 }
 0x288   : > { %v1064_v3 = vunpack.i.h.bf16 %v1062_v1  ;;  %v1063_v4 = vunpack.i.l.bf16 %v1062_v1  ;;  %v1069_v5 = vunpack.i.h.bf16 %v1067_v2  ;;  %v1068_v6 = vunpack.i.l.bf16 %v1067_v2 }
 0x28a   : > { %v578_v7 = vrot.slane %v1064_v3, 4  ;;  %v580_v8 = vrot.slane %v1063_v4, 4  ;;  %v708_v9 = vrot.slane %v1069_v5, 4  ;;  %v710_v10 = vrot.slane %v1068_v6, 4 }
 0x28c   : > { %v579_v13 = vsel %vm440_vm5, %v578_v7, %v1063_v4  ;;  %v581_v14 = vsel %vm440_vm5, %v1064_v3, %v580_v8  ;;  %v709_v17 = vsel %vm440_vm5, %v708_v9, %v1068_v6  ;;  %v711_v18 = vsel %vm440_vm5, %v1069_v5, %v710_v10 }
 0x28d   : > { %v585_v15 = vperm.slane %v579_v13, %v1201_v48  ;;  %v589_v16 = vperm.slane %v581_v14, %v1201_v48  ;;  %v715_v26 = vperm.slane %v709_v17, %v1201_v48  ;;  %v719_v27 = vperm.slane %v711_v18, %v1201_v48 }
 0x28f   : > { %v603_v19 = vsel %vm440_vm5, %v602_v11, %v585_v15  ;;  %v604_v20 = vrot.slane %v585_v15, 4  ;;  %v615_v21 = vsel %vm440_vm5, %v614_v12, %v589_v16  ;;  %v616_v22 = vrot.slane %v589_v16, 4  ;;  %v1077_v23 = vpop.permute.xlu1 %1076 }
 0x290   : > { %v609_v24 = vperm.slane %v603_v19, %v1207_v58  ;;  %v621_v25 = vperm.slane %v615_v21, %v1207_v58  ;;  %v1079_v30 = vunpack.i.h.bf16 %v1077_v23  ;;  %v1078_v31 = vunpack.i.l.bf16 %v1077_v23 }
 0x291   : > { %v605_v28 = vsel %vm440_vm5, %v597_v63, %v604_v20  ;;  %v617_v29 = vsel %vm440_vm5, %v601_v0, %v616_v22  ;;  %v734_v40 = vrot.slane %v715_v26, 4  ;;  %v746_v41 = vrot.slane %v719_v27, 4 }
 0x292   : > { %v613_v32 = vperm.slane %v605_v28, %v1207_v58  ;;  %v625_v33 = vperm.slane %v617_v29, %v1207_v58  ;;  %v720_v34 = vrot.slane %v1079_v30, 4  ;;  %v722_v35 = vrot.slane %v1078_v31, 4 }
 0x293   : > { %v626_v36 = vrot.slane %v609_v24, 4  ;;  %v630_v38 = vrot.slane %v621_v25, 4 }
 0x294   : > { %v628_v37 = vrot.slane %v613_v32, 4  ;;  %v632_v39 = vrot.slane %v625_v33, 4  ;;  %v721_v42 = vsel %vm440_vm5, %v720_v34, %v1078_v31  ;;  %v723_v43 = vsel %vm440_vm5, %v1079_v30, %v722_v35 }
 0x295   : > { %v627_v53 = vsel %vm440_vm5, 0.0, %v626_v36  ;;  %v631_v54 = vsel %vm440_vm5, 0.0, %v630_v38  ;;  %v727_v55 = vperm.slane %v721_v42, %v1201_v48  ;;  %v731_v56 = vperm.slane %v723_v43, %v1201_v48 }
 0x296   : > { %v629_v44 = vsel %vm440_vm5, 0.0, %v628_v37  ;;  %v633_v45 = vsel %vm440_vm5, 0.0, %v632_v39  ;;  %v634_v46 = vsel %vm440_vm5, %v628_v37, %v609_v24  ;;  %v645_v47 = vsel %vm440_vm5, %v632_v39, %v621_v25 }
 0x297   : > { %v638_v49 = vperm.slane %v634_v46, %v1201_v48  ;;  %v639_v50 = vrot.slane %v629_v44, 4  ;;  %v649_v51 = vperm.slane %v645_v47, %v1201_v48  ;;  %v650_v52 = vrot.slane %v633_v45, 4 }
 0x298   : > { %v732_v0 = vrot.slane %v727_v55, 4  ;;  %v735_v1 = vsel %vm440_vm5, %v727_v55, %v734_v40  ;;  %v744_v3 = vrot.slane %v731_v56, 4  ;;  %v747_v4 = vsel %vm440_vm5, %v731_v56, %v746_v41 }
 0x299   : > { %v640_v57 = vsel %vm440_vm5, %v639_v50, %v627_v53  ;;  %v651_v59 = vsel %vm440_vm5, %v650_v52, %v631_v54  ;;  %v658_v60 = vrot.slane %v638_v49, 4  ;;  %v670_v61 = vrot.slane %v649_v51, 4 }
 0x29a   : > { %v644_v62 = vperm.slane %v640_v57, %v1201_v48  ;;  %v655_v63 = vperm.slane %v651_v59, %v1201_v48  ;;  %v743_v2 = vperm.slane %v735_v1, %v1207_v58  ;;  %v733_v11 = vsel %vm440_vm5, %v732_v0, %v715_v26 }
 0x29b   : > { %v745_v12 = vsel %vm440_vm5, %v744_v3, %v719_v27  ;;  %v739_v15 = vperm.slane %v733_v11, %v1207_v58  ;;  %v755_v21 = vperm.slane %v747_v4, %v1207_v58 }
 0x29c   : > { %v656_v5 = vrot.slane %v644_v62, 4  ;;  %v659_v6 = vsel %vm440_vm5, %v644_v62, %v658_v60  ;;  %v668_v7 = vrot.slane %v655_v63, 4  ;;  %v671_v8 = vsel %vm440_vm5, %v655_v63, %v670_v61 }
 0x29d   : > { %v667_v9 = vperm.slane %v659_v6, %v1207_v58  ;;  %v679_v10 = vperm.slane %v671_v8, %v1207_v58  ;;  %v751_v16 = vperm.slane %v745_v12, %v1207_v58  ;;  %v756_v22 = vrot.slane %v739_v15, 4 }
 0x29e   : > { %v657_v13 = vsel %vm440_vm5, %v656_v5, %v638_v49  ;;  %v669_v14 = vsel %vm440_vm5, %v668_v7, %v649_v51  ;;  %v758_v23 = vrot.slane %v743_v2, 4  ;;  %v762_v35 = vrot.slane %v755_v21, 4 }
 0x29f   : > { %v663_v17 = vperm.slane %v657_v13, %v1207_v58  ;;  %v675_v18 = vperm.slane %v669_v14, %v1207_v58  ;;  %v684_v19 = vrot.slane %v679_v10, 4  ;;  %v686_v20 = vrot.slane %v667_v9, 4 }
 0x2a0   : > { %v760_v24 = vrot.slane %v751_v16, 4  ;;  %v759_v31 = vsel %vm440_vm5, 0.0, %v758_v23  ;;  %v757_v34 = vsel %vm440_vm5, 0.0, %v756_v22  ;;  %v764_v38 = vsel %vm440_vm5, %v758_v23, %v739_v15 }
 0x2a1   : > { %v680_v25 = vrot.slane %v675_v18, 4  ;;  %v682_v26 = vrot.slane %v663_v17, 4  ;;  %v685_v27 = vsel %vm440_vm5, %v684_v19, %v667_v9  ;;  %v687_v28 = vsel %vm440_vm5, %v679_v10, %v686_v20 }
 0x2a2   : > { %v690_v29 = vpack.c.bf16 %v685_v27, %v685_v27  ;;  %v691_v30 = vpack.c.bf16 %v687_v28, %v687_v28  ;;  %v769_v39 = vrot.slane %v759_v31, 4  ;;  %v761_v40 = vsel %vm440_vm5, 0.0, %v760_v24 }
 0x2a3   : > { %v681_v32 = vsel %vm440_vm5, %v680_v25, %v663_v17  ;;  %v683_v33 = vsel %vm440_vm5, %v675_v18, %v682_v26  ;;  %v763_v41 = vsel %vm440_vm5, 0.0, %v762_v35  ;;  %v768_v42 = vperm.slane %v764_v38, %v1201_v48 }
 0x2a4   : > { %v688_v36 = vpack.c.bf16 %v681_v32, %v681_v32  ;;  %v689_v37 = vpack.c.bf16 %v683_v33, %v683_v33  ;;  %694 = vst.msk [vmem:[%s339_s10 + $0x8] sm:$0xf] %vm554_vm6, %v690_v29  ;;  %v775_v43 = vsel %vm440_vm5, %v762_v35, %v751_v16  ;;  %v770_v44 = vsel %vm440_vm5, %v769_v39, %v757_v34 }
 0x2a5   : > { %695 = vst.msk [vmem:[%s339_s10 + $0xc] sm:$0xf] %vm554_vm6, %v691_v30  ;;  %v779_v45 = vperm.slane %v775_v43, %v1201_v48  ;;  %v780_v46 = vrot.slane %v763_v41, 4  ;;  %v774_v47 = vperm.slane %v770_v44, %v1201_v48  ;;  %v788_v49 = vrot.slane %v768_v42, 4 }
 0x2a6   : > { %692 = vst.msk [vmem:[%s339_s10] sm:$0xf] %vm554_vm6, %v688_v36 }
 0x2a7   : > { %693 = vst.msk [vmem:[%s339_s10 + $0x4] sm:$0xf] %vm554_vm6, %v689_v37  ;;  %v781_v50 = vsel %vm440_vm5, %v780_v46, %v761_v40  ;;  %v800_v51 = vrot.slane %v779_v45, 4  ;;  %v786_v53 = vrot.slane %v774_v47, 4  ;;  %v789_v54 = vsel %vm440_vm5, %v774_v47, %v788_v49 }
 0x2a8   : > { %v785_v52 = vperm.slane %v781_v50, %v1201_v48  ;;  %v797_v55 = vperm.slane %v789_v54, %v1207_v58 }
 0x2a9   : > { %v787_v56 = vsel %vm440_vm5, %v786_v53, %v768_v42 }
 0x2aa   : > { %v798_v57 = vrot.slane %v785_v52, 4  ;;  %v801_v59 = vsel %vm440_vm5, %v785_v52, %v800_v51  ;;  %v793_v60 = vperm.slane %v787_v56, %v1207_v58  ;;  %v816_v62 = vrot.slane %v797_v55, 4 }
 0x2ab   : > { %v809_v61 = vperm.slane %v801_v59, %v1207_v58 }
 0x2ac   : > { %v799_v63 = vsel %vm440_vm5, %v798_v57, %v779_v45  ;;  %v812_v0 = vrot.slane %v793_v60, 4 }
 0x2ad   : > { %v805_v48 = vperm.slane %v799_v63, %v1207_v58  ;;  %v814_v1 = vrot.slane %v809_v61, 4  ;;  %v817_v2 = vsel %vm440_vm5, %v809_v61, %v816_v62 }
 0x2ae   : > { %v821_v3 = vpack.c.bf16 %v817_v2, %v817_v2 }
 0x2af   : > { %v810_v4 = vrot.slane %v805_v48, 4  ;;  %v813_v5 = vsel %vm440_vm5, %v805_v48, %v812_v0  ;;  %v815_v6 = vsel %vm440_vm5, %v814_v1, %v797_v55 }
 0x2b0   : > { %v819_v7 = vpack.c.bf16 %v813_v5, %v813_v5  ;;  %v820_v8 = vpack.c.bf16 %v815_v6, %v815_v6  ;;  %825 = vst.msk [vmem:[%s347_s13 + $0xc] sm:$0xf] %vm554_vm6, %v821_v3 }
 0x2b1   : > { %v811_v9 = vsel %vm440_vm5, %v810_v4, %v793_v60 }
 0x2b2   : > { %v818_v10 = vpack.c.bf16 %v811_v9, %v811_v9  ;;  %823 = vst.msk [vmem:[%s347_s13 + $0x4] sm:$0xf] %vm554_vm6, %v819_v7 }
 0x2b3   : > { %824 = vst.msk [vmem:[%s347_s13 + $0x8] sm:$0xf] %vm554_vm6, %v820_v8 }
 0x2b4   : > { %822 = vst.msk [vmem:[%s347_s13] sm:$0xf] %vm554_vm6, %v818_v10 }
 0x2b5 PF: > { %s18_s26 = sadd.s32 1, %s1109_s26   ;;  %s1369_s24 = smov %s1105_s25 }
 0x2b6   : > { %p15_p5 = scmp.ge.s32.totalorder %s18_s26, 4   ;;  %s1370_s25 = smov %s1372_s27 }
 0x2b8   :  { %17 = sbr.rel (!%p15_p5) target bundleno = 2 (0x2), region = 94 }

// kernel: gpt2_forward.7
= control target key start
LH: loop header
LB: loop body
LE: loop exit
PB: predicated region body
PF: predicated region fallthrough
CT: control target
= control target key end

     0   :  { %s2062_s0 = inlined_call_operand.vmem [shape: bf16[2,8,32], index: 0, kind: input, shape index: {}]   ;;  %s2063_s1 = inlined_call_operand.vmem [shape: bf16[2,4,8,8], index: 1, kind: input, shape index: {}]   ;;  %s2064_s2 = inlined_call_operand.vmem [shape: bf16[2,4,8,8], index: 2, kind: input, shape index: {}]   ;;  %s2065_s3 = inlined_call_operand.vmem [shape: bf16[2,4,8,8], index: 3, kind: input, shape index: {}]   ;;  %s2066_s4 = inlined_call_operand.vmem [shape: f32[1,32], index: 4, kind: input, shape index: {}]   ;;  %s2067_s5 = inlined_call_operand.vmem [shape: f32[1,32], index: 5, kind: input, shape index: {}]   ;;  %s2068_s6 = inlined_call_operand.vmem [shape: bf16[32,128], index: 6, kind: input, shape index: {}]   ;;  %s2069_s7 = inlined_call_operand.vmem [shape: f32[1,128], index: 7, kind: input, shape index: {}]   ;;  %s2070_s8 = inlined_call_operand.vmem [shape: bf16[128,32], index: 8, kind: input, shape index: {}]   ;;  %s2071_s9 = inlined_call_operand.vmem [shape: f32[1,32], index: 9, kind: input, shape index: {}]   ;;  %s2072_s10 = inlined_call_operand.vmem [shape: f32[1,32], index: 10, kind: input, shape index: {}]   ;;  %s2073_s11 = inlined_call_operand.vmem [shape: f32[1,32], index: 11, kind: input, shape index: {}]   ;;  %s2074_s12 = inlined_call_operand.hbm [shape: f32[2,8,32], index: 12, kind: output, shape index: {}]  }
   0x1   :  { %2075 = sst [smem:[#allocation8_spill]] %s2062_s0 }
   0x2   :  { %2076 = sst [smem:[#allocation9_spill]] %s2063_s1 }
   0x3   :  { %2077 = sst [smem:[#allocation10_spill]] %s2064_s2 }
   0x4   :  { %2078 = sst [smem:[#allocation11_spill]] %s2065_s3 }
   0x5   :  { %17 = vsyncpa [#allocation6], 0 }
   0x6   :  { %19 = vsyncpa [#allocation6 + $0x1], 0  ;;  %s1761_s21 = smov 0   ;;  %s1763_s22 = smov 0  }
   0x7   :  { %s1765_s23 = smov 0   ;;  %s1767_s24 = smov 0  }
   0x8   :  { %s1769_s25 = smov 0   ;;  %s1771_s26 = smov 0  }
   0x9 LB: > { %s1423_s27 = sadd.s32 4294967295, %s1685_s26   ;;  %s1424_s28 = sadd.s32 4294967294, %s1685_s26   ;;  %s1685_s26 = sphi %s1771_s26, %s25_s26   ;;  %s1681_s25 = sphi %s1769_s25, %s2089_s25   ;;  %s1677_s24 = sphi %s1767_s24, %s2088_s24   ;;  %s1673_s23 = sphi %s1765_s23, %s2087_s23   ;;  %s1669_s22 = sphi %s1763_s22, %s2086_s22   ;;  %s1665_s21 = sphi %s1761_s21, %s2085_s21  }
   0xa   : > { %s44_s29 = sadd.s32 1, %s1681_s25  ;;  %s341_s30 = sadd.s32 1, %s1673_s23 }
   0xb   : > { %p46_p0 = scmp.ge.s32.totalorder %s44_s29, 2  ;;  %p351_p1 = scmp.ne.s32.totalorder %s1673_s23, %s1669_s22 }
   0xc   : > { %p352_p2 = scmp.eq.s32.totalorder %s1423_s27, 1  ;;  %p357_p3 = scmp.ne.s32.totalorder %s1669_s22, %s1665_s21 }
   0xd   : > { %s2091_s29 = smov (%p46_p0, %s44_s29), 0  ;;  %p358_p5 = scmp.eq.s32.totalorder %s1424_s28, 1 }
   0xe   : > { %p1801_p4 = por %p352_p2, %p351_p1  ;;  %s336_s14 = ssub.s32 %s1681_s25, %s2091_s29 }
   0xf   : > { %p1427_p6 = scmp.ge.s32.totalorder %s1685_s26, 1  ;;  %p339_p7 = scmp.eq.s32.totalorder %s336_s14, 0 }
  0x10   : > { %p1808_p8 = por %p358_p5, %p357_p3  ;;  %p451_p9 = scmp.lt.s32.totalorder %s1685_s26, 3 }
  0x11   : > { %s1814_s16 = scalar_select %p339_p7, %s1673_s23, %s341_s30  }
  0x12   : > { %p452_p10 = pnand %p1427_p6, %p451_p9 }
  0x13   : > { %p523_p11 = scmp.lt.s32.totalorder (!%p452_p10), %s1677_s24, 1  ;;  %s2081_s2 = sld [smem:[#allocation10_spill]] (!%p452_p10) }
  0x14   : > { %455 = sbr.rel (%p452_p10) target bundleno = 1645 (0x66d), region = 68  ;;  %s2082_s1 = sld [smem:[#allocation9_spill]] (!%p452_p10) }
  0x15   : > { %s2083_s3 = sld [smem:[#allocation11_spill]] (!%p452_p10)  ;;  %s1693_s28 = smov (!%p452_p10), 24  }
  0x16   : > { %s1694_s30 = smov (!%p452_p10), 8   ;;  %s2084_s0 = sld [smem:[#allocation8_spill]] (!%p452_p10) }
  0x19   : > { %s1818_s17 = scalar_select %p523_p11, %s1677_s24, 1  ;;  %vm576_vm0 = vcmask 64512   ;;  %v675_v12 = vlaneseq  ;;  %vm567_vm2 = vcmask 7168   ;;  %v1687_v18 = vmov -inf  }
  0x1a   : > { %568 = vst.msk [vmem:[#allocation2] sm:$0xff] %vm567_vm2, %v1687_v18  ;;  %v1688_v32 = vmov 0   ;;  %v1689_v33 = vmov 0.0   ;;  %vm819_vm3 = vcmask 1043456   ;;  %vm945_vm4 = vcmask 1047556  }
  0x1b   : > { %s1821_s18 = sshll.u32 %s1818_s17, 4  ;;  %v676_v13 = vshrl.u32 %v675_v12, 7  ;;  %v681_v14 = vand.u32 127, %v675_v12  ;;  %569 = vst.msk [vmem:[#allocation2 + $0x8] sm:$0xff] %vm567_vm2, %v1687_v18  ;;  %1567 = vset.pattern.permute.xlu0 %v1688_v32  ;;  %1568 = vset.pattern.permute.xlu1 %v1688_v32  ;;  %vm1069_vm5 = vcmask 130048   ;;  %vm1071_vm6 = vcmask 195584  }
  0x1c   : > { %s547_s27 = scalar_lea.vmem %s2081_s2, %s1821_s18  ;;  %s537_s14 = scalar_lea.vmem %s2082_s1, %s1821_s18  ;;  %570 = vst.msk [vmem:[#allocation2 + $0x10] sm:$0xff] %vm567_vm2, %v1687_v18  ;;  %1566 = vset.pattern.permute.xlu2 %v1688_v32  ;;  %vm1078_vm7 = vcmask 261120  }
  0x1d   : > { %v589_v0 = vld [vmem:[%s547_s27] sm:$0xf]  ;;  %v590_v1 = vld [vmem:[%s547_s27 + $0x4] sm:$0xf]  ;;  %v591_v4 = vld [vmem:[%s547_s27 + $0x8] sm:$0xf]  ;;  %vm684_vm1 = vcmp.le.s32.totalorder %v681_v14, %v676_v13 }
  0x1e   : > { %v602_v2 = vsel %vm576_vm0, %v589_v0, 0  ;;  %v621_v3 = vsel %vm576_vm0, %v590_v1, 0  ;;  %v640_v5 = vsel %vm576_vm0, %v591_v4, 0  ;;  %v592_v6 = vld [vmem:[%s547_s27 + $0xc] sm:$0xf]  ;;  %571 = vst.msk [vmem:[#allocation2 + $0x18] sm:$0xff] %vm567_vm2, %v1687_v18  ;;  %s559_s27 = scalar_lea.vmem %s2083_s3, %s1821_s18 }
  0x1f   : > { %611 = vmatpush.bf16.xpose.msra.mxu0 %v602_v2  ;;  %630 = vmatpush.bf16.xpose.msra.mxu2 %v621_v3  ;;  %v659_v7 = vsel %vm576_vm0, %v592_v6, 0  ;;  %v585_v8 = vld [vmem:[%s537_s14] sm:$0xf]  ;;  %v586_v9 = vld [vmem:[%s537_s14 + $0x4] sm:$0xf]  ;;  %579 = vst.msk [vmem:[#allocation4 + $0x10] sm:$0xff] %vm576_vm0, %v1689_v33 }
  0x20   : > { %668 = vmatpush.bf16.xpose.msra.mxu3 %v659_v7  ;;  %v588_v10 = vld [vmem:[%s537_s14 + $0xc] sm:$0xf]  ;;  %v587_v11 = vld [vmem:[%s537_s14 + $0x8] sm:$0xf]  ;;  %572 = vst.msk [vmem:[#allocation3] sm:$0xff] %vm567_vm2, %v1689_v33  ;;  %s1692_s18 = smov 16  }
  0x21   : > { %573 = vst.msk [vmem:[#allocation3 + $0x8] sm:$0xff] %vm567_vm2, %v1689_v33  ;;  %v1871_v34 = vld [vmem:[#allocation2] sm:$0xff]  ;;  %v595_v52 = vld [vmem:[%s559_s27 + $0x8] sm:$0xf]  ;;  %v596_v56 = vld [vmem:[%s559_s27 + $0xc] sm:$0xf] }
  0x22   : > { %574 = vst.msk [vmem:[#allocation3 + $0x10] sm:$0xff] %vm567_vm2, %v1689_v33  ;;  %v1881_v38 = vld [vmem:[#allocation2 + $0x8] sm:$0xff]  ;;  %v859_v53 = vsel %vm819_vm3, %v595_v52, 0  ;;  %v593_v54 = vld [vmem:[%s559_s27] sm:$0xf]  ;;  %v878_v58 = vsel %vm819_vm3, %v596_v56, 0 }
  0x23   : > { %575 = vst.msk [vmem:[#allocation3 + $0x18] sm:$0xff] %vm567_vm2, %v1689_v33  ;;  %v693_v42 = vld [vmem:[#allocation2 + $0x10] sm:$0xff]  ;;  %v821_v55 = vsel %vm819_vm3, %v593_v54, 0  ;;  %v594_v57 = vld [vmem:[%s559_s27 + $0x4] sm:$0xf]  ;;  %s1429_s14 = sshll.u32 %s1818_s17, 2 }
  0x24   : > { %577 = vst.msk [vmem:[#allocation4] sm:$0xff] %vm576_vm0, %v1689_v33  ;;  %v840_v59 = vsel %vm819_vm3, %v594_v57, 0  ;;  %s529_s27 = scalar_lea.vmem %s2084_s0, %s1429_s14  ;;  %s520_s17 = sand.u32 1, %s1669_s22  }
  0x25   : > { %578 = vst.msk [vmem:[#allocation4 + $0x8] sm:$0xff] %vm576_vm0, %v1689_v33  ;;  %v1892_v47 = vld [vmem:[#allocation2 + $0x18] sm:$0xff]  ;;  %849 = vmatpush.bf16.msra.mxu1 %v840_v59 }
  0x26   : > { %1436 = vmatmul.msk.bf16.vlgmr.msra.gmra.mxu0 %vm576_vm0, %v585_v8  ;;  %1437 = vmatmul.msk.bf16.vlgmr.msra.gmra.mxu2 %vm576_vm0, %v586_v9  ;;  %580 = vst.msk [vmem:[#allocation4 + $0x18] sm:$0xff] %vm576_vm0, %v1689_v33 }
  0x27   : > { %649 = vmatpush.bf16.xpose.msrb.mxu2 %v640_v5  ;;  %1439 = vmatmul.msk.bf16.vlgmr.msra.gmra.mxu3 %vm576_vm0, %v588_v10 }
  0x28   : > { %830 = vmatpush.bf16.msrb.mxu0 %v821_v55  ;;  %887 = vmatpush.bf16.msrb.mxu3 %v878_v58  ;;  %v756_v32 = vld [vmem:[#allocation3 + $0x8] sm:$0xff] }
  0x2b   : > { %v784_v56 = vld [vmem:[#allocation4] sm:$0xff] }
  0x2d   : > { %v787_v55 = vld [vmem:[#allocation4 + $0x18] sm:$0xff] }
  0x2f   : > { %868 = vmatpush.bf16.msra.mxu2 %v859_v53 }
  0x36   : > { %1438 = vmatmul.msk.bf16.vlgmr.msrb.gmra.mxu2 %vm576_vm0, %v587_v11 }
  0xa3   : > { %v613_v15 = vpop.f32.mrf.mxu0 }
  0xa4   : > { %v1840_v16 = vsel %vm684_vm1, %v613_v15, -10000.0 }
  0xa5   : > { %v695_v17 = vsel %vm576_vm0, %v1840_v16, -inf }
  0xa6   : > { %696 = vmax.xlane.f32.xlu1 %v695_v17 }
  0xa9   : > { %v632_v19 = vpop.f32.mrf.mxu2 }
  0xaa   : > { %v1849_v20 = vsel %vm684_vm1, %v632_v19, -10000.0  ;;  %v670_v23 = vpop.f32.mrf.mxu3 }
  0xab   : > { %v615_v21 = vpop.f32.mrf.mxu0  ;;  %v698_v22 = vsel %vm576_vm0, %v1849_v20, -inf  ;;  %v1859_v29 = vsel %vm684_vm1, %v670_v23, -10000.0 }
  0xac   : > { %v704_v30 = vsel %vm576_vm0, %v1859_v29, -inf }
  0xae   : > { %699 = vmax.xlane.f32.xlu1 %v698_v22 }
  0xb1   : > { %v634_v24 = vpop.f32.mrf.mxu2 }
  0xb2   : > { %v672_v25 = vpop.f32.mrf.mxu3 }
  0xb9   : > { %v651_v26 = vpop.f32.mrf.mxu2 }
  0xba   : > { %v1854_v27 = vsel %vm684_vm1, %v651_v26, -10000.0  ;;  %v755_v26 = vld [vmem:[#allocation3] sm:$0xff] }
  0xbb   : > { %v701_v28 = vsel %vm576_vm0, %v1854_v27, -inf }
  0xbc   : > { %702 = vmax.xlane.f32.xlu0 %v701_v28 }
  0xc1   : > { %v653_v31 = vpop.f32.mrf.mxu2 }
  0xc2   : > { %v758_v31 = vld [vmem:[#allocation3 + $0x18] sm:$0xff] }
  0xc4   : > { %705 = vmax.xlane.f32.xlu0 %v704_v30 }
 0x119   : > { %v697_v35 = vpop.xlane.xlu1 %696 }
 0x11a   : > { %v1874_v36 = vmax.f32 %v1871_v34, %v697_v35 }
 0x11c   : > { %v711_v37 = vsub.f32 %v1871_v34, %v1874_v36  ;;  %901 = vst.msk [vmem:[#allocation2] sm:$0xff] %vm567_vm2, %v1874_v36  ;;  %725 = vperm.xlu0 %1567, %v1874_v36  }
 0x11e   : > { %v715_v19 = vmul.f32 1.442695, %v711_v37 }
 0x121   : > { %v700_v39 = vpop.xlane.xlu1 %699 }
 0x122   : > { %v1884_v40 = vmax.f32 %v1881_v38, %v700_v39 }
 0x124   : > { %v712_v41 = vsub.f32 %v1881_v38, %v1884_v40  ;;  %902 = vst.msk [vmem:[#allocation2 + $0x8] sm:$0xff] %vm567_vm2, %v1884_v40  ;;  %730 = vperm.xlu1 %1568, %v1884_v40   ;;  %v786_v40 = vld [vmem:[#allocation4 + $0x10] sm:$0xff] }
 0x126   : > { %v717_v23 = vmul.f32 1.442695, %v712_v41 }
 0x12f   : > { %v703_v43 = vpop.xlane.xlu0 %702 }
 0x130   : > { %v709_v44 = vmax.f32 %v693_v42, %v703_v43 }
 0x132   : > { %v713_v45 = vsub.f32 %v693_v42, %v709_v44  ;;  %903 = vst.msk [vmem:[#allocation2 + $0x10] sm:$0xff] %vm567_vm2, %v709_v44  ;;  %735 = vperm.xlu2 %1566, %v709_v44   ;;  %v757_v42 = vld [vmem:[#allocation3 + $0x10] sm:$0xff] }
 0x134   : > { %v719_v46 = vmul.f32 1.442695, %v713_v45 }
 0x136   : > { %1575 = vpow2.f32 %v719_v46 }
 0x137   : > { %v706_v48 = vpop.xlane.xlu0 %705 }
 0x138   : > { %v710_v49 = vmax.f32 %v1892_v47, %v706_v48 }
 0x13a   : > { %v714_v50 = vsub.f32 %v1892_v47, %v710_v49  ;;  %904 = vst.msk [vmem:[#allocation2 + $0x18] sm:$0xff] %vm567_vm2, %v710_v49  ;;  %740 = vperm.xlu2 %1566, %v710_v49  }
 0x13c   : > { %v1897_v51 = vpop.eup %1575  ;;  %v721_v22 = vmul.f32 1.442695, %v714_v50 }
 0x13d   : > { %v761_v45 = vmul.f32 %v1897_v51, %v757_v42 }
 0x142   : > { %800 = vperm.xlu2 %1566, %v1897_v51  }
 0x18c   : > { %v736_v60 = vpop.permute.xlu2 %735 }
 0x18d   : > { %v745_v61 = vsub.f32 %v1854_v27, %v736_v60 }
 0x18e   : > { %v726_v62 = vpop.permute.xlu0 %725 }
 0x18f   : > { %v751_v63 = vmul.f32 1.442695, %v745_v61  ;;  %v743_v0 = vsub.f32 %v1840_v16, %v726_v62 }
 0x191   : > { %1577 = vpow2.f32 %v751_v63  ;;  %v747_v1 = vmul.f32 1.442695, %v743_v0 }
 0x193   : > { %1579 = vpow2.f32 %v747_v1 }
 0x194   : > { %v741_v2 = vpop.permute.xlu2 %740 }
 0x195   : > { %v746_v3 = vsub.f32 %v1859_v29, %v741_v2 }
 0x196   : > { %v731_v4 = vpop.permute.xlu1 %730 }
 0x197   : > { %v1578_v5 = vpop.eup %1577  ;;  %v753_v6 = vmul.f32 1.442695, %v746_v3  ;;  %v744_v7 = vsub.f32 %v1849_v20, %v731_v4  ;;  %v785_v4 = vld [vmem:[#allocation4 + $0x8] sm:$0xff] }
 0x198   : > { %v814_v8 = vpack.c.bf16 %v1578_v5, %v1578_v5  ;;  %v769_v20 = vsel %vm576_vm0, %v1578_v5, 0.0 }
 0x199   : > { %v1580_v9 = vpop.eup %1579  ;;  %1581 = vpow2.f32 %v753_v6  ;;  %v749_v10 = vmul.f32 1.442695, %v744_v7 }
 0x19a   : > { %1442 = vmatmul.msk.bf16.vlgmr.msra.gmra.mxu2 %vm576_vm0, %v814_v8  ;;  %v763_v11 = vsel %vm576_vm0, %v1580_v9, 0.0  ;;  %v812_v12 = vpack.c.bf16 %v1580_v9, %v1580_v9 }
 0x19b   : > { %1583 = vpow2.f32 %v749_v10  ;;  %764 = vadd.xlane.f32.xlu1 %v763_v11 }
 0x19c   : > { %1440 = vmatmul.msk.bf16.vlgmr.msrb.gmra.mxu0 %vm576_vm0, %v812_v12  ;;  %1585 = vpow2.f32 %v715_v19  ;;  %v801_v28 = vpop.permute.xlu2 %800 }
 0x19d   : > { %1587 = vpow2.f32 %v721_v22  ;;  %v810_v43 = vmul.f32 %v801_v28, %v786_v40 }
 0x19e   : > { %1589 = vpow2.f32 %v717_v23 }
 0x19f   : > { %v1582_v13 = vpop.eup %1581 }
 0x1a0   : > { %v772_v14 = vsel %vm576_vm0, %v1582_v13, 0.0  ;;  %v815_v15 = vpack.c.bf16 %v1582_v13, %v1582_v13 }
 0x1a1   : > { %v1584_v16 = vpop.eup %1583  ;;  %773 = vadd.xlane.f32.xlu0 %v772_v14 }
 0x1a2   : > { %1443 = vmatmul.msk.bf16.vlgmr.msrb.gmra.mxu3 %vm576_vm0, %v815_v15  ;;  %v766_v17 = vsel %vm576_vm0, %v1584_v16, 0.0  ;;  %v813_v18 = vpack.c.bf16 %v1584_v16, %v1584_v16  ;;  %v1586_v21 = vpop.eup %1585 }
 0x1a3   : > { %767 = vadd.xlane.f32.xlu2 %v766_v17  ;;  %v1588_v24 = vpop.eup %1587  ;;  %v759_v27 = vmul.f32 %v1586_v21, %v755_v26  ;;  %v1690_v17 = vmov 1983009808   ;;  %v1691_v26 = vmov 1934713408  }
 0x1a4   : > { %1441 = vmatmul.msk.bf16.vlgmr.msra.gmra.mxu1 %vm576_vm0, %v813_v18  ;;  %v1590_v25 = vpop.eup %1589  ;;  %v762_v33 = vmul.f32 %v1588_v24, %v758_v31  ;;  %v950_v18 = vunpack.c.l.s4 %v1690_v17 }
 0x1a5   : > { %v760_v36 = vmul.f32 %v1590_v25, %v756_v32 }
 0x1a6   : > { %v951_v22 = vunpack.c.0.s8 %v950_v18 }
 0x1ab   : > { %770 = vadd.xlane.f32.xlu2 %v769_v20 }
 0x1b4   : > { %790 = vperm.xlu1 %1568, %v1586_v21  }
 0x1c3   : > { %805 = vperm.xlu2 %1566, %v1588_v24  }
 0x1cb   : > { %795 = vperm.xlu2 %1566, %v1590_v25  }
 0x20e   : > { %v765_v29 = vpop.xlane.xlu1 %764 }
 0x20f   : > { %v775_v30 = vadd.f32 %v765_v29, %v759_v27  ;;  %v974_v27 = vunpack.c.l.s4 %v1691_v26  ;;  %v1073_v26 = vld [vmem:[%s529_s27] sm:$0xf] }
 0x211   : > { %780 = vst.msk [vmem:[#allocation3] sm:$0xff] %vm567_vm2, %v775_v30 }
 0x214   : > { %v774_v34 = vpop.xlane.xlu0 %773 }
 0x215   : > { %v778_v35 = vadd.f32 %v774_v34, %v762_v33  ;;  %v975_v34 = vunpack.c.0.s8 %v974_v27 }
 0x216   : > { %v768_v37 = vpop.xlane.xlu2 %767 }
 0x217   : > { %783 = vst.msk [vmem:[#allocation3 + $0x18] sm:$0xff] %vm567_vm2, %v778_v35  ;;  %v776_v38 = vadd.f32 %v768_v37, %v760_v36 }
 0x218   : > { %v912_v39 = vld [vmem:[#allocation3] sm:$0xff] }
 0x219   : > { %781 = vst.msk [vmem:[#allocation3 + $0x8] sm:$0xff] %vm567_vm2, %v776_v38  ;;  %v832_v41 = vpop.f32.mrf.mxu0  ;;  %1591 = vrcp.f32 %v912_v39 }
 0x21d   : > { %v870_v44 = vpop.f32.mrf.mxu2 }
 0x21e   : > { %v895_v46 = vadd.f32 %v870_v44, %v810_v43  ;;  %v771_v47 = vpop.xlane.xlu2 %770  ;;  %v915_v48 = vld [vmem:[#allocation3 + $0x18] sm:$0xff] }
 0x21f   : > { %v1592_v49 = vpop.eup %1591  ;;  %v777_v50 = vadd.f32 %v771_v47, %v761_v45  ;;  %1593 = vrcp.f32 %v915_v48 }
 0x220   : > { %899 = vst.msk [vmem:[#allocation4 + $0x10] sm:$0xff] %vm576_vm0, %v895_v46  ;;  %922 = vperm.xlu2 %1566, %v1592_v49   ;;  %v913_v52 = vld [vmem:[#allocation3 + $0x8] sm:$0xff] }
 0x221   : > { %782 = vst.msk [vmem:[#allocation3 + $0x10] sm:$0xff] %vm567_vm2, %v777_v50  ;;  %v834_v53 = vpop.f32.mrf.mxu0  ;;  %v851_v54 = vpop.f32.mrf.mxu1  ;;  %1595 = vrcp.f32 %v913_v52 }
 0x225   : > { %v1594_v57 = vpop.eup %1593  ;;  %v872_v58 = vpop.f32.mrf.mxu2 }
 0x226   : > { %v889_v51 = vpop.f32.mrf.mxu3  ;;  %937 = vperm.xlu1 %1568, %v1594_v57   ;;  %v806_v59 = vpop.permute.xlu2 %805 }
 0x227   : > { %v791_v60 = vpop.permute.xlu1 %790  ;;  %v1596_v61 = vpop.eup %1595  ;;  %v811_v62 = vmul.f32 %v806_v59, %v787_v55  ;;  %v910_v29 = vld [vmem:[#allocation4 + $0x10] sm:$0xff] }
 0x228   : > { %v808_v63 = vmul.f32 %v791_v60, %v784_v56  ;;  %927 = vperm.xlu2 %1566, %v1596_v61   ;;  %v914_v0 = vld [vmem:[#allocation3 + $0x10] sm:$0xff] }
 0x229   : > { %v896_v1 = vadd.f32 %v889_v51, %v811_v62  ;;  %v853_v3 = vpop.f32.mrf.mxu1  ;;  %1597 = vrcp.f32 %v914_v0 }
 0x22a   : > { %v893_v2 = vadd.f32 %v832_v41, %v808_v63 }
 0x22b   : > { %900 = vst.msk [vmem:[#allocation4 + $0x18] sm:$0xff] %vm576_vm0, %v896_v1 }
 0x22c   : > { %897 = vst.msk [vmem:[#allocation4] sm:$0xff] %vm576_vm0, %v893_v2 }
 0x22e   : > { %v891_v5 = vpop.f32.mrf.mxu3  ;;  %v796_v6 = vpop.permute.xlu2 %795 }
 0x22f   : > { %v1598_v7 = vpop.eup %1597  ;;  %v809_v8 = vmul.f32 %v796_v6, %v785_v4 }
 0x230   : > { %932 = vperm.xlu0 %1567, %v1598_v7  }
 0x231   : > { %v894_v9 = vadd.f32 %v851_v54, %v809_v8 }
 0x232   : > { %v911_v13 = vld [vmem:[#allocation4 + $0x18] sm:$0xff] }
 0x233   : > { %898 = vst.msk [vmem:[#allocation4 + $0x8] sm:$0xff] %vm576_vm0, %v894_v9  ;;  %v908_v21 = vld [vmem:[#allocation4] sm:$0xff] }
 0x23a   : > { %v909_v12 = vld [vmem:[#allocation4 + $0x8] sm:$0xff] }
 0x27a   : > { %v923_v10 = vpop.permute.xlu2 %922 }
 0x27b   : > { %v940_v23 = vmul.f32 %v923_v10, %v908_v21 }
 0x27d   : > { %v947_v31 = vrot.slane %v940_v23, 4 }
 0x282   : > { %v928_v11 = vpop.permute.xlu2 %927 }
 0x283   : > { %v941_v15 = vmul.f32 %v928_v11, %v909_v12 }
 0x285   : > { %v959_v19 = vrot.slane %v941_v15, 4 }
 0x298   : > { %v938_v14 = vpop.permute.xlu1 %937 }
 0x299   : > { %v943_v16 = vmul.f32 %v938_v14, %v911_v13 }
 0x29b   : > { %v957_v20 = vrot.slane %v943_v16, 4  ;;  %v960_v24 = vsel %vm945_vm4, %v943_v16, %v959_v19 }
 0x29c   : > { %v968_v28 = vperm.slane %v960_v24, %v951_v22 }
 0x29d   : > { %v958_v25 = vsel %vm945_vm4, %v957_v20, %v941_v15 }
 0x29e   : > { %v964_v33 = vperm.slane %v958_v25, %v951_v22  ;;  %v981_v37 = vrot.slane %v968_v28, 4 }
 0x2a0   : > { %v969_v40 = vrot.slane %v964_v33, 4 }
 0x2a2   : > { %v933_v30 = vpop.permute.xlu0 %932 }
 0x2a3   : > { %v942_v32 = vmul.f32 %v933_v30, %v910_v29 }
 0x2a5   : > { %v944_v35 = vrot.slane %v942_v32, 4  ;;  %v948_v36 = vsel %vm945_vm4, %v942_v32, %v947_v31 }
 0x2a6   : > { %v956_v38 = vperm.slane %v948_v36, %v951_v22  ;;  %v1695_v36 = vmov 32.0  }
 0x2a7   : > { %v946_v39 = vsel %vm945_vm4, %v944_v35, %v940_v23  ;;  %1599 = vrcp.f32 %v1695_v36 }
 0x2a8   : > { %v952_v41 = vperm.slane %v946_v39, %v951_v22  ;;  %v982_v42 = vsel %vm945_vm4, %v981_v37, %v956_v38  ;;  %v983_v43 = vrot.slane %v956_v38, 4 }
 0x2a9   : > { %v988_v44 = vperm.slane %v982_v42, %v975_v34 }
 0x2aa   : > { %v970_v45 = vsel %vm945_vm4, %v969_v40, %v952_v41  ;;  %v971_v46 = vrot.slane %v952_v41, 4  ;;  %v984_v47 = vsel %vm945_vm4, %v968_v28, %v983_v43  ;;  %v1074_v28 = vunpack.c.l.bf16 %v1073_v26 }
 0x2ab   : > { %v976_v48 = vperm.slane %v970_v45, %v975_v34  ;;  %v992_v49 = vperm.slane %v984_v47, %v975_v34  ;;  %v997_v53 = vrot.slane %v988_v44, 4 }
 0x2ac   : > { %v972_v50 = vsel %vm945_vm4, %v964_v33, %v971_v46 }
 0x2ad   : > { %v980_v52 = vperm.slane %v972_v50, %v975_v34  ;;  %v999_v54 = vrot.slane %v992_v49, 4  ;;  %v993_v55 = vrot.slane %v976_v48, 4  ;;  %v998_v60 = vsel %vm945_vm4, 0.0, %v997_v53  ;;  %v1600_v37 = vpop.eup %1599  ;;  %v1492_v49 = vld [vmem:[%s2068_s6] sm:$0xff]  ;;  %v1501_v50 = vld [vmem:[%s2070_s8 + $0x38] sm:$0xff] }
 0x2ae   : > { %v1083_v38 = vmul.f32 32.0, %v1600_v37  ;;  %vm1087_vm8 = vweird.f32 %v1600_v37  ;;  %1231 = vmatpush.bf16.msrb.mxu1 %v1501_v50 }
 0x2af   : > { %v995_v56 = vrot.slane %v980_v52, 4  ;;  %v1000_v57 = vsel %vm945_vm4, 0.0, %v999_v54  ;;  %v1012_v58 = vsel %vm945_vm4, %v999_v54, %v988_v44  ;;  %v994_v3 = vsel %vm945_vm4, 0.0, %v993_v55  ;;  %v1500_v54 = vld [vmem:[%s2070_s8 + $0x30] sm:$0xff] }
 0x2b0   : > { %v1017_v51 = vrot.slane %v1000_v57, 4  ;;  %v1016_v59 = vperm.slane %v1012_v58, %v951_v22  ;;  %v1084_v39 = vsub.f32 1.0, %v1083_v38 }
 0x2b1   : > { %v996_v61 = vsel %vm945_vm4, 0.0, %v995_v56  ;;  %v1001_v62 = vsel %vm945_vm4, %v995_v56, %v976_v48  ;;  %v1493_v48 = vld [vmem:[%s2068_s6 + $0x8] sm:$0xff] }
 0x2b2   : > { %v1005_v63 = vperm.slane %v1001_v62, %v951_v22  ;;  %v1006_v0 = vrot.slane %v996_v61, 4  ;;  %v1018_v1 = vsel %vm945_vm4, %v1017_v51, %v998_v60  ;;  %v1037_v2 = vrot.slane %v1016_v59, 4  ;;  %1146 = vmatpush.bf16.msra.mxu0 %v1493_v48  ;;  %1232 = vmatpush.bf16.msrb.mxu1 %v1500_v54  ;;  %v1569_v61 = vld [vmem:[%s2066_s4] ss:$0 sm:$0xff] }
 0x2b3   : > { %v1022_v4 = vperm.slane %v1018_v1, %v951_v22  ;;  %v1085_v40 = vmul.f32 %v1600_v37, %v1084_v39 }
 0x2b4   : > { %v1007_v5 = vsel %vm945_vm4, %v1006_v0, %v994_v3  ;;  %v1025_v6 = vrot.slane %v1005_v63, 4  ;;  %v1570_v0 = vld [vmem:[%s2067_s5] ss:$0 sm:$0xff] }
 0x2b5   : > { %v1011_v7 = vperm.slane %v1007_v5, %v951_v22  ;;  %v1038_v8 = vsel %vm945_vm4, %v1022_v4, %v1037_v2  ;;  %v1035_v9 = vrot.slane %v1022_v4, 4  ;;  %v1086_v41 = vadd.f32 %v1600_v37, %v1085_v40  ;;  %v1499_v4 = vld [vmem:[%s2070_s8 + $0x28] sm:$0xff]  ;;  %v1498_v5 = vld [vmem:[%s2070_s8 + $0x20] sm:$0xff] }
 0x2b6   : > { %v1046_v10 = vperm.slane %v1038_v8, %v975_v34  ;;  %1147 = vmatpush.bf16.msra.mxu0 %v1492_v49  ;;  %1233 = vmatpush.bf16.msrb.mxu1 %v1499_v4  ;;  %v1495_v8 = vld [vmem:[%s2070_s8 + $0x8] sm:$0xff] }
 0x2b7   : > { %v1026_v11 = vsel %vm945_vm4, %v1011_v7, %v1025_v6  ;;  %v1023_v12 = vrot.slane %v1011_v7, 4  ;;  %v1036_v13 = vsel %vm945_vm4, %v1035_v9, %v1016_v59  ;;  %v1964_v42 = vsel %vm1087_vm8, %v1600_v37, %v1086_v41  ;;  %v1497_v6 = vld [vmem:[%s2070_s8 + $0x18] sm:$0xff]  ;;  %v1496_v7 = vld [vmem:[%s2070_s8 + $0x10] sm:$0xff]  ;;  %v1494_v9 = vld [vmem:[%s2070_s8] sm:$0xff] }
 0x2b8   : > { %v1034_v14 = vperm.slane %v1026_v11, %v975_v34  ;;  %v1051_v15 = vrot.slane %v1046_v10, 4  ;;  %v1042_v16 = vperm.slane %v1036_v13, %v975_v34 }
 0x2b9   : > { %v1024_v17 = vsel %vm945_vm4, %v1023_v12, %v1005_v63 }
 0x2ba   : > { %v1052_v18 = vsel %vm945_vm4, %v1051_v15, %v1034_v14  ;;  %v1053_v19 = vrot.slane %v1034_v14, 4  ;;  %v1030_v20 = vperm.slane %v1024_v17, %v975_v34  ;;  %v1047_v21 = vrot.slane %v1042_v16, 4  ;;  %1234 = vmatpush.bf16.msrb.mxu1 %v1498_v5 }
 0x2bb   : > { %1060 = vrot.lane.b32.xlu0 %v1052_v18, %s1692_s18  ;;  %s1428_s18 = sshll.u32 %s520_s17, 3 }
 0x2bc   : > { %v1054_v22 = vsel %vm945_vm4, %v1046_v10, %v1053_v19  ;;  %v1049_v23 = vrot.slane %v1030_v20, 4  ;;  %v1048_v24 = vsel %vm945_vm4, %v1047_v21, %v1030_v20  ;;  %v1571_v10 = vld [vmem:[%s2069_s7] ss:$0 sm:$0xff]  ;;  %s522_s2 = scalar_lea.vmem [#allocation5], %s1428_s18  ;;  %s1627_s18 = scalar_lea.hbm %s2074_s12, 16 }
 0x2bd   : > { %1064 = vrot.lane.b32.xlu2 %v1054_v22, %s1693_s28  ;;  %s1486_s28 = sshll.u32 %s1677_s24, 3  ;;  %s1292_s24 = sshll.u32 %s522_s2, 4  ;;  %s1293_s24 = int_to_ptr.vmem [resolvable:$true] %s1292_s24 }
 0x2be   : > { %v1050_v25 = vsel %vm945_vm4, %v1042_v16, %v1049_v23  ;;  %1235 = vmatpush.bf16.msrb.mxu1 %v1497_v6  ;;  %s1290_s27 = scalar_lea.hbm %s2074_s12, %s1486_s28 }
 0x2bf   : > { %1056 = vrot.lane.b32.xlu1 %v1050_v25, %s1694_s30  ;;  %s1294_s3 = sshll.u32 %s1290_s27, 4  ;;  %s1279_s30 = scalar_lea.sflag [#allocation6], %s520_s17  ;;  %s1295_s3 = int_to_ptr.hbm [resolvable:$true] %s1294_s3 }
 0x2c0   : > { %s1621_s14 = sshra.s32 %s1295_s3, 4  ;;  %s1622_s14 = int_to_ptr.hbm [resolvable:$true] %s1621_s14 }
 0x2c1   : > { %s1623_s28 = scalar_lea.hbm %s1622_s14, 8  ;;  %p1628_p1 = scmp.lt.s32.totalorder %s1622_s14, %s2074_s12 }
 0x2c2   : > { %1236 = vmatpush.bf16.msrb.mxu1 %v1496_v7  ;;  %p1624_p12 = scmp.ne.s32.totalorder %s1622_s14, %s1623_s28  ;;  %p1629_p2 = scmp.lt.s32.totalorder %s1627_s18, %s1623_s28 }
 0x2c4   : > { %p1625_p13 = pnand %p1624_p12, %p1801_p4  ;;  %p1630_p3 = por %p1629_p2, %p1628_p1 }
 0x2c6   : > { %1237 = vmatpush.bf16.msrb.mxu1 %v1495_v8  ;;  %p1626_p0 = pneg %p1625_p13 }
 0x2c8   : > { %p1631_p5 = pnand %p1630_p3, %p1626_p0 }
 0x2ca   : > { %1238 = vmatpush.bf16.msrb.mxu1 %v1494_v9 }
 0x317   : > { %v1065_v31 = vpop.permute.xlu2 %1064 }
 0x32d   : > { %v1061_v29 = vpop.permute.xlu0 %1060 }
 0x331   : > { %v1057_v27 = vpop.permute.xlu1 %1056 }
 0x332   : > { %v1068_v30 = vsel %vm576_vm0, %v1048_v24, %v1057_v27  ;;  %v1572_v24 = vld [vmem:[%s2071_s9] ss:$0 sm:$0xff] }
 0x333   : > { %v1070_v32 = vsel %vm1069_vm5, %v1068_v30, %v1061_v29 }
 0x334   : > { %v1072_v33 = vsel %vm1071_vm6, %v1070_v32, %v1065_v31 }
 0x335   : > { %v1960_v34 = vadd.f32 %v1074_v28, %v1072_v33 }
 0x337   : > { %v1079_v35 = vsel %vm1078_vm7, %v1960_v34, 0.0 }
 0x338   : > { %1080 = vadd.xlane.f32.xlu1 %v1079_v35 }
 0x3ab   : > { %v1081_v43 = vpop.xlane.xlu1 %1080 }
 0x3ac   : > { %v1089_v44 = vmul.f32 %v1964_v42, %v1081_v43 }
 0x3ae   : > { %v1090_v45 = vsub.f32 %v1960_v34, %v1089_v44 }
 0x3b0   : > { %v1091_v46 = vmul.f32 %v1090_v45, %v1090_v45 }
 0x3b2   : > { %v1092_v47 = vsel %vm1078_vm7, %v1091_v46, 0.0 }
 0x3b3   : > { %1093 = vadd.xlane.f32.xlu0 %v1092_v47  ;;  %v1574_v47 = vld [vmem:[%s2073_s11] ss:$0 sm:$0xff] }
 0x426   : > { %v1094_v52 = vpop.xlane.xlu0 %1093 }
 0x427   : > { %v1095_v53 = vmul.f32 %v1094_v52, %v1964_v42 }
 0x429   : > { %v1096_v55 = vadd.f32 1e-05, %v1095_v53 }
 0x42b   : > { %1601 = vrsqrt.f32 %v1096_v55  ;;  %vm1103_vm10 = vweird.f32 %v1096_v55 }
 0x431   : > { %v1602_v56 = vpop.eup %1601 }
 0x432   : > { %v1098_v57 = vmul.f32 %v1602_v56, %v1096_v55  ;;  %vm1104_vm9 = vweird.f32 %v1602_v56 }
 0x433   : > { %vm1105_vm11 = vmor %vm1103_vm10, %vm1104_vm9 }
 0x434   : > { %v1099_v58 = vmul.f32 %v1602_v56, %v1098_v57 }
 0x436   : > { %v1100_v51 = vmul.f32 0.5, %v1099_v58 }
 0x438   : > { %v1101_v59 = vsub.f32 1.5, %v1100_v51 }
 0x43a   : > { %v1102_v60 = vmul.f32 %v1602_v56, %v1101_v59 }
 0x43c   : > { %v1106_v62 = vsel %vm1105_vm11, %v1602_v56, %v1102_v60 }
 0x43d   : > { %v1107_v63 = vmul.f32 %v1106_v62, %v1090_v45  ;;  %v1573_v45 = vld [vmem:[%s2072_s10] ss:$0 sm:$0xff] }
 0x43f   : > { %v1111_v1 = vmul.f32 %v1569_v61, %v1107_v63 }
 0x441   : > { %v1115_v2 = vadd.f32 %v1570_v0, %v1111_v1 }
 0x443   : > { %v1116_v3 = vpack.c.bf16 %v1115_v2, %v1115_v2 }
 0x445   : > { %1452 = vmatmul.msk.bf16.vlgmr.msra.gmra.mxu0 %vm1078_vm7, %v1116_v3 }
 0x4c2   : > { %v1149_v11 = vpop.f32.mrf.mxu0 }
 0x4c3   : > { %v1150_v12 = vadd.f32 %v1571_v10, %v1149_v11 }
 0x4c5   : > { %v1154_v13 = vmul.f32 0.044715, %v1150_v12  ;;  %v1153_v20 = vmul.f32 0.5, %v1150_v12 }
 0x4c7   : > { %v1155_v14 = vmul.f32 %v1154_v13, %v1150_v12 }
 0x4c9   : > { %v1156_v15 = vmul.f32 %v1155_v14, %v1150_v12 }
 0x4ca   : > { %v1151_v16 = vpop.f32.mrf.mxu0 }
 0x4cb   : > { %v1157_v17 = vadd.f32 %v1156_v15, %v1150_v12 }
 0x4cd   : > { %v1158_v18 = vmul.f32 0.7978846, %v1157_v17 }
 0x4cf   : > { %1603 = vtanh.f32 %v1158_v18 }
 0x4d5   : > { %v1604_v19 = vpop.eup %1603 }
 0x4d6   : > { %v1160_v21 = vadd.f32 1.0, %v1604_v19 }
 0x4d8   : > { %v1161_v22 = vmul.f32 %v1160_v21, %v1153_v20 }
 0x4da   : > { %v1162_v23 = vpack.c.bf16 %v1161_v22, %v1161_v22 }
 0x4dc   : > { %1239 = vmatmul.bf16.vlgmr.msrb.gmra.mxu1 %v1162_v23 }
 0x559   : > { %v1240_v25 = vpop.f32.mrf.mxu1 }
 0x55a   : > { %v1241_v26 = vadd.f32 %v1572_v24, %v1240_v25 }
 0x55c   : > { %v1244_v27 = vadd.f32 %v1241_v26, %v1960_v34 }
 0x55e   : > { %v1247_v28 = vsel %vm1078_vm7, %v1244_v27, 0.0 }
 0x55f   : > { %1248 = vadd.xlane.f32.xlu2 %v1247_v28 }
 0x561   : > { %v1242_v29 = vpop.f32.mrf.mxu1 }
 0x5d2   : > { %v1249_v30 = vpop.xlane.xlu2 %1248 }
 0x5d3   : > { %v1250_v31 = vmul.f32 %v1249_v30, %v1964_v42 }
 0x5d5   : > { %v1251_v32 = vsub.f32 %v1244_v27, %v1250_v31 }
 0x5d7   : > { %v1252_v33 = vmul.f32 %v1251_v32, %v1251_v32 }
 0x5d9   : > { %v1253_v35 = vsel %vm1078_vm7, %v1252_v33, 0.0 }
 0x5da   : > { %1254 = vadd.xlane.f32.xlu1 %v1253_v35 }
 0x64d   : > { %v1255_v36 = vpop.xlane.xlu1 %1254 }
 0x64e   : > { %v1256_v37 = vmul.f32 %v1255_v36, %v1964_v42 }
 0x650   : > { %v1257_v38 = vadd.f32 1e-05, %v1256_v37 }
 0x652   : > { %1605 = vrsqrt.f32 %v1257_v38  ;;  %vm1264_vm13 = vweird.f32 %v1257_v38 }
 0x658   : > { %v1606_v34 = vpop.eup %1605 }
 0x659   : > { %v1259_v39 = vmul.f32 %v1606_v34, %v1257_v38  ;;  %vm1265_vm12 = vweird.f32 %v1606_v34 }
 0x65a   : > { %vm1266_vm14 = vmor %vm1264_vm13, %vm1265_vm12 }
 0x65b   : > { %v1260_v40 = vmul.f32 %v1606_v34, %v1259_v39 }
 0x65d   : > { %v1261_v41 = vmul.f32 0.5, %v1260_v40 }
 0x65f   : > { %v1262_v43 = vsub.f32 1.5, %v1261_v41 }
 0x661   : > { %v1263_v44 = vmul.f32 %v1606_v34, %v1262_v43 }
 0x663   : > { %v1267_v42 = vsel %vm1266_vm14, %v1606_v34, %v1263_v44 }
 0x664   : > { %v1268_v46 = vmul.f32 %v1267_v42, %v1251_v32 }
 0x666   : > { %v1272_v48 = vmul.f32 %v1573_v45, %v1268_v46 }
 0x668   : > { %v1276_v49 = vadd.f32 %v1574_v47, %v1272_v48 }
 0x66a   : > { %1277 = vst.msk [vmem:[%s522_s2] sm:$0xff] %vm1078_vm7, %v1276_v49 }
 0x66b   : > { %1634 = shalt.err (!%p1631_p5)
}
 0x66c   : > { %1502 = dma.vmem_to_hbm [thread:$0]  (%p1801_p4), %s1293_s24, 128, %s1295_s3, %s1279_s30  }
 0x66d PF: > { %p1508_p6 = scmp.ge.s32.totalorder %s1685_s26, 2  ;;  %s1306_s2 = sand.u32 1, %s1665_s21  }
 0x66e   : > { %s1307_s17 = scalar_lea.sflag [#allocation6], %s1306_s2 }
 0x66f   : > { %p1505_p7 = pnand %p1508_p6, %p1808_p8 }
 0x671   : > { %p1506_p9 = pneg %p1505_p7 }
 0x673   : > { %1660 = dma.done.wait (%p1506_p9), %s1307_s17, 128  }
 0x674   : > { %1662 = vsyncadd (%p1506_p9), %s1307_s17, 4294967168  ;;  %s25_s26 = sadd.s32 1, %s1685_s26   ;;  %s2085_s21 = smov %s1669_s22 }
 0x675   : > { %p22_p10 = scmp.ge.s32.totalorder %s25_s26, 4   ;;  %s2086_s22 = smov %s1673_s23 }
 0x676   : > { %s2087_s23 = smov %s1814_s16  ;;  %s2088_s24 = smov %s1681_s25 }
 0x677   : > { %s2089_s25 = smov %s2091_s29  ;;  %24 = sbr.rel (!%p22_p10) target bundleno = 9 (0x9), region = 124 }
 0x67c   :  { %1313 = vsyncpa [#allocation6], 1 }
 0x67d   :  { %1315 = vsyncpa [#allocation6 + $0x1], 1 }

// kernel: gpt2_forward.5
= control target key start
LH: loop header
LB: loop body
LE: loop exit
PB: predicated region body
PF: predicated region fallthrough
CT: control target
= control target key end

     0   :  { %s1630_s21 = smov 0   ;;  %s1632_s22 = smov 0   ;;  %s1856_s0 = inlined_call_operand.vmem [shape: bf16[2,8,32], index: 0, kind: input, shape index: {}]   ;;  %s1857_s1 = inlined_call_operand.vmem [shape: bf16[2,4,8,8], index: 1, kind: input, shape index: {}]   ;;  %s1858_s2 = inlined_call_operand.vmem [shape: bf16[2,4,8,8], index: 2, kind: input, shape index: {}]   ;;  %s1859_s3 = inlined_call_operand.vmem [shape: bf16[2,4,8,8], index: 3, kind: input, shape index: {}]   ;;  %s1860_s4 = inlined_call_operand.vmem [shape: f32[1,32], index: 4, kind: input, shape index: {}]   ;;  %s1861_s5 = inlined_call_operand.vmem [shape: f32[1,32], index: 5, kind: input, shape index: {}]   ;;  %s1862_s6 = inlined_call_operand.vmem [shape: bf16[32,128], index: 6, kind: input, shape index: {}]   ;;  %s1863_s7 = inlined_call_operand.vmem [shape: f32[1,128], index: 7, kind: input, shape index: {}]   ;;  %s1864_s8 = inlined_call_operand.vmem [shape: bf16[128,32], index: 8, kind: input, shape index: {}]   ;;  %s1865_s9 = inlined_call_operand.vmem [shape: f32[1,32], index: 9, kind: input, shape index: {}]   ;;  %s1866_s10 = inlined_call_operand.vmem [shape: f32[1,32], index: 10, kind: input, shape index: {}]   ;;  %s1867_s11 = inlined_call_operand.vmem [shape: f32[1,32], index: 11, kind: input, shape index: {}]   ;;  %s1868_s12 = inlined_call_operand.vmem [shape: bf16[2,8,32], index: 12, kind: output, shape index: {}]  }
   0x1   :  { %s1634_s23 = smov 0  }
   0x2 LB: > { %s41_s10 = sadd.s32 1, %s1550_s22  ;;  %p1389_p0 = scmp.ge.s32.totalorder %s1554_s23, 1  ;;  %s1554_s23 = sphi %s1634_s23, %s22_s23   ;;  %s1550_s22 = sphi %s1632_s22, %s1870_s22   ;;  %s1546_s21 = sphi %s1630_s21, %s1869_s21  }
   0x3   : > { %p43_p1 = scmp.ge.s32.totalorder %s41_s10, 2  ;;  %p448_p2 = scmp.lt.s32.totalorder %s1554_s23, 3 }
   0x5   : > { %s1872_s10 = smov (%p43_p1, %s41_s10), 0  ;;  %p449_p3 = pnand %p1389_p0, %p448_p2 }
   0x6   : > { %p522_p4 = scmp.lt.s32.totalorder (!%p449_p3), %s1546_s21, 1  ;;  %s1561_s15 = smov (!%p449_p3), 16  }
   0x7   : > { %452 = sbr.rel (%p449_p3) target bundleno = 1364 (0x554), region = 68  ;;  %s1562_s16 = smov (!%p449_p3), 24  }
   0x8   : > { %s1563_s17 = smov (!%p449_p3), 8  }
   0xc   : > { %s1874_s21 = smov (!%p522_p4, %s1546_s21), 1  ;;  %vm582_vm0 = vcmask 64512   ;;  %v681_v12 = vlaneseq  ;;  %vm573_vm2 = vcmask 7168   ;;  %v1556_v18 = vmov -inf  }
   0xd   : > { %s1651_s11 = sshll.u32 %s1874_s21, 4  ;;  %574 = vst.msk [vmem:[#allocation2] sm:$0xff] %vm573_vm2, %v1556_v18  ;;  %v1557_v32 = vmov 0   ;;  %v1558_v33 = vmov 0.0   ;;  %vm825_vm3 = vcmask 1043456   ;;  %vm951_vm4 = vcmask 1047556  }
   0xe   : > { %s546_s26 = scalar_lea.vmem %s1858_s2, %s1651_s11  ;;  %s536_s29 = scalar_lea.vmem %s1857_s1, %s1651_s11  ;;  %v682_v13 = vshrl.u32 %v681_v12, 7  ;;  %v687_v14 = vand.u32 127, %v681_v12  ;;  %575 = vst.msk [vmem:[#allocation2 + $0x8] sm:$0xff] %vm573_vm2, %v1556_v18  ;;  %1496 = vset.pattern.permute.xlu0 %v1557_v32  ;;  %1497 = vset.pattern.permute.xlu1 %v1557_v32  ;;  %vm1075_vm5 = vcmask 130048   ;;  %vm1077_vm6 = vcmask 195584  }
   0xf   : > { %v595_v0 = vld [vmem:[%s546_s26] sm:$0xf]  ;;  %v596_v1 = vld [vmem:[%s546_s26 + $0x4] sm:$0xf]  ;;  %v597_v4 = vld [vmem:[%s546_s26 + $0x8] sm:$0xf]  ;;  %1495 = vset.pattern.permute.xlu2 %v1557_v32  ;;  %s558_s14 = scalar_lea.vmem %s1859_s3, %s1651_s11 }
  0x10   : > { %v608_v2 = vsel %vm582_vm0, %v595_v0, 0  ;;  %v627_v3 = vsel %vm582_vm0, %v596_v1, 0  ;;  %v646_v5 = vsel %vm582_vm0, %v597_v4, 0  ;;  %v598_v6 = vld [vmem:[%s546_s26 + $0xc] sm:$0xf]  ;;  %vm690_vm1 = vcmp.le.s32.totalorder %v687_v14, %v682_v13  ;;  %576 = vst.msk [vmem:[#allocation2 + $0x10] sm:$0xff] %vm573_vm2, %v1556_v18 }
  0x11   : > { %617 = vmatpush.bf16.xpose.msra.mxu0 %v608_v2  ;;  %636 = vmatpush.bf16.xpose.msra.mxu2 %v627_v3  ;;  %v665_v7 = vsel %vm582_vm0, %v598_v6, 0  ;;  %v591_v8 = vld [vmem:[%s536_s29] sm:$0xf]  ;;  %v592_v9 = vld [vmem:[%s536_s29 + $0x4] sm:$0xf]  ;;  %577 = vst.msk [vmem:[#allocation2 + $0x18] sm:$0xff] %vm573_vm2, %v1556_v18 }
  0x12   : > { %674 = vmatpush.bf16.xpose.msra.mxu3 %v665_v7  ;;  %v594_v10 = vld [vmem:[%s536_s29 + $0xc] sm:$0xf]  ;;  %v593_v11 = vld [vmem:[%s536_s29 + $0x8] sm:$0xf]  ;;  %585 = vst.msk [vmem:[#allocation4 + $0x10] sm:$0xff] %vm582_vm0, %v1558_v33  ;;  %s1390_s18 = sshll.u32 %s1874_s21, 2 }
  0x13   : > { %578 = vst.msk [vmem:[#allocation3] sm:$0xff] %vm573_vm2, %v1558_v33  ;;  %v601_v52 = vld [vmem:[%s558_s14 + $0x8] sm:$0xf]  ;;  %v599_v54 = vld [vmem:[%s558_s14] sm:$0xf]  ;;  %s528_s11 = scalar_lea.vmem %s1856_s0, %s1390_s18  ;;  %vm1084_vm7 = vcmask 261120   ;;  %s567_s24 = scalar_lea.vmem %s1868_s12, %s1390_s18 }
  0x14   : > { %579 = vst.msk [vmem:[#allocation3 + $0x8] sm:$0xff] %vm573_vm2, %v1558_v33  ;;  %v1701_v34 = vld [vmem:[#allocation2] sm:$0xff]  ;;  %v865_v53 = vsel %vm825_vm3, %v601_v52, 0  ;;  %v827_v55 = vsel %vm825_vm3, %v599_v54, 0  ;;  %v602_v56 = vld [vmem:[%s558_s14 + $0xc] sm:$0xf] }
  0x15   : > { %580 = vst.msk [vmem:[#allocation3 + $0x10] sm:$0xff] %vm573_vm2, %v1558_v33  ;;  %v1711_v38 = vld [vmem:[#allocation2 + $0x8] sm:$0xff]  ;;  %v600_v57 = vld [vmem:[%s558_s14 + $0x4] sm:$0xf]  ;;  %v884_v58 = vsel %vm825_vm3, %v602_v56, 0  ;;  %vm1252_vm12 = vcmask 257024  }
  0x16   : > { %581 = vst.msk [vmem:[#allocation3 + $0x18] sm:$0xff] %vm573_vm2, %v1558_v33  ;;  %v846_v59 = vsel %vm825_vm3, %v600_v57, 0 }
  0x17   : > { %583 = vst.msk [vmem:[#allocation4] sm:$0xff] %vm582_vm0, %v1558_v33  ;;  %v699_v42 = vld [vmem:[#allocation2 + $0x10] sm:$0xff]  ;;  %855 = vmatpush.bf16.msra.mxu1 %v846_v59 }
  0x18   : > { %1398 = vmatmul.msk.bf16.vlgmr.msra.gmra.mxu0 %vm582_vm0, %v591_v8  ;;  %1399 = vmatmul.msk.bf16.vlgmr.msra.gmra.mxu2 %vm582_vm0, %v592_v9  ;;  %584 = vst.msk [vmem:[#allocation4 + $0x8] sm:$0xff] %vm582_vm0, %v1558_v33  ;;  %v1722_v47 = vld [vmem:[#allocation2 + $0x18] sm:$0xff] }
  0x19   : > { %655 = vmatpush.bf16.xpose.msrb.mxu2 %v646_v5  ;;  %1401 = vmatmul.msk.bf16.vlgmr.msra.gmra.mxu3 %vm582_vm0, %v594_v10  ;;  %586 = vst.msk [vmem:[#allocation4 + $0x18] sm:$0xff] %vm582_vm0, %v1558_v33 }
  0x1a   : > { %836 = vmatpush.bf16.msrb.mxu0 %v827_v55  ;;  %893 = vmatpush.bf16.msrb.mxu3 %v884_v58 }
  0x1b   : > { %v762_v32 = vld [vmem:[#allocation3 + $0x8] sm:$0xff] }
  0x1e   : > { %v790_v56 = vld [vmem:[#allocation4] sm:$0xff] }
  0x20   : > { %v793_v55 = vld [vmem:[#allocation4 + $0x18] sm:$0xff] }
  0x21   : > { %874 = vmatpush.bf16.msra.mxu2 %v865_v53 }
  0x28   : > { %1400 = vmatmul.msk.bf16.vlgmr.msrb.gmra.mxu2 %vm582_vm0, %v593_v11 }
  0x95   : > { %v619_v15 = vpop.f32.mrf.mxu0 }
  0x96   : > { %v1670_v16 = vsel %vm690_vm1, %v619_v15, -10000.0 }
  0x97   : > { %v701_v17 = vsel %vm582_vm0, %v1670_v16, -inf }
  0x98   : > { %702 = vmax.xlane.f32.xlu1 %v701_v17 }
  0x9b   : > { %v638_v19 = vpop.f32.mrf.mxu2 }
  0x9c   : > { %v1679_v20 = vsel %vm690_vm1, %v638_v19, -10000.0  ;;  %v676_v23 = vpop.f32.mrf.mxu3 }
  0x9d   : > { %v621_v21 = vpop.f32.mrf.mxu0  ;;  %v704_v22 = vsel %vm582_vm0, %v1679_v20, -inf  ;;  %v1689_v29 = vsel %vm690_vm1, %v676_v23, -10000.0 }
  0x9e   : > { %v710_v30 = vsel %vm582_vm0, %v1689_v29, -inf }
  0xa0   : > { %705 = vmax.xlane.f32.xlu1 %v704_v22 }
  0xa3   : > { %v640_v24 = vpop.f32.mrf.mxu2 }
  0xa4   : > { %v678_v25 = vpop.f32.mrf.mxu3 }
  0xab   : > { %v657_v26 = vpop.f32.mrf.mxu2 }
  0xac   : > { %v1684_v27 = vsel %vm690_vm1, %v657_v26, -10000.0  ;;  %v761_v26 = vld [vmem:[#allocation3] sm:$0xff] }
  0xad   : > { %v707_v28 = vsel %vm582_vm0, %v1684_v27, -inf }
  0xae   : > { %708 = vmax.xlane.f32.xlu0 %v707_v28 }
  0xb3   : > { %v659_v31 = vpop.f32.mrf.mxu2 }
  0xb4   : > { %v764_v31 = vld [vmem:[#allocation3 + $0x18] sm:$0xff] }
  0xb6   : > { %711 = vmax.xlane.f32.xlu0 %v710_v30 }
 0x10b   : > { %v703_v35 = vpop.xlane.xlu1 %702 }
 0x10c   : > { %v1704_v36 = vmax.f32 %v1701_v34, %v703_v35 }
 0x10e   : > { %v717_v37 = vsub.f32 %v1701_v34, %v1704_v36  ;;  %907 = vst.msk [vmem:[#allocation2] sm:$0xff] %vm573_vm2, %v1704_v36  ;;  %731 = vperm.xlu0 %1496, %v1704_v36  }
 0x110   : > { %v721_v19 = vmul.f32 1.442695, %v717_v37 }
 0x113   : > { %v706_v39 = vpop.xlane.xlu1 %705 }
 0x114   : > { %v1714_v40 = vmax.f32 %v1711_v38, %v706_v39 }
 0x116   : > { %v718_v41 = vsub.f32 %v1711_v38, %v1714_v40  ;;  %908 = vst.msk [vmem:[#allocation2 + $0x8] sm:$0xff] %vm573_vm2, %v1714_v40  ;;  %736 = vperm.xlu1 %1497, %v1714_v40   ;;  %v792_v40 = vld [vmem:[#allocation4 + $0x10] sm:$0xff] }
 0x118   : > { %v723_v23 = vmul.f32 1.442695, %v718_v41 }
 0x121   : > { %v709_v43 = vpop.xlane.xlu0 %708 }
 0x122   : > { %v715_v44 = vmax.f32 %v699_v42, %v709_v43 }
 0x124   : > { %v719_v45 = vsub.f32 %v699_v42, %v715_v44  ;;  %909 = vst.msk [vmem:[#allocation2 + $0x10] sm:$0xff] %vm573_vm2, %v715_v44  ;;  %741 = vperm.xlu2 %1495, %v715_v44   ;;  %v763_v42 = vld [vmem:[#allocation3 + $0x10] sm:$0xff] }
 0x126   : > { %v725_v46 = vmul.f32 1.442695, %v719_v45 }
 0x128   : > { %1502 = vpow2.f32 %v725_v46 }
 0x129   : > { %v712_v48 = vpop.xlane.xlu0 %711 }
 0x12a   : > { %v716_v49 = vmax.f32 %v1722_v47, %v712_v48 }
 0x12c   : > { %v720_v50 = vsub.f32 %v1722_v47, %v716_v49  ;;  %910 = vst.msk [vmem:[#allocation2 + $0x18] sm:$0xff] %vm573_vm2, %v716_v49  ;;  %746 = vperm.xlu2 %1495, %v716_v49  }
 0x12e   : > { %v1727_v51 = vpop.eup %1502  ;;  %v727_v22 = vmul.f32 1.442695, %v720_v50 }
 0x12f   : > { %v767_v45 = vmul.f32 %v1727_v51, %v763_v42 }
 0x134   : > { %806 = vperm.xlu2 %1495, %v1727_v51  }
 0x17e   : > { %v742_v60 = vpop.permute.xlu2 %741 }
 0x17f   : > { %v751_v61 = vsub.f32 %v1684_v27, %v742_v60 }
 0x180   : > { %v732_v62 = vpop.permute.xlu0 %731 }
 0x181   : > { %v757_v63 = vmul.f32 1.442695, %v751_v61  ;;  %v749_v0 = vsub.f32 %v1670_v16, %v732_v62 }
 0x183   : > { %1504 = vpow2.f32 %v757_v63  ;;  %v753_v1 = vmul.f32 1.442695, %v749_v0 }
 0x185   : > { %1506 = vpow2.f32 %v753_v1 }
 0x186   : > { %v747_v2 = vpop.permute.xlu2 %746 }
 0x187   : > { %v752_v3 = vsub.f32 %v1689_v29, %v747_v2 }
 0x188   : > { %v737_v4 = vpop.permute.xlu1 %736 }
 0x189   : > { %v1505_v5 = vpop.eup %1504  ;;  %v759_v6 = vmul.f32 1.442695, %v752_v3  ;;  %v750_v7 = vsub.f32 %v1679_v20, %v737_v4  ;;  %v791_v4 = vld [vmem:[#allocation4 + $0x8] sm:$0xff] }
 0x18a   : > { %v820_v8 = vpack.c.bf16 %v1505_v5, %v1505_v5  ;;  %v775_v20 = vsel %vm582_vm0, %v1505_v5, 0.0 }
 0x18b   : > { %v1507_v9 = vpop.eup %1506  ;;  %1508 = vpow2.f32 %v759_v6  ;;  %v755_v10 = vmul.f32 1.442695, %v750_v7 }
 0x18c   : > { %1404 = vmatmul.msk.bf16.vlgmr.msra.gmra.mxu2 %vm582_vm0, %v820_v8  ;;  %v769_v11 = vsel %vm582_vm0, %v1507_v9, 0.0  ;;  %v818_v12 = vpack.c.bf16 %v1507_v9, %v1507_v9 }
 0x18d   : > { %1510 = vpow2.f32 %v755_v10  ;;  %770 = vadd.xlane.f32.xlu1 %v769_v11 }
 0x18e   : > { %1402 = vmatmul.msk.bf16.vlgmr.msrb.gmra.mxu0 %vm582_vm0, %v818_v12  ;;  %1512 = vpow2.f32 %v721_v19  ;;  %v807_v28 = vpop.permute.xlu2 %806 }
 0x18f   : > { %1514 = vpow2.f32 %v727_v22  ;;  %v816_v43 = vmul.f32 %v807_v28, %v792_v40 }
 0x190   : > { %1516 = vpow2.f32 %v723_v23 }
 0x191   : > { %v1509_v13 = vpop.eup %1508 }
 0x192   : > { %v778_v14 = vsel %vm582_vm0, %v1509_v13, 0.0  ;;  %v821_v15 = vpack.c.bf16 %v1509_v13, %v1509_v13 }
 0x193   : > { %v1511_v16 = vpop.eup %1510  ;;  %779 = vadd.xlane.f32.xlu0 %v778_v14 }
 0x194   : > { %1405 = vmatmul.msk.bf16.vlgmr.msrb.gmra.mxu3 %vm582_vm0, %v821_v15  ;;  %v772_v17 = vsel %vm582_vm0, %v1511_v16, 0.0  ;;  %v819_v18 = vpack.c.bf16 %v1511_v16, %v1511_v16  ;;  %v1513_v21 = vpop.eup %1512 }
 0x195   : > { %773 = vadd.xlane.f32.xlu2 %v772_v17  ;;  %v1515_v24 = vpop.eup %1514  ;;  %v765_v27 = vmul.f32 %v1513_v21, %v761_v26  ;;  %v1559_v17 = vmov 1983009808   ;;  %v1560_v26 = vmov 1934713408  }
 0x196   : > { %1403 = vmatmul.msk.bf16.vlgmr.msra.gmra.mxu1 %vm582_vm0, %v819_v18  ;;  %v1517_v25 = vpop.eup %1516  ;;  %v768_v33 = vmul.f32 %v1515_v24, %v764_v31  ;;  %v956_v18 = vunpack.c.l.s4 %v1559_v17 }
 0x197   : > { %v766_v36 = vmul.f32 %v1517_v25, %v762_v32 }
 0x198   : > { %v957_v22 = vunpack.c.0.s8 %v956_v18 }
 0x19d   : > { %776 = vadd.xlane.f32.xlu2 %v775_v20 }
 0x1a6   : > { %796 = vperm.xlu1 %1497, %v1513_v21  }
 0x1b5   : > { %811 = vperm.xlu2 %1495, %v1515_v24  }
 0x1bd   : > { %801 = vperm.xlu2 %1495, %v1517_v25  }
 0x200   : > { %v771_v29 = vpop.xlane.xlu1 %770 }
 0x201   : > { %v781_v30 = vadd.f32 %v771_v29, %v765_v27  ;;  %v980_v27 = vunpack.c.l.s4 %v1560_v26  ;;  %v1079_v26 = vld [vmem:[%s528_s11] sm:$0xf] }
 0x203   : > { %786 = vst.msk [vmem:[#allocation3] sm:$0xff] %vm573_vm2, %v781_v30 }
 0x206   : > { %v780_v34 = vpop.xlane.xlu0 %779 }
 0x207   : > { %v784_v35 = vadd.f32 %v780_v34, %v768_v33  ;;  %v981_v34 = vunpack.c.0.s8 %v980_v27 }
 0x208   : > { %v774_v37 = vpop.xlane.xlu2 %773 }
 0x209   : > { %789 = vst.msk [vmem:[#allocation3 + $0x18] sm:$0xff] %vm573_vm2, %v784_v35  ;;  %v782_v38 = vadd.f32 %v774_v37, %v766_v36 }
 0x20a   : > { %v918_v39 = vld [vmem:[#allocation3] sm:$0xff] }
 0x20b   : > { %787 = vst.msk [vmem:[#allocation3 + $0x8] sm:$0xff] %vm573_vm2, %v782_v38  ;;  %v838_v41 = vpop.f32.mrf.mxu0  ;;  %1518 = vrcp.f32 %v918_v39 }
 0x20f   : > { %v876_v44 = vpop.f32.mrf.mxu2 }
 0x210   : > { %v901_v46 = vadd.f32 %v876_v44, %v816_v43  ;;  %v777_v47 = vpop.xlane.xlu2 %776  ;;  %v921_v48 = vld [vmem:[#allocation3 + $0x18] sm:$0xff] }
 0x211   : > { %v1519_v49 = vpop.eup %1518  ;;  %v783_v50 = vadd.f32 %v777_v47, %v767_v45  ;;  %1520 = vrcp.f32 %v921_v48 }
 0x212   : > { %905 = vst.msk [vmem:[#allocation4 + $0x10] sm:$0xff] %vm582_vm0, %v901_v46  ;;  %928 = vperm.xlu2 %1495, %v1519_v49   ;;  %v919_v52 = vld [vmem:[#allocation3 + $0x8] sm:$0xff] }
 0x213   : > { %788 = vst.msk [vmem:[#allocation3 + $0x10] sm:$0xff] %vm573_vm2, %v783_v50  ;;  %v840_v53 = vpop.f32.mrf.mxu0  ;;  %v857_v54 = vpop.f32.mrf.mxu1  ;;  %1522 = vrcp.f32 %v919_v52 }
 0x217   : > { %v1521_v57 = vpop.eup %1520  ;;  %v878_v58 = vpop.f32.mrf.mxu2 }
 0x218   : > { %v895_v51 = vpop.f32.mrf.mxu3  ;;  %943 = vperm.xlu1 %1497, %v1521_v57   ;;  %v812_v59 = vpop.permute.xlu2 %811 }
 0x219   : > { %v797_v60 = vpop.permute.xlu1 %796  ;;  %v1523_v61 = vpop.eup %1522  ;;  %v817_v62 = vmul.f32 %v812_v59, %v793_v55  ;;  %v916_v29 = vld [vmem:[#allocation4 + $0x10] sm:$0xff] }
 0x21a   : > { %v814_v63 = vmul.f32 %v797_v60, %v790_v56  ;;  %933 = vperm.xlu2 %1495, %v1523_v61   ;;  %v920_v0 = vld [vmem:[#allocation3 + $0x10] sm:$0xff] }
 0x21b   : > { %v902_v1 = vadd.f32 %v895_v51, %v817_v62  ;;  %v859_v3 = vpop.f32.mrf.mxu1  ;;  %1524 = vrcp.f32 %v920_v0 }
 0x21c   : > { %v899_v2 = vadd.f32 %v838_v41, %v814_v63 }
 0x21d   : > { %906 = vst.msk [vmem:[#allocation4 + $0x18] sm:$0xff] %vm582_vm0, %v902_v1 }
 0x21e   : > { %903 = vst.msk [vmem:[#allocation4] sm:$0xff] %vm582_vm0, %v899_v2 }
 0x220   : > { %v897_v5 = vpop.f32.mrf.mxu3  ;;  %v802_v6 = vpop.permute.xlu2 %801 }
 0x221   : > { %v1525_v7 = vpop.eup %1524  ;;  %v815_v8 = vmul.f32 %v802_v6, %v791_v4 }
 0x222   : > { %938 = vperm.xlu0 %1496, %v1525_v7  }
 0x223   : > { %v900_v9 = vadd.f32 %v857_v54, %v815_v8 }
 0x224   : > { %v917_v13 = vld [vmem:[#allocation4 + $0x18] sm:$0xff] }
 0x225   : > { %904 = vst.msk [vmem:[#allocation4 + $0x8] sm:$0xff] %vm582_vm0, %v900_v9  ;;  %v914_v21 = vld [vmem:[#allocation4] sm:$0xff] }
 0x22c   : > { %v915_v12 = vld [vmem:[#allocation4 + $0x8] sm:$0xff] }
 0x26c   : > { %v929_v10 = vpop.permute.xlu2 %928 }
 0x26d   : > { %v946_v23 = vmul.f32 %v929_v10, %v914_v21 }
 0x26f   : > { %v953_v31 = vrot.slane %v946_v23, 4 }
 0x274   : > { %v934_v11 = vpop.permute.xlu2 %933 }
 0x275   : > { %v947_v15 = vmul.f32 %v934_v11, %v915_v12 }
 0x277   : > { %v965_v19 = vrot.slane %v947_v15, 4 }
 0x28a   : > { %v944_v14 = vpop.permute.xlu1 %943 }
 0x28b   : > { %v949_v16 = vmul.f32 %v944_v14, %v917_v13 }
 0x28d   : > { %v963_v20 = vrot.slane %v949_v16, 4  ;;  %v966_v24 = vsel %vm951_vm4, %v949_v16, %v965_v19 }
 0x28e   : > { %v974_v28 = vperm.slane %v966_v24, %v957_v22 }
 0x28f   : > { %v964_v25 = vsel %vm951_vm4, %v963_v20, %v947_v15 }
 0x290   : > { %v970_v33 = vperm.slane %v964_v25, %v957_v22  ;;  %v987_v37 = vrot.slane %v974_v28, 4 }
 0x292   : > { %v975_v40 = vrot.slane %v970_v33, 4 }
 0x294   : > { %v939_v30 = vpop.permute.xlu0 %938 }
 0x295   : > { %v948_v32 = vmul.f32 %v939_v30, %v916_v29 }
 0x297   : > { %v950_v35 = vrot.slane %v948_v32, 4  ;;  %v954_v36 = vsel %vm951_vm4, %v948_v32, %v953_v31 }
 0x298   : > { %v962_v38 = vperm.slane %v954_v36, %v957_v22  ;;  %v1564_v36 = vmov 32.0  }
 0x299   : > { %v952_v39 = vsel %vm951_vm4, %v950_v35, %v946_v23  ;;  %1526 = vrcp.f32 %v1564_v36 }
 0x29a   : > { %v958_v41 = vperm.slane %v952_v39, %v957_v22  ;;  %v988_v42 = vsel %vm951_vm4, %v987_v37, %v962_v38  ;;  %v989_v43 = vrot.slane %v962_v38, 4 }
 0x29b   : > { %v994_v44 = vperm.slane %v988_v42, %v981_v34 }
 0x29c   : > { %v976_v45 = vsel %vm951_vm4, %v975_v40, %v958_v41  ;;  %v977_v46 = vrot.slane %v958_v41, 4  ;;  %v990_v47 = vsel %vm951_vm4, %v974_v28, %v989_v43  ;;  %v1080_v28 = vunpack.c.l.bf16 %v1079_v26 }
 0x29d   : > { %v982_v48 = vperm.slane %v976_v45, %v981_v34  ;;  %v998_v49 = vperm.slane %v990_v47, %v981_v34  ;;  %v1003_v53 = vrot.slane %v994_v44, 4 }
 0x29e   : > { %v978_v50 = vsel %vm951_vm4, %v970_v33, %v977_v46 }
 0x29f   : > { %v986_v52 = vperm.slane %v978_v50, %v981_v34  ;;  %v1005_v54 = vrot.slane %v998_v49, 4  ;;  %v999_v55 = vrot.slane %v982_v48, 4  ;;  %v1004_v60 = vsel %vm951_vm4, 0.0, %v1003_v53  ;;  %v1527_v37 = vpop.eup %1526  ;;  %v1452_v49 = vld [vmem:[%s1862_s6] sm:$0xff]  ;;  %v1461_v50 = vld [vmem:[%s1864_s8 + $0x38] sm:$0xff] }
 0x2a0   : > { %v1089_v38 = vmul.f32 32.0, %v1527_v37  ;;  %vm1093_vm8 = vweird.f32 %v1527_v37  ;;  %1237 = vmatpush.bf16.msrb.mxu1 %v1461_v50 }
 0x2a1   : > { %v1001_v56 = vrot.slane %v986_v52, 4  ;;  %v1006_v57 = vsel %vm951_vm4, 0.0, %v1005_v54  ;;  %v1018_v58 = vsel %vm951_vm4, %v1005_v54, %v994_v44  ;;  %v1000_v3 = vsel %vm951_vm4, 0.0, %v999_v55  ;;  %v1460_v54 = vld [vmem:[%s1864_s8 + $0x30] sm:$0xff] }
 0x2a2   : > { %v1023_v51 = vrot.slane %v1006_v57, 4  ;;  %v1022_v59 = vperm.slane %v1018_v58, %v957_v22  ;;  %v1090_v39 = vsub.f32 1.0, %v1089_v38 }
 0x2a3   : > { %v1002_v61 = vsel %vm951_vm4, 0.0, %v1001_v56  ;;  %v1007_v62 = vsel %vm951_vm4, %v1001_v56, %v982_v48  ;;  %v1453_v48 = vld [vmem:[%s1862_s6 + $0x8] sm:$0xff] }
 0x2a4   : > { %v1011_v63 = vperm.slane %v1007_v62, %v957_v22  ;;  %v1012_v0 = vrot.slane %v1002_v61, 4  ;;  %v1024_v1 = vsel %vm951_vm4, %v1023_v51, %v1004_v60  ;;  %v1043_v2 = vrot.slane %v1022_v59, 4  ;;  %1152 = vmatpush.bf16.msra.mxu0 %v1453_v48  ;;  %1238 = vmatpush.bf16.msrb.mxu1 %v1460_v54  ;;  %v1498_v61 = vld [vmem:[%s1860_s4] ss:$0 sm:$0xff] }
 0x2a5   : > { %v1028_v4 = vperm.slane %v1024_v1, %v957_v22  ;;  %v1091_v40 = vmul.f32 %v1527_v37, %v1090_v39 }
 0x2a6   : > { %v1013_v5 = vsel %vm951_vm4, %v1012_v0, %v1000_v3  ;;  %v1031_v6 = vrot.slane %v1011_v63, 4  ;;  %v1499_v0 = vld [vmem:[%s1861_s5] ss:$0 sm:$0xff] }
 0x2a7   : > { %v1017_v7 = vperm.slane %v1013_v5, %v957_v22  ;;  %v1044_v8 = vsel %vm951_vm4, %v1028_v4, %v1043_v2  ;;  %v1041_v9 = vrot.slane %v1028_v4, 4  ;;  %v1092_v41 = vadd.f32 %v1527_v37, %v1091_v40  ;;  %v1459_v4 = vld [vmem:[%s1864_s8 + $0x28] sm:$0xff]  ;;  %v1458_v5 = vld [vmem:[%s1864_s8 + $0x20] sm:$0xff] }
 0x2a8   : > { %v1052_v10 = vperm.slane %v1044_v8, %v981_v34  ;;  %1153 = vmatpush.bf16.msra.mxu0 %v1452_v49  ;;  %1239 = vmatpush.bf16.msrb.mxu1 %v1459_v4  ;;  %v1455_v8 = vld [vmem:[%s1864_s8 + $0x8] sm:$0xff] }
 0x2a9   : > { %v1032_v11 = vsel %vm951_vm4, %v1017_v7, %v1031_v6  ;;  %v1029_v12 = vrot.slane %v1017_v7, 4  ;;  %v1042_v13 = vsel %vm951_vm4, %v1041_v9, %v1022_v59  ;;  %v1094_v42 = vsel %vm1093_vm8, %v1527_v37, %v1092_v41  ;;  %v1457_v6 = vld [vmem:[%s1864_s8 + $0x18] sm:$0xff]  ;;  %v1456_v7 = vld [vmem:[%s1864_s8 + $0x10] sm:$0xff]  ;;  %v1454_v9 = vld [vmem:[%s1864_s8] sm:$0xff] }
 0x2aa   : > { %v1040_v14 = vperm.slane %v1032_v11, %v981_v34  ;;  %v1057_v15 = vrot.slane %v1052_v10, 4  ;;  %v1048_v16 = vperm.slane %v1042_v13, %v981_v34 }
 0x2ab   : > { %v1030_v17 = vsel %vm951_vm4, %v1029_v12, %v1011_v63 }
 0x2ac   : > { %v1058_v18 = vsel %vm951_vm4, %v1057_v15, %v1040_v14  ;;  %v1059_v19 = vrot.slane %v1040_v14, 4  ;;  %v1036_v20 = vperm.slane %v1030_v17, %v981_v34  ;;  %v1053_v21 = vrot.slane %v1048_v16, 4  ;;  %1240 = vmatpush.bf16.msrb.mxu1 %v1458_v5 }
 0x2ad   : > { %1066 = vrot.lane.b32.xlu0 %v1058_v18, %s1561_s15 }
 0x2ae   : > { %v1060_v22 = vsel %vm951_vm4, %v1052_v10, %v1059_v19  ;;  %v1055_v23 = vrot.slane %v1036_v20, 4  ;;  %v1054_v24 = vsel %vm951_vm4, %v1053_v21, %v1036_v20  ;;  %v1500_v10 = vld [vmem:[%s1863_s7] ss:$0 sm:$0xff] }
 0x2af   : > { %1070 = vrot.lane.b32.xlu2 %v1060_v22, %s1562_s16 }
 0x2b0   : > { %v1056_v25 = vsel %vm951_vm4, %v1048_v16, %v1055_v23  ;;  %1241 = vmatpush.bf16.msrb.mxu1 %v1457_v6 }
 0x2b1   : > { %1062 = vrot.lane.b32.xlu1 %v1056_v25, %s1563_s17 }
 0x2b4   : > { %1242 = vmatpush.bf16.msrb.mxu1 %v1456_v7 }
 0x2b8   : > { %1243 = vmatpush.bf16.msrb.mxu1 %v1455_v8 }
 0x2bc   : > { %1244 = vmatpush.bf16.msrb.mxu1 %v1454_v9 }
 0x309   : > { %v1071_v31 = vpop.permute.xlu2 %1070 }
 0x31f   : > { %v1067_v29 = vpop.permute.xlu0 %1066 }
 0x323   : > { %v1063_v27 = vpop.permute.xlu1 %1062 }
 0x324   : > { %v1074_v30 = vsel %vm582_vm0, %v1054_v24, %v1063_v27  ;;  %v1501_v24 = vld [vmem:[%s1865_s9] ss:$0 sm:$0xff] }
 0x325   : > { %v1076_v32 = vsel %vm1075_vm5, %v1074_v30, %v1067_v29 }
 0x326   : > { %v1078_v33 = vsel %vm1077_vm6, %v1076_v32, %v1071_v31 }
 0x327   : > { %v1792_v34 = vadd.f32 %v1080_v28, %v1078_v33 }
 0x329   : > { %v1085_v35 = vsel %vm1084_vm7, %v1792_v34, 0.0 }
 0x32a   : > { %1086 = vadd.xlane.f32.xlu1 %v1085_v35 }
 0x39d   : > { %v1087_v43 = vpop.xlane.xlu1 %1086 }
 0x39e   : > { %v1095_v44 = vmul.f32 %v1094_v42, %v1087_v43 }
 0x3a0   : > { %v1096_v45 = vsub.f32 %v1792_v34, %v1095_v44 }
 0x3a2   : > { %v1097_v46 = vmul.f32 %v1096_v45, %v1096_v45 }
 0x3a4   : > { %v1098_v47 = vsel %vm1084_vm7, %v1097_v46, 0.0 }
 0x3a5   : > { %1099 = vadd.xlane.f32.xlu0 %v1098_v47 }
 0x418   : > { %v1100_v52 = vpop.xlane.xlu0 %1099 }
 0x419   : > { %v1101_v53 = vmul.f32 %v1100_v52, %v1094_v42 }
 0x41b   : > { %v1102_v55 = vadd.f32 1e-05, %v1101_v53 }
 0x41d   : > { %1528 = vrsqrt.f32 %v1102_v55  ;;  %vm1109_vm10 = vweird.f32 %v1102_v55 }
 0x423   : > { %v1529_v56 = vpop.eup %1528 }
 0x424   : > { %v1104_v57 = vmul.f32 %v1529_v56, %v1102_v55  ;;  %vm1110_vm9 = vweird.f32 %v1529_v56 }
 0x425   : > { %vm1111_vm11 = vmor %vm1109_vm10, %vm1110_vm9 }
 0x426   : > { %v1105_v58 = vmul.f32 %v1529_v56, %v1104_v57 }
 0x428   : > { %v1106_v51 = vmul.f32 0.5, %v1105_v58 }
 0x42a   : > { %v1107_v59 = vsub.f32 1.5, %v1106_v51 }
 0x42c   : > { %v1108_v60 = vmul.f32 %v1529_v56, %v1107_v59 }
 0x42e   : > { %v1112_v62 = vsel %vm1111_vm11, %v1529_v56, %v1108_v60 }
 0x42f   : > { %v1113_v63 = vmul.f32 %v1112_v62, %v1096_v45 }
 0x431   : > { %v1117_v1 = vmul.f32 %v1498_v61, %v1113_v63 }
 0x433   : > { %v1121_v2 = vadd.f32 %v1499_v0, %v1117_v1 }
 0x435   : > { %v1122_v3 = vpack.c.bf16 %v1121_v2, %v1121_v2 }
 0x437   : > { %1414 = vmatmul.msk.bf16.vlgmr.msra.gmra.mxu0 %vm1084_vm7, %v1122_v3 }
 0x4b4   : > { %v1155_v11 = vpop.f32.mrf.mxu0 }
 0x4b5   : > { %v1156_v12 = vadd.f32 %v1500_v10, %v1155_v11 }
 0x4b7   : > { %v1160_v13 = vmul.f32 0.044715, %v1156_v12  ;;  %v1159_v20 = vmul.f32 0.5, %v1156_v12 }
 0x4b9   : > { %v1161_v14 = vmul.f32 %v1160_v13, %v1156_v12 }
 0x4bb   : > { %v1162_v15 = vmul.f32 %v1161_v14, %v1156_v12 }
 0x4bc   : > { %v1157_v16 = vpop.f32.mrf.mxu0 }
 0x4bd   : > { %v1163_v17 = vadd.f32 %v1162_v15, %v1156_v12 }
 0x4bf   : > { %v1164_v18 = vmul.f32 0.7978846, %v1163_v17 }
 0x4c1   : > { %1530 = vtanh.f32 %v1164_v18 }
 0x4c7   : > { %v1531_v19 = vpop.eup %1530 }
 0x4c8   : > { %v1166_v21 = vadd.f32 1.0, %v1531_v19 }
 0x4ca   : > { %v1167_v22 = vmul.f32 %v1166_v21, %v1159_v20 }
 0x4cc   : > { %v1168_v23 = vpack.c.bf16 %v1167_v22, %v1167_v22 }
 0x4ce   : > { %1245 = vmatmul.bf16.vlgmr.msrb.gmra.mxu1 %v1168_v23 }
 0x54b   : > { %v1246_v25 = vpop.f32.mrf.mxu1 }
 0x54c   : > { %v1247_v26 = vadd.f32 %v1501_v24, %v1246_v25 }
 0x54e   : > { %v1250_v27 = vadd.f32 %v1247_v26, %v1792_v34 }
 0x550   : > { %v1251_v28 = vpack.c.bf16 %v1250_v27, %v1250_v27 }
 0x552   : > { %1253 = vst.msk [vmem:[%s567_s24] sm:$0xf] %vm1252_vm12, %v1251_v28 }
 0x553   : > { %v1248_v29 = vpop.f32.mrf.mxu1 }
 0x554 PF: > { %s22_s23 = sadd.s32 1, %s1554_s23   ;;  %s1869_s21 = smov %s1550_s22 }
 0x555   : > { %p19_p5 = scmp.ge.s32.totalorder %s22_s23, 4   ;;  %s1870_s22 = smov %s1872_s10 }
 0x557   :  { %21 = sbr.rel (!%p19_p5) target bundleno = 2 (0x2), region = 119 }

</bundles_post_ra>
